<compile_context>
chip_gen: v5e
topology: v5e:2x2
jax: 0.10.0
libtpu: 0.0.40
codegen_flags: <defaults>
</compile_context>

<pallas_src>
import numpy as np
import jax
import jax.numpy as jnp
from jax import lax
from jax.experimental import pallas as pl
from jax.experimental.pallas import tpu as pltpu

NS = 8        # number of source nodes
ND = 8        # number of destination nodes
N = NS + ND   # total nodes
D = 16        # node embedding dim
H = 32        # hidden dim
E = 8         # number of true events (simulation steps, training mode)
EPS = float(np.finfo(np.float32).eps)


def _sim_kernel(src_ref, dst_ref, t_ref, scal_ref,          # SMEM
                embT_ref, w_initT_ref, b_initT_ref,         # VMEM
                w1T_ref, u_impT_ref, b_impT_ref, w2T_ref,   # VMEM
                out_ref):                                    # VMEM (1, 128)
    # packed scalar params: [b_int, b_node, w_node_t, b_edge, w_edge_t]
    b_int = scal_ref[0]
    b_node = scal_ref[1]
    w_node_t = scal_ref[2]
    b_edge = scal_ref[3]
    w_edge_t = scal_ref[4]

    # hidden_init_function: tanh(node_embed @ W_init + b_init), stored
    # feature-major as hT = (H, N): lanes = nodes, sublanes = features.
    hT = jnp.tanh(
        jnp.dot(w_initT_ref[...], embT_ref[...],
                preferred_element_type=jnp.float32) + b_initT_ref[...])

    w1T = w1T_ref[...]        # (H+2, H): rows [0:H]=W_imp^T, [H]=w_int^T, [H+1]=w_node^T
    w2T = w2T_ref[...]        # (2, H):   row 0 = w_edge_src^T, row 1 = w_edge_dst^T
    u_impT = u_impT_ref[...]  # (H, 1)
    b_impT = b_impT_ref[...]  # (H, 1)

    lane_src = lax.broadcasted_iota(jnp.int32, (1, NS), 1)   # 0..NS-1
    lane_all = lax.broadcasted_iota(jnp.int32, (1, N), 1)    # 0..N-1
    is_dst_lane = lane_all >= NS

    time_loss = jnp.float32(0.0)
    type_loss = jnp.float32(0.0)
    dt_prev = jnp.float32(0.0)   # delta-t of the previous event (0 before step 1)

    for step in range(E):        # E is a small compile-time constant: full unroll
        # compute_delta_t: ts = t[step] - t[step-1], and 0 for the first event.
        if step == 0:
            ts = jnp.float32(0.0)
        else:
            ts = t_ref[step] - t_ref[step - 1]
        true_src = src_ref[step]          # global id in [0, NS)
        true_dst = dst_ref[step]          # global id in [NS, N)

        # One fused matmul on the PRE-impact hidden: impact pre-activation,
        # intensity pre-activation and node-score pre-activation.
        fused = jnp.dot(w1T, hT, preferred_element_type=jnp.float32)   # (H+2, N)

        # node_intensity_function: softplus(h @ W_int + b_int); lambda = 1/that
        lam = 1.0 / jax.nn.softplus(fused[H:H + 1, :NS] + b_int)       # (1, NS)
        # node_function scores (pre-impact hidden, as in the reference)
        src_scores = fused[H + 1:H + 2, :NS] + b_node + ts * w_node_t  # (1, NS)

        # impact_function (skipped at step 0), driven by the previous delta-t.
        if step != 0:
            hT = jnp.tanh(fused[:H, :] + dt_prev * u_impT + b_impT)

        # time loss: OneLevelMLELoss('pointprocess')(lambda.sum(), lambda*ts)
        lam_sum = jnp.sum(lam)
        time_loss = time_loss + (-jnp.log(lam_sum + EPS) + ts * lam_sum)

        # source-node multinoulli: lane softmax over the NS source nodes
        m_s = jnp.max(src_scores, axis=1, keepdims=True)
        e_s = jnp.exp(src_scores - m_s)
        src_prob = e_s / jnp.sum(e_s, axis=1, keepdims=True)
        p_src = jnp.sum(jnp.where(lane_src == true_src, src_prob, 0.0))

        # edge_function on the POST-impact hidden:
        #   cat([src_feat, dst_feat]) @ W_edge == src·w_edge_src + dst·w_edge_dst
        edge = jnp.dot(w2T, hT, preferred_element_type=jnp.float32)    # (2, N)
        e_src = jnp.sum(jnp.where(lane_all == true_src, edge[0:1, :], 0.0))
        dst_scores = e_src + edge[1:2, :] + b_edge + ts * w_edge_t     # (1, N)
        masked = jnp.where(is_dst_lane, dst_scores, jnp.float32(-1e30))
        m_d = jnp.max(masked, axis=1, keepdims=True)
        e_d = jnp.where(is_dst_lane, jnp.exp(masked - m_d), 0.0)
        dst_prob = e_d / jnp.sum(e_d, axis=1, keepdims=True)
        p_dst = jnp.sum(jnp.where(lane_all == true_dst, dst_prob, 0.0))

        # TwoLevelMLELoss (multinoulli + multinoulli)
        type_loss = type_loss + (-jnp.log(p_src + EPS) - jnp.log(p_dst + EPS))
        dt_prev = ts

    # single lane-dense final store: [0,0]=time_loss, [0,1]=type_loss
    lane128 = lax.broadcasted_iota(jnp.int32, (1, 128), 1)
    out_ref[...] = jnp.where(lane128 == 0, time_loss,
                             jnp.where(lane128 == 1, type_loss, 0.0))


def _mean_fill(embed, lo, hi):
    # torch glue: rows of a partition that are all-zero get the mean of the
    # non-zero rows of that partition (if any exist).
    part = embed[lo:hi]
    zero_mask = jnp.all(part == 0.0, axis=1)
    n_old = jnp.sum(~zero_mask)
    has_old = n_old > 0
    mean_old = (jnp.sum(jnp.where(zero_mask[:, None], 0.0, part), axis=0)
                / jnp.maximum(n_old, 1).astype(part.dtype))
    filled = jnp.where(zero_mask[:, None] & has_old, mean_old[None, :], part)
    return embed.at[lo:hi].set(filled)


@jax.jit
def simulation_layer_forward(node_embed, src_ids, dst_ids, timestamps, params):
    """Training-mode bipartite forward: returns (total_time_loss, total_type_loss)."""
    # glue (plain JAX, same fused jit region as the kernel): new-node mean fill
    node_embed = _mean_fill(node_embed, 0, NS)
    node_embed = _mean_fill(node_embed, NS, N)

    (w_init, b_init, w_int, b_int, w_node, b_node, w_node_t,
     w_edge_src, w_edge_dst, b_edge, w_edge_t, w_imp, b_imp, u_imp) = params

    # one-time layout prep: feature-major hidden => transposed / fused weights
    embT = node_embed.T                                         # (D, N)
    w_initT = w_init.T                                          # (H, D)
    b_initT = b_init.T                                          # (H, 1)
    w1T = jnp.concatenate([w_imp, w_int, w_node], axis=1).T     # (H+2, H)
    w2T = jnp.concatenate([w_edge_src, w_edge_dst], axis=1).T   # (2, H)
    u_impT = u_imp.T                                            # (H, 1)
    b_impT = b_imp.T                                            # (H, 1)
    scal = jnp.concatenate([b_int.reshape(-1), b_node.reshape(-1),
                            w_node_t.reshape(-1), b_edge.reshape(-1),
                            w_edge_t.reshape(-1)]).astype(jnp.float32)  # (5,)

    smem = pl.BlockSpec(memory_space=pltpu.MemorySpace.SMEM)
    vmem = pl.BlockSpec(memory_space=pltpu.MemorySpace.VMEM)

    out = pl.pallas_call(
        _sim_kernel,
        out_shape=jax.ShapeDtypeStruct((1, 128), jnp.float32),
        in_specs=[smem, smem, smem, smem,              # src, dst, timestamps, scalars
                  vmem, vmem, vmem, vmem, vmem, vmem, vmem],
        out_specs=vmem,
    )(src_ids, dst_ids, timestamps, scal,
      embT, w_initT, b_initT, w1T, u_impT, b_impT, w2T)

    return out[0, 0], out[0, 1]


def _init_params(key):
    ks = jax.random.split(key, 10)
    s = 0.1
    w_init = s * jax.random.normal(ks[0], (D, H), jnp.float32)
    b_init = jnp.zeros((1, H), jnp.float32)
    w_int = s * jax.random.normal(ks[1], (H, 1), jnp.float32)
    b_int = jnp.full((1, 1), 0.5, jnp.float32)
    w_node = s * jax.random.normal(ks[2], (H, 1), jnp.float32)
    b_node = jnp.zeros((1, 1), jnp.float32)
    w_node_t = s * jax.random.normal(ks[3], (1, 1), jnp.float32)
    w_edge_src = s * jax.random.normal(ks[4], (H, 1), jnp.float32)
    w_edge_dst = s * jax.random.normal(ks[5], (H, 1), jnp.float32)
    b_edge = jnp.zeros((1, 1), jnp.float32)
    w_edge_t = s * jax.random.normal(ks[6], (1, 1), jnp.float32)
    w_imp = s * jax.random.normal(ks[7], (H, H), jnp.float32)
    b_imp = jnp.zeros((1, H), jnp.float32)
    u_imp = s * jax.random.normal(ks[8], (1, H), jnp.float32)
    return (w_init, b_init, w_int, b_int, w_node, b_node, w_node_t,
            w_edge_src, w_edge_dst, b_edge, w_edge_t, w_imp, b_imp, u_imp)


if __name__ == "__main__":
    key = jax.random.PRNGKey(0)
    k_embed, k_param, k_src, k_dst, k_ts = jax.random.split(key, 5)

    node_embed = jax.random.normal(k_embed, (N, D), jnp.float32)
    # simulate one "new" node per partition (all-zero embedding)
    node_embed = node_embed.at[0].set(0.0).at[NS].set(0.0)

    params = _init_params(k_param)

    src_ids = jax.random.randint(k_src, (E,), 0, NS, dtype=jnp.int32)
    dst_ids = jax.random.randint(k_dst, (E,), NS, N, dtype=jnp.int32)
    timestamps = jnp.cumsum(
        jax.random.uniform(k_ts, (E,), jnp.float32, 0.1, 1.0))

    time_loss, type_loss = simulation_layer_forward(
        node_embed, src_ids, dst_ids, timestamps, params)
    jax.block_until_ready((time_loss, type_loss))
    print("KERNEL_OK")
</pallas_src>

<mosaic_0001>
module attributes {stable_mosaic.version = 11 : i64} {
  func.func @_sim_kernel(%arg0: memref<8xi32, #tpu.memory_space<smem>>, %arg1: memref<8xi32, #tpu.memory_space<smem>>, %arg2: memref<8xf32, #tpu.memory_space<smem>>, %arg3: memref<5xf32, #tpu.memory_space<smem>>, %arg4: memref<16x16xf32, #tpu.memory_space<vmem>>, %arg5: memref<32x16xf32, #tpu.memory_space<vmem>>, %arg6: memref<32x1xf32, #tpu.memory_space<vmem>>, %arg7: memref<34x32xf32, #tpu.memory_space<vmem>>, %arg8: memref<32x1xf32, #tpu.memory_space<vmem>>, %arg9: memref<32x1xf32, #tpu.memory_space<vmem>>, %arg10: memref<2x32xf32, #tpu.memory_space<vmem>>, %arg11: memref<1x128xf32, #tpu.memory_space<vmem>>) attributes {dimension_semantics = [], scalar_prefetch = 0 : i64, scratch_operands = 0 : i64, tpu.core_type = #tpu.core_type<tc>} {
    %c0 = arith.constant 0 : index
    %0 = memref.load %arg3[%c0] : memref<5xf32, #tpu.memory_space<smem>>
    %c1 = arith.constant 1 : index
    %1 = memref.load %arg3[%c1] : memref<5xf32, #tpu.memory_space<smem>>
    %c2 = arith.constant 2 : index
    %2 = memref.load %arg3[%c2] : memref<5xf32, #tpu.memory_space<smem>>
    %c3 = arith.constant 3 : index
    %3 = memref.load %arg3[%c3] : memref<5xf32, #tpu.memory_space<smem>>
    %c4 = arith.constant 4 : index
    %4 = memref.load %arg3[%c4] : memref<5xf32, #tpu.memory_space<smem>>
    %c0_0 = arith.constant 0 : index
    %c0_1 = arith.constant 0 : index
    %5 = vector.load %arg5[%c0_0, %c0_1] : memref<32x16xf32, #tpu.memory_space<vmem>>, vector<32x16xf32>
    %c0_2 = arith.constant 0 : index
    %c0_3 = arith.constant 0 : index
    %6 = vector.load %arg4[%c0_2, %c0_3] : memref<16x16xf32, #tpu.memory_space<vmem>>, vector<16x16xf32>
    %cst = arith.constant dense<0.000000e+00> : vector<32x16xf32>
    %7 = tpu.matmul %5, %6, %cst {dimension_numbers = #tpu.dot_dimension_numbers<[1], [0], [0], [1], [0, 0, 1, 1], [], []>} : vector<32x16xf32>, vector<16x16xf32>, vector<32x16xf32> -> vector<32x16xf32>
    %c0_4 = arith.constant 0 : index
    %c0_5 = arith.constant 0 : index
    %8 = vector.load %arg6[%c0_4, %c0_5] : memref<32x1xf32, #tpu.memory_space<vmem>>, vector<32x1xf32>
    %9 = vector.broadcast %8 : vector<32x1xf32> to vector<32x16xf32>
    %10 = arith.addf %7, %9 : vector<32x16xf32>
    %11 = math.tanh %10 : vector<32x16xf32>
    %c0_6 = arith.constant 0 : index
    %c0_7 = arith.constant 0 : index
    %12 = vector.load %arg7[%c0_6, %c0_7] : memref<34x32xf32, #tpu.memory_space<vmem>>, vector<34x32xf32>
    %c0_8 = arith.constant 0 : index
    %c0_9 = arith.constant 0 : index
    %13 = vector.load %arg10[%c0_8, %c0_9] : memref<2x32xf32, #tpu.memory_space<vmem>>, vector<2x32xf32>
    %c0_10 = arith.constant 0 : index
    %c0_11 = arith.constant 0 : index
    %14 = vector.load %arg8[%c0_10, %c0_11] : memref<32x1xf32, #tpu.memory_space<vmem>>, vector<32x1xf32>
    %c0_12 = arith.constant 0 : index
    %c0_13 = arith.constant 0 : index
    %15 = vector.load %arg9[%c0_12, %c0_13] : memref<32x1xf32, #tpu.memory_space<vmem>>, vector<32x1xf32>
    %16 = tpu.iota {dimensions = array<i32: 1>} : vector<1x8xi32>
    %17 = tpu.iota {dimensions = array<i32: 1>} : vector<1x16xi32>
    %c8_i32 = arith.constant 8 : i32
    %18 = vector.broadcast %c8_i32 : i32 to vector<1x16xi32>
    %19 = arith.cmpi sge, %17, %18 : vector<1x16xi32>
    %c0_14 = arith.constant 0 : index
    %20 = memref.load %arg0[%c0_14] : memref<8xi32, #tpu.memory_space<smem>>
    %c0_15 = arith.constant 0 : index
    %21 = memref.load %arg1[%c0_15] : memref<8xi32, #tpu.memory_space<smem>>
    %cst_16 = arith.constant dense<0.000000e+00> : vector<34x16xf32>
    %22 = tpu.matmul %12, %11, %cst_16 {dimension_numbers = #tpu.dot_dimension_numbers<[1], [0], [0], [1], [0, 0, 1, 1], [], []>} : vector<34x32xf32>, vector<32x16xf32>, vector<34x16xf32> -> vector<34x16xf32>
    %23 = vector.extract_strided_slice %22 {offsets = [32, 0], sizes = [1, 8], strides = [1, 1]} : vector<34x16xf32> to vector<1x8xf32>
    %24 = vector.broadcast %0 : f32 to vector<1x8xf32>
    %25 = arith.addf %23, %24 : vector<1x8xf32>
    %cst_17 = arith.constant 0.000000e+00 : f32
    %26 = vector.broadcast %cst_17 : f32 to vector<1x8xf32>
    %27 = arith.maximumf %25, %26 : vector<1x8xf32>
    %28 = vector.broadcast %cst_17 : f32 to vector<1x8xf32>
    %29 = arith.subf %25, %28 : vector<1x8xf32>
    %30 = arith.cmpf one, %29, %29 : vector<1x8xf32>
    %31 = vector.broadcast %cst_17 : f32 to vector<1x8xf32>
    %32 = arith.addf %25, %31 : vector<1x8xf32>
    %33 = math.absf %29 : vector<1x8xf32>
    %cst_18 = arith.constant 0.000000e+00 : f32
    %34 = vector.broadcast %cst_18 : f32 to vector<1x8xf32>
    %35 = arith.subf %34, %33 : vector<1x8xf32>
    %36 = math.exp %35 : vector<1x8xf32>
    %37 = math.log1p %36 : vector<1x8xf32>
    %38 = arith.addf %27, %37 : vector<1x8xf32>
    %39 = arith.select %30, %32, %38 : vector<1x8xi1>, vector<1x8xf32>
    %cst_19 = arith.constant 1.000000e+00 : f32
    %40 = vector.broadcast %cst_19 : f32 to vector<1x8xf32>
    %41 = arith.divf %40, %39 : vector<1x8xf32>
    %42 = vector.extract_strided_slice %22 {offsets = [33, 0], sizes = [1, 8], strides = [1, 1]} : vector<34x16xf32> to vector<1x8xf32>
    %43 = vector.broadcast %1 : f32 to vector<1x8xf32>
    %44 = arith.addf %42, %43 : vector<1x8xf32>
    %cst_20 = arith.constant 0.000000e+00 : f32
    %45 = arith.mulf %cst_20, %2 : f32
    %46 = vector.broadcast %45 : f32 to vector<1x8xf32>
    %47 = arith.addf %44, %46 : vector<1x8xf32>
    %48 = vector.shape_cast %41 : vector<1x8xf32> to vector<1x1x8xf32>
    %cst_21 = arith.constant dense<0.000000e+00> : vector<1xf32>
    %49 = vector.multi_reduction <add>, %48, %cst_21 [1, 2] : vector<1x1x8xf32> to vector<1xf32>
    %50 = vector.shape_cast %49 : vector<1xf32> to vector<1x1x1xf32>
    %51 = vector.extract %50[0, 0, 0] : f32 from vector<1x1x1xf32>
    %cst_22 = arith.constant 1.1920929E-7 : f32
    %52 = arith.addf %51, %cst_22 : f32
    %53 = math.log %52 : f32
    %cst_23 = arith.constant 0.000000e+00 : f32
    %54 = arith.subf %cst_23, %53 : f32
    %cst_24 = arith.constant 0.000000e+00 : f32
    %55 = arith.mulf %cst_24, %51 : f32
    %56 = arith.addf %54, %55 : f32
    %cst_25 = arith.constant 0.000000e+00 : f32
    %57 = arith.addf %cst_25, %56 : f32
    %cst_26 = arith.constant dense<0xFF800000> : vector<1xf32>
    %58 = vector.multi_reduction <maximumf>, %47, %cst_26 [1] : vector<1x8xf32> to vector<1xf32>
    %59 = vector.shape_cast %58 : vector<1xf32> to vector<1x1xf32>
    %60 = vector.broadcast %59 : vector<1x1xf32> to vector<1x8xf32>
    %61 = arith.subf %47, %60 : vector<1x8xf32>
    %62 = math.exp %61 : vector<1x8xf32>
    %cst_27 = arith.constant dense<0.000000e+00> : vector<1xf32>
    %63 = vector.multi_reduction <add>, %62, %cst_27 [1] : vector<1x8xf32> to vector<1xf32>
    %64 = vector.shape_cast %63 : vector<1xf32> to vector<1x1xf32>
    %65 = vector.broadcast %64 : vector<1x1xf32> to vector<1x8xf32>
    %66 = arith.divf %62, %65 : vector<1x8xf32>
    %67 = vector.broadcast %20 : i32 to vector<1x8xi32>
    %68 = arith.cmpi eq, %16, %67 : vector<1x8xi32>
    %cst_28 = arith.constant 0.000000e+00 : f32
    %69 = vector.broadcast %cst_28 : f32 to vector<1x8xf32>
    %70 = arith.select %68, %66, %69 : vector<1x8xi1>, vector<1x8xf32>
    %71 = vector.shape_cast %70 : vector<1x8xf32> to vector<1x1x8xf32>
    %cst_29 = arith.constant dense<0.000000e+00> : vector<1xf32>
    %72 = vector.multi_reduction <add>, %71, %cst_29 [1, 2] : vector<1x1x8xf32> to vector<1xf32>
    %73 = vector.shape_cast %72 : vector<1xf32> to vector<1x1x1xf32>
    %74 = vector.extract %73[0, 0, 0] : f32 from vector<1x1x1xf32>
    %cst_30 = arith.constant dense<0.000000e+00> : vector<2x16xf32>
    %75 = tpu.matmul %13, %11, %cst_30 {dimension_numbers = #tpu.dot_dimension_numbers<[1], [0], [0], [1], [0, 0, 1, 1], [], []>} : vector<2x32xf32>, vector<32x16xf32>, vector<2x16xf32> -> vector<2x16xf32>
    %76 = vector.broadcast %20 : i32 to vector<1x16xi32>
    %77 = arith.cmpi eq, %17, %76 : vector<1x16xi32>
    %78 = vector.extract_strided_slice %75 {offsets = [0, 0], sizes = [1, 16], strides = [1, 1]} : vector<2x16xf32> to vector<1x16xf32>
    %cst_31 = arith.constant 0.000000e+00 : f32
    %79 = vector.broadcast %cst_31 : f32 to vector<1x16xf32>
    %80 = arith.select %77, %78, %79 : vector<1x16xi1>, vector<1x16xf32>
    %81 = vector.shape_cast %80 : vector<1x16xf32> to vector<1x1x16xf32>
    %cst_32 = arith.constant dense<0.000000e+00> : vector<1xf32>
    %82 = vector.multi_reduction <add>, %81, %cst_32 [1, 2] : vector<1x1x16xf32> to vector<1xf32>
    %83 = vector.shape_cast %82 : vector<1xf32> to vector<1x1x1xf32>
    %84 = vector.extract %83[0, 0, 0] : f32 from vector<1x1x1xf32>
    %85 = vector.extract_strided_slice %75 {offsets = [1, 0], sizes = [1, 16], strides = [1, 1]} : vector<2x16xf32> to vector<1x16xf32>
    %86 = vector.broadcast %84 : f32 to vector<1x16xf32>
    %87 = arith.addf %86, %85 : vector<1x16xf32>
    %88 = vector.broadcast %3 : f32 to vector<1x16xf32>
    %89 = arith.addf %87, %88 : vector<1x16xf32>
    %cst_33 = arith.constant 0.000000e+00 : f32
    %90 = arith.mulf %cst_33, %4 : f32
    %91 = vector.broadcast %90 : f32 to vector<1x16xf32>
    %92 = arith.addf %89, %91 : vector<1x16xf32>
    %cst_34 = arith.constant -1.000000e+30 : f32
    %93 = vector.broadcast %cst_34 : f32 to vector<1x16xf32>
    %94 = arith.select %19, %92, %93 : vector<1x16xi1>, vector<1x16xf32>
    %cst_35 = arith.constant dense<0xFF800000> : vector<1xf32>
    %95 = vector.multi_reduction <maximumf>, %94, %cst_35 [1] : vector<1x16xf32> to vector<1xf32>
    %96 = vector.shape_cast %95 : vector<1xf32> to vector<1x1xf32>
    %97 = vector.broadcast %96 : vector<1x1xf32> to vector<1x16xf32>
    %98 = arith.subf %94, %97 : vector<1x16xf32>
    %99 = math.exp %98 : vector<1x16xf32>
    %cst_36 = arith.constant 0.000000e+00 : f32
    %100 = vector.broadcast %cst_36 : f32 to vector<1x16xf32>
    %101 = arith.select %19, %99, %100 : vector<1x16xi1>, vector<1x16xf32>
    %cst_37 = arith.constant dense<0.000000e+00> : vector<1xf32>
    %102 = vector.multi_reduction <add>, %101, %cst_37 [1] : vector<1x16xf32> to vector<1xf32>
    %103 = vector.shape_cast %102 : vector<1xf32> to vector<1x1xf32>
    %104 = vector.broadcast %103 : vector<1x1xf32> to vector<1x16xf32>
    %105 = arith.divf %101, %104 : vector<1x16xf32>
    %106 = vector.broadcast %21 : i32 to vector<1x16xi32>
    %107 = arith.cmpi eq, %17, %106 : vector<1x16xi32>
    %cst_38 = arith.constant 0.000000e+00 : f32
    %108 = vector.broadcast %cst_38 : f32 to vector<1x16xf32>
    %109 = arith.select %107, %105, %108 : vector<1x16xi1>, vector<1x16xf32>
    %110 = vector.shape_cast %109 : vector<1x16xf32> to vector<1x1x16xf32>
    %cst_39 = arith.constant dense<0.000000e+00> : vector<1xf32>
    %111 = vector.multi_reduction <add>, %110, %cst_39 [1, 2] : vector<1x1x16xf32> to vector<1xf32>
    %112 = vector.shape_cast %111 : vector<1xf32> to vector<1x1x1xf32>
    %113 = vector.extract %112[0, 0, 0] : f32 from vector<1x1x1xf32>
    %cst_40 = arith.constant 1.1920929E-7 : f32
    %114 = arith.addf %74, %cst_40 : f32
    %115 = math.log %114 : f32
    %cst_41 = arith.constant 0.000000e+00 : f32
    %116 = arith.subf %cst_41, %115 : f32
    %cst_42 = arith.constant 1.1920929E-7 : f32
    %117 = arith.addf %113, %cst_42 : f32
    %118 = math.log %117 : f32
    %119 = arith.subf %116, %118 : f32
    %cst_43 = arith.constant 0.000000e+00 : f32
    %120 = arith.addf %cst_43, %119 : f32
    %c1_44 = arith.constant 1 : index
    %121 = memref.load %arg2[%c1_44] : memref<8xf32, #tpu.memory_space<smem>>
    %c0_45 = arith.constant 0 : index
    %122 = memref.load %arg2[%c0_45] : memref<8xf32, #tpu.memory_space<smem>>
    %123 = arith.subf %121, %122 : f32
    %c1_46 = arith.constant 1 : index
    %124 = memref.load %arg0[%c1_46] : memref<8xi32, #tpu.memory_space<smem>>
    %c1_47 = arith.constant 1 : index
    %125 = memref.load %arg1[%c1_47] : memref<8xi32, #tpu.memory_space<smem>>
    %cst_48 = arith.constant dense<0.000000e+00> : vector<34x16xf32>
    %126 = tpu.matmul %12, %11, %cst_48 {dimension_numbers = #tpu.dot_dimension_numbers<[1], [0], [0], [1], [0, 0, 1, 1], [], []>} : vector<34x32xf32>, vector<32x16xf32>, vector<34x16xf32> -> vector<34x16xf32>
    %127 = vector.extract_strided_slice %126 {offsets = [32, 0], sizes = [1, 8], strides = [1, 1]} : vector<34x16xf32> to vector<1x8xf32>
    %128 = vector.broadcast %0 : f32 to vector<1x8xf32>
    %129 = arith.addf %127, %128 : vector<1x8xf32>
    %cst_49 = arith.constant 0.000000e+00 : f32
    %130 = vector.broadcast %cst_49 : f32 to vector<1x8xf32>
    %131 = arith.maximumf %129, %130 : vector<1x8xf32>
    %132 = vector.broadcast %cst_49 : f32 to vector<1x8xf32>
    %133 = arith.subf %129, %132 : vector<1x8xf32>
    %134 = arith.cmpf one, %133, %133 : vector<1x8xf32>
    %135 = vector.broadcast %cst_49 : f32 to vector<1x8xf32>
    %136 = arith.addf %129, %135 : vector<1x8xf32>
    %137 = math.absf %133 : vector<1x8xf32>
    %cst_50 = arith.constant 0.000000e+00 : f32
    %138 = vector.broadcast %cst_50 : f32 to vector<1x8xf32>
    %139 = arith.subf %138, %137 : vector<1x8xf32>
    %140 = math.exp %139 : vector<1x8xf32>
    %141 = math.log1p %140 : vector<1x8xf32>
    %142 = arith.addf %131, %141 : vector<1x8xf32>
    %143 = arith.select %134, %136, %142 : vector<1x8xi1>, vector<1x8xf32>
    %cst_51 = arith.constant 1.000000e+00 : f32
    %144 = vector.broadcast %cst_51 : f32 to vector<1x8xf32>
    %145 = arith.divf %144, %143 : vector<1x8xf32>
    %146 = vector.extract_strided_slice %126 {offsets = [33, 0], sizes = [1, 8], strides = [1, 1]} : vector<34x16xf32> to vector<1x8xf32>
    %147 = vector.broadcast %1 : f32 to vector<1x8xf32>
    %148 = arith.addf %146, %147 : vector<1x8xf32>
    %149 = arith.mulf %123, %2 : f32
    %150 = vector.broadcast %149 : f32 to vector<1x8xf32>
    %151 = arith.addf %148, %150 : vector<1x8xf32>
    %152 = vector.extract_strided_slice %126 {offsets = [0, 0], sizes = [32, 16], strides = [1, 1]} : vector<34x16xf32> to vector<32x16xf32>
    %cst_52 = arith.constant 0.000000e+00 : f32
    %153 = vector.broadcast %cst_52 : f32 to vector<32x1xf32>
    %154 = arith.mulf %153, %14 : vector<32x1xf32>
    %155 = vector.broadcast %154 : vector<32x1xf32> to vector<32x16xf32>
    %156 = arith.addf %152, %155 : vector<32x16xf32>
    %157 = vector.broadcast %15 : vector<32x1xf32> to vector<32x16xf32>
    %158 = arith.addf %156, %157 : vector<32x16xf32>
    %159 = math.tanh %158 : vector<32x16xf32>
    %160 = vector.shape_cast %145 : vector<1x8xf32> to vector<1x1x8xf32>
    %cst_53 = arith.constant dense<0.000000e+00> : vector<1xf32>
    %161 = vector.multi_reduction <add>, %160, %cst_53 [1, 2] : vector<1x1x8xf32> to vector<1xf32>
    %162 = vector.shape_cast %161 : vector<1xf32> to vector<1x1x1xf32>
    %163 = vector.extract %162[0, 0, 0] : f32 from vector<1x1x1xf32>
    %cst_54 = arith.constant 1.1920929E-7 : f32
    %164 = arith.addf %163, %cst_54 : f32
    %165 = math.log %164 : f32
    %cst_55 = arith.constant 0.000000e+00 : f32
    %166 = arith.subf %cst_55, %165 : f32
    %167 = arith.mulf %123, %163 : f32
    %168 = arith.addf %166, %167 : f32
    %169 = arith.addf %57, %168 : f32
    %cst_56 = arith.constant dense<0xFF800000> : vector<1xf32>
    %170 = vector.multi_reduction <maximumf>, %151, %cst_56 [1] : vector<1x8xf32> to vector<1xf32>
    %171 = vector.shape_cast %170 : vector<1xf32> to vector<1x1xf32>
    %172 = vector.broadcast %171 : vector<1x1xf32> to vector<1x8xf32>
    %173 = arith.subf %151, %172 : vector<1x8xf32>
    %174 = math.exp %173 : vector<1x8xf32>
    %cst_57 = arith.constant dense<0.000000e+00> : vector<1xf32>
    %175 = vector.multi_reduction <add>, %174, %cst_57 [1] : vector<1x8xf32> to vector<1xf32>
    %176 = vector.shape_cast %175 : vector<1xf32> to vector<1x1xf32>
    %177 = vector.broadcast %176 : vector<1x1xf32> to vector<1x8xf32>
    %178 = arith.divf %174, %177 : vector<1x8xf32>
    %179 = vector.broadcast %124 : i32 to vector<1x8xi32>
    %180 = arith.cmpi eq, %16, %179 : vector<1x8xi32>
    %cst_58 = arith.constant 0.000000e+00 : f32
    %181 = vector.broadcast %cst_58 : f32 to vector<1x8xf32>
    %182 = arith.select %180, %178, %181 : vector<1x8xi1>, vector<1x8xf32>
    %183 = vector.shape_cast %182 : vector<1x8xf32> to vector<1x1x8xf32>
    %cst_59 = arith.constant dense<0.000000e+00> : vector<1xf32>
    %184 = vector.multi_reduction <add>, %183, %cst_59 [1, 2] : vector<1x1x8xf32> to vector<1xf32>
    %185 = vector.shape_cast %184 : vector<1xf32> to vector<1x1x1xf32>
    %186 = vector.extract %185[0, 0, 0] : f32 from vector<1x1x1xf32>
    %cst_60 = arith.constant dense<0.000000e+00> : vector<2x16xf32>
    %187 = tpu.matmul %13, %159, %cst_60 {dimension_numbers = #tpu.dot_dimension_numbers<[1], [0], [0], [1], [0, 0, 1, 1], [], []>} : vector<2x32xf32>, vector<32x16xf32>, vector<2x16xf32> -> vector<2x16xf32>
    %188 = vector.broadcast %124 : i32 to vector<1x16xi32>
    %189 = arith.cmpi eq, %17, %188 : vector<1x16xi32>
    %190 = vector.extract_strided_slice %187 {offsets = [0, 0], sizes = [1, 16], strides = [1, 1]} : vector<2x16xf32> to vector<1x16xf32>
    %cst_61 = arith.constant 0.000000e+00 : f32
    %191 = vector.broadcast %cst_61 : f32 to vector<1x16xf32>
    %192 = arith.select %189, %190, %191 : vector<1x16xi1>, vector<1x16xf32>
    %193 = vector.shape_cast %192 : vector<1x16xf32> to vector<1x1x16xf32>
    %cst_62 = arith.constant dense<0.000000e+00> : vector<1xf32>
    %194 = vector.multi_reduction <add>, %193, %cst_62 [1, 2] : vector<1x1x16xf32> to vector<1xf32>
    %195 = vector.shape_cast %194 : vector<1xf32> to vector<1x1x1xf32>
    %196 = vector.extract %195[0, 0, 0] : f32 from vector<1x1x1xf32>
    %197 = vector.extract_strided_slice %187 {offsets = [1, 0], sizes = [1, 16], strides = [1, 1]} : vector<2x16xf32> to vector<1x16xf32>
    %198 = vector.broadcast %196 : f32 to vector<1x16xf32>
    %199 = arith.addf %198, %197 : vector<1x16xf32>
    %200 = vector.broadcast %3 : f32 to vector<1x16xf32>
    %201 = arith.addf %199, %200 : vector<1x16xf32>
    %202 = arith.mulf %123, %4 : f32
    %203 = vector.broadcast %202 : f32 to vector<1x16xf32>
    %204 = arith.addf %201, %203 : vector<1x16xf32>
    %cst_63 = arith.constant -1.000000e+30 : f32
    %205 = vector.broadcast %cst_63 : f32 to vector<1x16xf32>
    %206 = arith.select %19, %204, %205 : vector<1x16xi1>, vector<1x16xf32>
    %cst_64 = arith.constant dense<0xFF800000> : vector<1xf32>
    %207 = vector.multi_reduction <maximumf>, %206, %cst_64 [1] : vector<1x16xf32> to vector<1xf32>
    %208 = vector.shape_cast %207 : vector<1xf32> to vector<1x1xf32>
    %209 = vector.broadcast %208 : vector<1x1xf32> to vector<1x16xf32>
    %210 = arith.subf %206, %209 : vector<1x16xf32>
    %211 = math.exp %210 : vector<1x16xf32>
    %cst_65 = arith.constant 0.000000e+00 : f32
    %212 = vector.broadcast %cst_65 : f32 to vector<1x16xf32>
    %213 = arith.select %19, %211, %212 : vector<1x16xi1>, vector<1x16xf32>
    %cst_66 = arith.constant dense<0.000000e+00> : vector<1xf32>
    %214 = vector.multi_reduction <add>, %213, %cst_66 [1] : vector<1x16xf32> to vector<1xf32>
    %215 = vector.shape_cast %214 : vector<1xf32> to vector<1x1xf32>
    %216 = vector.broadcast %215 : vector<1x1xf32> to vector<1x16xf32>
    %217 = arith.divf %213, %216 : vector<1x16xf32>
    %218 = vector.broadcast %125 : i32 to vector<1x16xi32>
    %219 = arith.cmpi eq, %17, %218 : vector<1x16xi32>
    %cst_67 = arith.constant 0.000000e+00 : f32
    %220 = vector.broadcast %cst_67 : f32 to vector<1x16xf32>
    %221 = arith.select %219, %217, %220 : vector<1x16xi1>, vector<1x16xf32>
    %222 = vector.shape_cast %221 : vector<1x16xf32> to vector<1x1x16xf32>
    %cst_68 = arith.constant dense<0.000000e+00> : vector<1xf32>
    %223 = vector.multi_reduction <add>, %222, %cst_68 [1, 2] : vector<1x1x16xf32> to vector<1xf32>
    %224 = vector.shape_cast %223 : vector<1xf32> to vector<1x1x1xf32>
    %225 = vector.extract %224[0, 0, 0] : f32 from vector<1x1x1xf32>
    %cst_69 = arith.constant 1.1920929E-7 : f32
    %226 = arith.addf %186, %cst_69 : f32
    %227 = math.log %226 : f32
    %cst_70 = arith.constant 0.000000e+00 : f32
    %228 = arith.subf %cst_70, %227 : f32
    %cst_71 = arith.constant 1.1920929E-7 : f32
    %229 = arith.addf %225, %cst_71 : f32
    %230 = math.log %229 : f32
    %231 = arith.subf %228, %230 : f32
    %232 = arith.addf %120, %231 : f32
    %c2_72 = arith.constant 2 : index
    %233 = memref.load %arg2[%c2_72] : memref<8xf32, #tpu.memory_space<smem>>
    %c1_73 = arith.constant 1 : index
    %234 = memref.load %arg2[%c1_73] : memref<8xf32, #tpu.memory_space<smem>>
    %235 = arith.subf %233, %234 : f32
    %c2_74 = arith.constant 2 : index
    %236 = memref.load %arg0[%c2_74] : memref<8xi32, #tpu.memory_space<smem>>
    %c2_75 = arith.constant 2 : index
    %237 = memref.load %arg1[%c2_75] : memref<8xi32, #tpu.memory_space<smem>>
    %cst_76 = arith.constant dense<0.000000e+00> : vector<34x16xf32>
    %238 = tpu.matmul %12, %159, %cst_76 {dimension_numbers = #tpu.dot_dimension_numbers<[1], [0], [0], [1], [0, 0, 1, 1], [], []>} : vector<34x32xf32>, vector<32x16xf32>, vector<34x16xf32> -> vector<34x16xf32>
    %239 = vector.extract_strided_slice %238 {offsets = [32, 0], sizes = [1, 8], strides = [1, 1]} : vector<34x16xf32> to vector<1x8xf32>
    %240 = vector.broadcast %0 : f32 to vector<1x8xf32>
    %241 = arith.addf %239, %240 : vector<1x8xf32>
    %cst_77 = arith.constant 0.000000e+00 : f32
    %242 = vector.broadcast %cst_77 : f32 to vector<1x8xf32>
    %243 = arith.maximumf %241, %242 : vector<1x8xf32>
    %244 = vector.broadcast %cst_77 : f32 to vector<1x8xf32>
    %245 = arith.subf %241, %244 : vector<1x8xf32>
    %246 = arith.cmpf one, %245, %245 : vector<1x8xf32>
    %247 = vector.broadcast %cst_77 : f32 to vector<1x8xf32>
    %248 = arith.addf %241, %247 : vector<1x8xf32>
    %249 = math.absf %245 : vector<1x8xf32>
    %cst_78 = arith.constant 0.000000e+00 : f32
    %250 = vector.broadcast %cst_78 : f32 to vector<1x8xf32>
    %251 = arith.subf %250, %249 : vector<1x8xf32>
    %252 = math.exp %251 : vector<1x8xf32>
    %253 = math.log1p %252 : vector<1x8xf32>
    %254 = arith.addf %243, %253 : vector<1x8xf32>
    %255 = arith.select %246, %248, %254 : vector<1x8xi1>, vector<1x8xf32>
    %cst_79 = arith.constant 1.000000e+00 : f32
    %256 = vector.broadcast %cst_79 : f32 to vector<1x8xf32>
    %257 = arith.divf %256, %255 : vector<1x8xf32>
    %258 = vector.extract_strided_slice %238 {offsets = [33, 0], sizes = [1, 8], strides = [1, 1]} : vector<34x16xf32> to vector<1x8xf32>
    %259 = vector.broadcast %1 : f32 to vector<1x8xf32>
    %260 = arith.addf %258, %259 : vector<1x8xf32>
    %261 = arith.mulf %235, %2 : f32
    %262 = vector.broadcast %261 : f32 to vector<1x8xf32>
    %263 = arith.addf %260, %262 : vector<1x8xf32>
    %264 = vector.extract_strided_slice %238 {offsets = [0, 0], sizes = [32, 16], strides = [1, 1]} : vector<34x16xf32> to vector<32x16xf32>
    %265 = vector.broadcast %123 : f32 to vector<32x1xf32>
    %266 = arith.mulf %265, %14 : vector<32x1xf32>
    %267 = vector.broadcast %266 : vector<32x1xf32> to vector<32x16xf32>
    %268 = arith.addf %264, %267 : vector<32x16xf32>
    %269 = vector.broadcast %15 : vector<32x1xf32> to vector<32x16xf32>
    %270 = arith.addf %268, %269 : vector<32x16xf32>
    %271 = math.tanh %270 : vector<32x16xf32>
    %272 = vector.shape_cast %257 : vector<1x8xf32> to vector<1x1x8xf32>
    %cst_80 = arith.constant dense<0.000000e+00> : vector<1xf32>
    %273 = vector.multi_reduction <add>, %272, %cst_80 [1, 2] : vector<1x1x8xf32> to vector<1xf32>
    %274 = vector.shape_cast %273 : vector<1xf32> to vector<1x1x1xf32>
    %275 = vector.extract %274[0, 0, 0] : f32 from vector<1x1x1xf32>
    %cst_81 = arith.constant 1.1920929E-7 : f32
    %276 = arith.addf %275, %cst_81 : f32
    %277 = math.log %276 : f32
    %cst_82 = arith.constant 0.000000e+00 : f32
    %278 = arith.subf %cst_82, %277 : f32
    %279 = arith.mulf %235, %275 : f32
    %280 = arith.addf %278, %279 : f32
    %281 = arith.addf %169, %280 : f32
    %cst_83 = arith.constant dense<0xFF800000> : vector<1xf32>
    %282 = vector.multi_reduction <maximumf>, %263, %cst_83 [1] : vector<1x8xf32> to vector<1xf32>
    %283 = vector.shape_cast %282 : vector<1xf32> to vector<1x1xf32>
    %284 = vector.broadcast %283 : vector<1x1xf32> to vector<1x8xf32>
    %285 = arith.subf %263, %284 : vector<1x8xf32>
    %286 = math.exp %285 : vector<1x8xf32>
    %cst_84 = arith.constant dense<0.000000e+00> : vector<1xf32>
    %287 = vector.multi_reduction <add>, %286, %cst_84 [1] : vector<1x8xf32> to vector<1xf32>
    %288 = vector.shape_cast %287 : vector<1xf32> to vector<1x1xf32>
    %289 = vector.broadcast %288 : vector<1x1xf32> to vector<1x8xf32>
    %290 = arith.divf %286, %289 : vector<1x8xf32>
    %291 = vector.broadcast %236 : i32 to vector<1x8xi32>
    %292 = arith.cmpi eq, %16, %291 : vector<1x8xi32>
    %cst_85 = arith.constant 0.000000e+00 : f32
    %293 = vector.broadcast %cst_85 : f32 to vector<1x8xf32>
    %294 = arith.select %292, %290, %293 : vector<1x8xi1>, vector<1x8xf32>
    %295 = vector.shape_cast %294 : vector<1x8xf32> to vector<1x1x8xf32>
    %cst_86 = arith.constant dense<0.000000e+00> : vector<1xf32>
    %296 = vector.multi_reduction <add>, %295, %cst_86 [1, 2] : vector<1x1x8xf32> to vector<1xf32>
    %297 = vector.shape_cast %296 : vector<1xf32> to vector<1x1x1xf32>
    %298 = vector.extract %297[0, 0, 0] : f32 from vector<1x1x1xf32>
    %cst_87 = arith.constant dense<0.000000e+00> : vector<2x16xf32>
    %299 = tpu.matmul %13, %271, %cst_87 {dimension_numbers = #tpu.dot_dimension_numbers<[1], [0], [0], [1], [0, 0, 1, 1], [], []>} : vector<2x32xf32>, vector<32x16xf32>, vector<2x16xf32> -> vector<2x16xf32>
    %300 = vector.broadcast %236 : i32 to vector<1x16xi32>
    %301 = arith.cmpi eq, %17, %300 : vector<1x16xi32>
    %302 = vector.extract_strided_slice %299 {offsets = [0, 0], sizes = [1, 16], strides = [1, 1]} : vector<2x16xf32> to vector<1x16xf32>
    %cst_88 = arith.constant 0.000000e+00 : f32
    %303 = vector.broadcast %cst_88 : f32 to vector<1x16xf32>
    %304 = arith.select %301, %302, %303 : vector<1x16xi1>, vector<1x16xf32>
    %305 = vector.shape_cast %304 : vector<1x16xf32> to vector<1x1x16xf32>
    %cst_89 = arith.constant dense<0.000000e+00> : vector<1xf32>
    %306 = vector.multi_reduction <add>, %305, %cst_89 [1, 2] : vector<1x1x16xf32> to vector<1xf32>
    %307 = vector.shape_cast %306 : vector<1xf32> to vector<1x1x1xf32>
    %308 = vector.extract %307[0, 0, 0] : f32 from vector<1x1x1xf32>
    %309 = vector.extract_strided_slice %299 {offsets = [1, 0], sizes = [1, 16], strides = [1, 1]} : vector<2x16xf32> to vector<1x16xf32>
    %310 = vector.broadcast %308 : f32 to vector<1x16xf32>
    %311 = arith.addf %310, %309 : vector<1x16xf32>
    %312 = vector.broadcast %3 : f32 to vector<1x16xf32>
    %313 = arith.addf %311, %312 : vector<1x16xf32>
    %314 = arith.mulf %235, %4 : f32
    %315 = vector.broadcast %314 : f32 to vector<1x16xf32>
    %316 = arith.addf %313, %315 : vector<1x16xf32>
    %cst_90 = arith.constant -1.000000e+30 : f32
    %317 = vector.broadcast %cst_90 : f32 to vector<1x16xf32>
    %318 = arith.select %19, %316, %317 : vector<1x16xi1>, vector<1x16xf32>
    %cst_91 = arith.constant dense<0xFF800000> : vector<1xf32>
    %319 = vector.multi_reduction <maximumf>, %318, %cst_91 [1] : vector<1x16xf32> to vector<1xf32>
    %320 = vector.shape_cast %319 : vector<1xf32> to vector<1x1xf32>
    %321 = vector.broadcast %320 : vector<1x1xf32> to vector<1x16xf32>
    %322 = arith.subf %318, %321 : vector<1x16xf32>
    %323 = math.exp %322 : vector<1x16xf32>
    %cst_92 = arith.constant 0.000000e+00 : f32
    %324 = vector.broadcast %cst_92 : f32 to vector<1x16xf32>
    %325 = arith.select %19, %323, %324 : vector<1x16xi1>, vector<1x16xf32>
    %cst_93 = arith.constant dense<0.000000e+00> : vector<1xf32>
    %326 = vector.multi_reduction <add>, %325, %cst_93 [1] : vector<1x16xf32> to vector<1xf32>
    %327 = vector.shape_cast %326 : vector<1xf32> to vector<1x1xf32>
    %328 = vector.broadcast %327 : vector<1x1xf32> to vector<1x16xf32>
    %329 = arith.divf %325, %328 : vector<1x16xf32>
    %330 = vector.broadcast %237 : i32 to vector<1x16xi32>
    %331 = arith.cmpi eq, %17, %330 : vector<1x16xi32>
    %cst_94 = arith.constant 0.000000e+00 : f32
    %332 = vector.broadcast %cst_94 : f32 to vector<1x16xf32>
    %333 = arith.select %331, %329, %332 : vector<1x16xi1>, vector<1x16xf32>
    %334 = vector.shape_cast %333 : vector<1x16xf32> to vector<1x1x16xf32>
    %cst_95 = arith.constant dense<0.000000e+00> : vector<1xf32>
    %335 = vector.multi_reduction <add>, %334, %cst_95 [1, 2] : vector<1x1x16xf32> to vector<1xf32>
    %336 = vector.shape_cast %335 : vector<1xf32> to vector<1x1x1xf32>
    %337 = vector.extract %336[0, 0, 0] : f32 from vector<1x1x1xf32>
    %cst_96 = arith.constant 1.1920929E-7 : f32
    %338 = arith.addf %298, %cst_96 : f32
    %339 = math.log %338 : f32
    %cst_97 = arith.constant 0.000000e+00 : f32
    %340 = arith.subf %cst_97, %339 : f32
    %cst_98 = arith.constant 1.1920929E-7 : f32
    %341 = arith.addf %337, %cst_98 : f32
    %342 = math.log %341 : f32
    %343 = arith.subf %340, %342 : f32
    %344 = arith.addf %232, %343 : f32
    %c3_99 = arith.constant 3 : index
    %345 = memref.load %arg2[%c3_99] : memref<8xf32, #tpu.memory_space<smem>>
    %c2_100 = arith.constant 2 : index
    %346 = memref.load %arg2[%c2_100] : memref<8xf32, #tpu.memory_space<smem>>
    %347 = arith.subf %345, %346 : f32
    %c3_101 = arith.constant 3 : index
    %348 = memref.load %arg0[%c3_101] : memref<8xi32, #tpu.memory_space<smem>>
    %c3_102 = arith.constant 3 : index
    %349 = memref.load %arg1[%c3_102] : memref<8xi32, #tpu.memory_space<smem>>
    %cst_103 = arith.constant dense<0.000000e+00> : vector<34x16xf32>
    %350 = tpu.matmul %12, %271, %cst_103 {dimension_numbers = #tpu.dot_dimension_numbers<[1], [0], [0], [1], [0, 0, 1, 1], [], []>} : vector<34x32xf32>, vector<32x16xf32>, vector<34x16xf32> -> vector<34x16xf32>
    %351 = vector.extract_strided_slice %350 {offsets = [32, 0], sizes = [1, 8], strides = [1, 1]} : vector<34x16xf32> to vector<1x8xf32>
    %352 = vector.broadcast %0 : f32 to vector<1x8xf32>
    %353 = arith.addf %351, %352 : vector<1x8xf32>
    %cst_104 = arith.constant 0.000000e+00 : f32
    %354 = vector.broadcast %cst_104 : f32 to vector<1x8xf32>
    %355 = arith.maximumf %353, %354 : vector<1x8xf32>
    %356 = vector.broadcast %cst_104 : f32 to vector<1x8xf32>
    %357 = arith.subf %353, %356 : vector<1x8xf32>
    %358 = arith.cmpf one, %357, %357 : vector<1x8xf32>
    %359 = vector.broadcast %cst_104 : f32 to vector<1x8xf32>
    %360 = arith.addf %353, %359 : vector<1x8xf32>
    %361 = math.absf %357 : vector<1x8xf32>
    %cst_105 = arith.constant 0.000000e+00 : f32
    %362 = vector.broadcast %cst_105 : f32 to vector<1x8xf32>
    %363 = arith.subf %362, %361 : vector<1x8xf32>
    %364 = math.exp %363 : vector<1x8xf32>
    %365 = math.log1p %364 : vector<1x8xf32>
    %366 = arith.addf %355, %365 : vector<1x8xf32>
    %367 = arith.select %358, %360, %366 : vector<1x8xi1>, vector<1x8xf32>
    %cst_106 = arith.constant 1.000000e+00 : f32
    %368 = vector.broadcast %cst_106 : f32 to vector<1x8xf32>
    %369 = arith.divf %368, %367 : vector<1x8xf32>
    %370 = vector.extract_strided_slice %350 {offsets = [33, 0], sizes = [1, 8], strides = [1, 1]} : vector<34x16xf32> to vector<1x8xf32>
    %371 = vector.broadcast %1 : f32 to vector<1x8xf32>
    %372 = arith.addf %370, %371 : vector<1x8xf32>
    %373 = arith.mulf %347, %2 : f32
    %374 = vector.broadcast %373 : f32 to vector<1x8xf32>
    %375 = arith.addf %372, %374 : vector<1x8xf32>
    %376 = vector.extract_strided_slice %350 {offsets = [0, 0], sizes = [32, 16], strides = [1, 1]} : vector<34x16xf32> to vector<32x16xf32>
    %377 = vector.broadcast %235 : f32 to vector<32x1xf32>
    %378 = arith.mulf %377, %14 : vector<32x1xf32>
    %379 = vector.broadcast %378 : vector<32x1xf32> to vector<32x16xf32>
    %380 = arith.addf %376, %379 : vector<32x16xf32>
    %381 = vector.broadcast %15 : vector<32x1xf32> to vector<32x16xf32>
    %382 = arith.addf %380, %381 : vector<32x16xf32>
    %383 = math.tanh %382 : vector<32x16xf32>
    %384 = vector.shape_cast %369 : vector<1x8xf32> to vector<1x1x8xf32>
    %cst_107 = arith.constant dense<0.000000e+00> : vector<1xf32>
    %385 = vector.multi_reduction <add>, %384, %cst_107 [1, 2] : vector<1x1x8xf32> to vector<1xf32>
    %386 = vector.shape_cast %385 : vector<1xf32> to vector<1x1x1xf32>
    %387 = vector.extract %386[0, 0, 0] : f32 from vector<1x1x1xf32>
    %cst_108 = arith.constant 1.1920929E-7 : f32
    %388 = arith.addf %387, %cst_108 : f32
    %389 = math.log %388 : f32
    %cst_109 = arith.constant 0.000000e+00 : f32
    %390 = arith.subf %cst_109, %389 : f32
    %391 = arith.mulf %347, %387 : f32
    %392 = arith.addf %390, %391 : f32
    %393 = arith.addf %281, %392 : f32
    %cst_110 = arith.constant dense<0xFF800000> : vector<1xf32>
    %394 = vector.multi_reduction <maximumf>, %375, %cst_110 [1] : vector<1x8xf32> to vector<1xf32>
    %395 = vector.shape_cast %394 : vector<1xf32> to vector<1x1xf32>
    %396 = vector.broadcast %395 : vector<1x1xf32> to vector<1x8xf32>
    %397 = arith.subf %375, %396 : vector<1x8xf32>
    %398 = math.exp %397 : vector<1x8xf32>
    %cst_111 = arith.constant dense<0.000000e+00> : vector<1xf32>
    %399 = vector.multi_reduction <add>, %398, %cst_111 [1] : vector<1x8xf32> to vector<1xf32>
    %400 = vector.shape_cast %399 : vector<1xf32> to vector<1x1xf32>
    %401 = vector.broadcast %400 : vector<1x1xf32> to vector<1x8xf32>
    %402 = arith.divf %398, %401 : vector<1x8xf32>
    %403 = vector.broadcast %348 : i32 to vector<1x8xi32>
    %404 = arith.cmpi eq, %16, %403 : vector<1x8xi32>
    %cst_112 = arith.constant 0.000000e+00 : f32
    %405 = vector.broadcast %cst_112 : f32 to vector<1x8xf32>
    %406 = arith.select %404, %402, %405 : vector<1x8xi1>, vector<1x8xf32>
    %407 = vector.shape_cast %406 : vector<1x8xf32> to vector<1x1x8xf32>
    %cst_113 = arith.constant dense<0.000000e+00> : vector<1xf32>
    %408 = vector.multi_reduction <add>, %407, %cst_113 [1, 2] : vector<1x1x8xf32> to vector<1xf32>
    %409 = vector.shape_cast %408 : vector<1xf32> to vector<1x1x1xf32>
    %410 = vector.extract %409[0, 0, 0] : f32 from vector<1x1x1xf32>
    %cst_114 = arith.constant dense<0.000000e+00> : vector<2x16xf32>
    %411 = tpu.matmul %13, %383, %cst_114 {dimension_numbers = #tpu.dot_dimension_numbers<[1], [0], [0], [1], [0, 0, 1, 1], [], []>} : vector<2x32xf32>, vector<32x16xf32>, vector<2x16xf32> -> vector<2x16xf32>
    %412 = vector.broadcast %348 : i32 to vector<1x16xi32>
    %413 = arith.cmpi eq, %17, %412 : vector<1x16xi32>
    %414 = vector.extract_strided_slice %411 {offsets = [0, 0], sizes = [1, 16], strides = [1, 1]} : vector<2x16xf32> to vector<1x16xf32>
    %cst_115 = arith.constant 0.000000e+00 : f32
    %415 = vector.broadcast %cst_115 : f32 to vector<1x16xf32>
    %416 = arith.select %413, %414, %415 : vector<1x16xi1>, vector<1x16xf32>
    %417 = vector.shape_cast %416 : vector<1x16xf32> to vector<1x1x16xf32>
    %cst_116 = arith.constant dense<0.000000e+00> : vector<1xf32>
    %418 = vector.multi_reduction <add>, %417, %cst_116 [1, 2] : vector<1x1x16xf32> to vector<1xf32>
    %419 = vector.shape_cast %418 : vector<1xf32> to vector<1x1x1xf32>
    %420 = vector.extract %419[0, 0, 0] : f32 from vector<1x1x1xf32>
    %421 = vector.extract_strided_slice %411 {offsets = [1, 0], sizes = [1, 16], strides = [1, 1]} : vector<2x16xf32> to vector<1x16xf32>
    %422 = vector.broadcast %420 : f32 to vector<1x16xf32>
    %423 = arith.addf %422, %421 : vector<1x16xf32>
    %424 = vector.broadcast %3 : f32 to vector<1x16xf32>
    %425 = arith.addf %423, %424 : vector<1x16xf32>
    %426 = arith.mulf %347, %4 : f32
    %427 = vector.broadcast %426 : f32 to vector<1x16xf32>
    %428 = arith.addf %425, %427 : vector<1x16xf32>
    %cst_117 = arith.constant -1.000000e+30 : f32
    %429 = vector.broadcast %cst_117 : f32 to vector<1x16xf32>
    %430 = arith.select %19, %428, %429 : vector<1x16xi1>, vector<1x16xf32>
    %cst_118 = arith.constant dense<0xFF800000> : vector<1xf32>
    %431 = vector.multi_reduction <maximumf>, %430, %cst_118 [1] : vector<1x16xf32> to vector<1xf32>
    %432 = vector.shape_cast %431 : vector<1xf32> to vector<1x1xf32>
    %433 = vector.broadcast %432 : vector<1x1xf32> to vector<1x16xf32>
    %434 = arith.subf %430, %433 : vector<1x16xf32>
    %435 = math.exp %434 : vector<1x16xf32>
    %cst_119 = arith.constant 0.000000e+00 : f32
    %436 = vector.broadcast %cst_119 : f32 to vector<1x16xf32>
    %437 = arith.select %19, %435, %436 : vector<1x16xi1>, vector<1x16xf32>
    %cst_120 = arith.constant dense<0.000000e+00> : vector<1xf32>
    %438 = vector.multi_reduction <add>, %437, %cst_120 [1] : vector<1x16xf32> to vector<1xf32>
    %439 = vector.shape_cast %438 : vector<1xf32> to vector<1x1xf32>
    %440 = vector.broadcast %439 : vector<1x1xf32> to vector<1x16xf32>
    %441 = arith.divf %437, %440 : vector<1x16xf32>
    %442 = vector.broadcast %349 : i32 to vector<1x16xi32>
    %443 = arith.cmpi eq, %17, %442 : vector<1x16xi32>
    %cst_121 = arith.constant 0.000000e+00 : f32
    %444 = vector.broadcast %cst_121 : f32 to vector<1x16xf32>
    %445 = arith.select %443, %441, %444 : vector<1x16xi1>, vector<1x16xf32>
    %446 = vector.shape_cast %445 : vector<1x16xf32> to vector<1x1x16xf32>
    %cst_122 = arith.constant dense<0.000000e+00> : vector<1xf32>
    %447 = vector.multi_reduction <add>, %446, %cst_122 [1, 2] : vector<1x1x16xf32> to vector<1xf32>
    %448 = vector.shape_cast %447 : vector<1xf32> to vector<1x1x1xf32>
    %449 = vector.extract %448[0, 0, 0] : f32 from vector<1x1x1xf32>
    %cst_123 = arith.constant 1.1920929E-7 : f32
    %450 = arith.addf %410, %cst_123 : f32
    %451 = math.log %450 : f32
    %cst_124 = arith.constant 0.000000e+00 : f32
    %452 = arith.subf %cst_124, %451 : f32
    %cst_125 = arith.constant 1.1920929E-7 : f32
    %453 = arith.addf %449, %cst_125 : f32
    %454 = math.log %453 : f32
    %455 = arith.subf %452, %454 : f32
    %456 = arith.addf %344, %455 : f32
    %c4_126 = arith.constant 4 : index
    %457 = memref.load %arg2[%c4_126] : memref<8xf32, #tpu.memory_space<smem>>
    %c3_127 = arith.constant 3 : index
    %458 = memref.load %arg2[%c3_127] : memref<8xf32, #tpu.memory_space<smem>>
    %459 = arith.subf %457, %458 : f32
    %c4_128 = arith.constant 4 : index
    %460 = memref.load %arg0[%c4_128] : memref<8xi32, #tpu.memory_space<smem>>
    %c4_129 = arith.constant 4 : index
    %461 = memref.load %arg1[%c4_129] : memref<8xi32, #tpu.memory_space<smem>>
    %cst_130 = arith.constant dense<0.000000e+00> : vector<34x16xf32>
    %462 = tpu.matmul %12, %383, %cst_130 {dimension_numbers = #tpu.dot_dimension_numbers<[1], [0], [0], [1], [0, 0, 1, 1], [], []>} : vector<34x32xf32>, vector<32x16xf32>, vector<34x16xf32> -> vector<34x16xf32>
    %463 = vector.extract_strided_slice %462 {offsets = [32, 0], sizes = [1, 8], strides = [1, 1]} : vector<34x16xf32> to vector<1x8xf32>
    %464 = vector.broadcast %0 : f32 to vector<1x8xf32>
    %465 = arith.addf %463, %464 : vector<1x8xf32>
    %cst_131 = arith.constant 0.000000e+00 : f32
    %466 = vector.broadcast %cst_131 : f32 to vector<1x8xf32>
    %467 = arith.maximumf %465, %466 : vector<1x8xf32>
    %468 = vector.broadcast %cst_131 : f32 to vector<1x8xf32>
    %469 = arith.subf %465, %468 : vector<1x8xf32>
    %470 = arith.cmpf one, %469, %469 : vector<1x8xf32>
    %471 = vector.broadcast %cst_131 : f32 to vector<1x8xf32>
    %472 = arith.addf %465, %471 : vector<1x8xf32>
    %473 = math.absf %469 : vector<1x8xf32>
    %cst_132 = arith.constant 0.000000e+00 : f32
    %474 = vector.broadcast %cst_132 : f32 to vector<1x8xf32>
    %475 = arith.subf %474, %473 : vector<1x8xf32>
    %476 = math.exp %475 : vector<1x8xf32>
    %477 = math.log1p %476 : vector<1x8xf32>
    %478 = arith.addf %467, %477 : vector<1x8xf32>
    %479 = arith.select %470, %472, %478 : vector<1x8xi1>, vector<1x8xf32>
    %cst_133 = arith.constant 1.000000e+00 : f32
    %480 = vector.broadcast %cst_133 : f32 to vector<1x8xf32>
    %481 = arith.divf %480, %479 : vector<1x8xf32>
    %482 = vector.extract_strided_slice %462 {offsets = [33, 0], sizes = [1, 8], strides = [1, 1]} : vector<34x16xf32> to vector<1x8xf32>
    %483 = vector.broadcast %1 : f32 to vector<1x8xf32>
    %484 = arith.addf %482, %483 : vector<1x8xf32>
    %485 = arith.mulf %459, %2 : f32
    %486 = vector.broadcast %485 : f32 to vector<1x8xf32>
    %487 = arith.addf %484, %486 : vector<1x8xf32>
    %488 = vector.extract_strided_slice %462 {offsets = [0, 0], sizes = [32, 16], strides = [1, 1]} : vector<34x16xf32> to vector<32x16xf32>
    %489 = vector.broadcast %347 : f32 to vector<32x1xf32>
    %490 = arith.mulf %489, %14 : vector<32x1xf32>
    %491 = vector.broadcast %490 : vector<32x1xf32> to vector<32x16xf32>
    %492 = arith.addf %488, %491 : vector<32x16xf32>
    %493 = vector.broadcast %15 : vector<32x1xf32> to vector<32x16xf32>
    %494 = arith.addf %492, %493 : vector<32x16xf32>
    %495 = math.tanh %494 : vector<32x16xf32>
    %496 = vector.shape_cast %481 : vector<1x8xf32> to vector<1x1x8xf32>
    %cst_134 = arith.constant dense<0.000000e+00> : vector<1xf32>
    %497 = vector.multi_reduction <add>, %496, %cst_134 [1, 2] : vector<1x1x8xf32> to vector<1xf32>
    %498 = vector.shape_cast %497 : vector<1xf32> to vector<1x1x1xf32>
    %499 = vector.extract %498[0, 0, 0] : f32 from vector<1x1x1xf32>
    %cst_135 = arith.constant 1.1920929E-7 : f32
    %500 = arith.addf %499, %cst_135 : f32
    %501 = math.log %500 : f32
    %cst_136 = arith.constant 0.000000e+00 : f32
    %502 = arith.subf %cst_136, %501 : f32
    %503 = arith.mulf %459, %499 : f32
    %504 = arith.addf %502, %503 : f32
    %505 = arith.addf %393, %504 : f32
    %cst_137 = arith.constant dense<0xFF800000> : vector<1xf32>
    %506 = vector.multi_reduction <maximumf>, %487, %cst_137 [1] : vector<1x8xf32> to vector<1xf32>
    %507 = vector.shape_cast %506 : vector<1xf32> to vector<1x1xf32>
    %508 = vector.broadcast %507 : vector<1x1xf32> to vector<1x8xf32>
    %509 = arith.subf %487, %508 : vector<1x8xf32>
    %510 = math.exp %509 : vector<1x8xf32>
    %cst_138 = arith.constant dense<0.000000e+00> : vector<1xf32>
    %511 = vector.multi_reduction <add>, %510, %cst_138 [1] : vector<1x8xf32> to vector<1xf32>
    %512 = vector.shape_cast %511 : vector<1xf32> to vector<1x1xf32>
    %513 = vector.broadcast %512 : vector<1x1xf32> to vector<1x8xf32>
    %514 = arith.divf %510, %513 : vector<1x8xf32>
    %515 = vector.broadcast %460 : i32 to vector<1x8xi32>
    %516 = arith.cmpi eq, %16, %515 : vector<1x8xi32>
    %cst_139 = arith.constant 0.000000e+00 : f32
    %517 = vector.broadcast %cst_139 : f32 to vector<1x8xf32>
    %518 = arith.select %516, %514, %517 : vector<1x8xi1>, vector<1x8xf32>
    %519 = vector.shape_cast %518 : vector<1x8xf32> to vector<1x1x8xf32>
    %cst_140 = arith.constant dense<0.000000e+00> : vector<1xf32>
    %520 = vector.multi_reduction <add>, %519, %cst_140 [1, 2] : vector<1x1x8xf32> to vector<1xf32>
    %521 = vector.shape_cast %520 : vector<1xf32> to vector<1x1x1xf32>
    %522 = vector.extract %521[0, 0, 0] : f32 from vector<1x1x1xf32>
    %cst_141 = arith.constant dense<0.000000e+00> : vector<2x16xf32>
    %523 = tpu.matmul %13, %495, %cst_141 {dimension_numbers = #tpu.dot_dimension_numbers<[1], [0], [0], [1], [0, 0, 1, 1], [], []>} : vector<2x32xf32>, vector<32x16xf32>, vector<2x16xf32> -> vector<2x16xf32>
    %524 = vector.broadcast %460 : i32 to vector<1x16xi32>
    %525 = arith.cmpi eq, %17, %524 : vector<1x16xi32>
    %526 = vector.extract_strided_slice %523 {offsets = [0, 0], sizes = [1, 16], strides = [1, 1]} : vector<2x16xf32> to vector<1x16xf32>
    %cst_142 = arith.constant 0.000000e+00 : f32
    %527 = vector.broadcast %cst_142 : f32 to vector<1x16xf32>
    %528 = arith.select %525, %526, %527 : vector<1x16xi1>, vector<1x16xf32>
    %529 = vector.shape_cast %528 : vector<1x16xf32> to vector<1x1x16xf32>
    %cst_143 = arith.constant dense<0.000000e+00> : vector<1xf32>
    %530 = vector.multi_reduction <add>, %529, %cst_143 [1, 2] : vector<1x1x16xf32> to vector<1xf32>
    %531 = vector.shape_cast %530 : vector<1xf32> to vector<1x1x1xf32>
    %532 = vector.extract %531[0, 0, 0] : f32 from vector<1x1x1xf32>
    %533 = vector.extract_strided_slice %523 {offsets = [1, 0], sizes = [1, 16], strides = [1, 1]} : vector<2x16xf32> to vector<1x16xf32>
    %534 = vector.broadcast %532 : f32 to vector<1x16xf32>
    %535 = arith.addf %534, %533 : vector<1x16xf32>
    %536 = vector.broadcast %3 : f32 to vector<1x16xf32>
    %537 = arith.addf %535, %536 : vector<1x16xf32>
    %538 = arith.mulf %459, %4 : f32
    %539 = vector.broadcast %538 : f32 to vector<1x16xf32>
    %540 = arith.addf %537, %539 : vector<1x16xf32>
    %cst_144 = arith.constant -1.000000e+30 : f32
    %541 = vector.broadcast %cst_144 : f32 to vector<1x16xf32>
    %542 = arith.select %19, %540, %541 : vector<1x16xi1>, vector<1x16xf32>
    %cst_145 = arith.constant dense<0xFF800000> : vector<1xf32>
    %543 = vector.multi_reduction <maximumf>, %542, %cst_145 [1] : vector<1x16xf32> to vector<1xf32>
    %544 = vector.shape_cast %543 : vector<1xf32> to vector<1x1xf32>
    %545 = vector.broadcast %544 : vector<1x1xf32> to vector<1x16xf32>
    %546 = arith.subf %542, %545 : vector<1x16xf32>
    %547 = math.exp %546 : vector<1x16xf32>
    %cst_146 = arith.constant 0.000000e+00 : f32
    %548 = vector.broadcast %cst_146 : f32 to vector<1x16xf32>
    %549 = arith.select %19, %547, %548 : vector<1x16xi1>, vector<1x16xf32>
    %cst_147 = arith.constant dense<0.000000e+00> : vector<1xf32>
    %550 = vector.multi_reduction <add>, %549, %cst_147 [1] : vector<1x16xf32> to vector<1xf32>
    %551 = vector.shape_cast %550 : vector<1xf32> to vector<1x1xf32>
    %552 = vector.broadcast %551 : vector<1x1xf32> to vector<1x16xf32>
    %553 = arith.divf %549, %552 : vector<1x16xf32>
    %554 = vector.broadcast %461 : i32 to vector<1x16xi32>
    %555 = arith.cmpi eq, %17, %554 : vector<1x16xi32>
    %cst_148 = arith.constant 0.000000e+00 : f32
    %556 = vector.broadcast %cst_148 : f32 to vector<1x16xf32>
    %557 = arith.select %555, %553, %556 : vector<1x16xi1>, vector<1x16xf32>
    %558 = vector.shape_cast %557 : vector<1x16xf32> to vector<1x1x16xf32>
    %cst_149 = arith.constant dense<0.000000e+00> : vector<1xf32>
    %559 = vector.multi_reduction <add>, %558, %cst_149 [1, 2] : vector<1x1x16xf32> to vector<1xf32>
    %560 = vector.shape_cast %559 : vector<1xf32> to vector<1x1x1xf32>
    %561 = vector.extract %560[0, 0, 0] : f32 from vector<1x1x1xf32>
    %cst_150 = arith.constant 1.1920929E-7 : f32
    %562 = arith.addf %522, %cst_150 : f32
    %563 = math.log %562 : f32
    %cst_151 = arith.constant 0.000000e+00 : f32
    %564 = arith.subf %cst_151, %563 : f32
    %cst_152 = arith.constant 1.1920929E-7 : f32
    %565 = arith.addf %561, %cst_152 : f32
    %566 = math.log %565 : f32
    %567 = arith.subf %564, %566 : f32
    %568 = arith.addf %456, %567 : f32
    %c5 = arith.constant 5 : index
    %569 = memref.load %arg2[%c5] : memref<8xf32, #tpu.memory_space<smem>>
    %c4_153 = arith.constant 4 : index
    %570 = memref.load %arg2[%c4_153] : memref<8xf32, #tpu.memory_space<smem>>
    %571 = arith.subf %569, %570 : f32
    %c5_154 = arith.constant 5 : index
    %572 = memref.load %arg0[%c5_154] : memref<8xi32, #tpu.memory_space<smem>>
    %c5_155 = arith.constant 5 : index
    %573 = memref.load %arg1[%c5_155] : memref<8xi32, #tpu.memory_space<smem>>
    %cst_156 = arith.constant dense<0.000000e+00> : vector<34x16xf32>
    %574 = tpu.matmul %12, %495, %cst_156 {dimension_numbers = #tpu.dot_dimension_numbers<[1], [0], [0], [1], [0, 0, 1, 1], [], []>} : vector<34x32xf32>, vector<32x16xf32>, vector<34x16xf32> -> vector<34x16xf32>
    %575 = vector.extract_strided_slice %574 {offsets = [32, 0], sizes = [1, 8], strides = [1, 1]} : vector<34x16xf32> to vector<1x8xf32>
    %576 = vector.broadcast %0 : f32 to vector<1x8xf32>
    %577 = arith.addf %575, %576 : vector<1x8xf32>
    %cst_157 = arith.constant 0.000000e+00 : f32
    %578 = vector.broadcast %cst_157 : f32 to vector<1x8xf32>
    %579 = arith.maximumf %577, %578 : vector<1x8xf32>
    %580 = vector.broadcast %cst_157 : f32 to vector<1x8xf32>
    %581 = arith.subf %577, %580 : vector<1x8xf32>
    %582 = arith.cmpf one, %581, %581 : vector<1x8xf32>
    %583 = vector.broadcast %cst_157 : f32 to vector<1x8xf32>
    %584 = arith.addf %577, %583 : vector<1x8xf32>
    %585 = math.absf %581 : vector<1x8xf32>
    %cst_158 = arith.constant 0.000000e+00 : f32
    %586 = vector.broadcast %cst_158 : f32 to vector<1x8xf32>
    %587 = arith.subf %586, %585 : vector<1x8xf32>
    %588 = math.exp %587 : vector<1x8xf32>
    %589 = math.log1p %588 : vector<1x8xf32>
    %590 = arith.addf %579, %589 : vector<1x8xf32>
    %591 = arith.select %582, %584, %590 : vector<1x8xi1>, vector<1x8xf32>
    %cst_159 = arith.constant 1.000000e+00 : f32
    %592 = vector.broadcast %cst_159 : f32 to vector<1x8xf32>
    %593 = arith.divf %592, %591 : vector<1x8xf32>
    %594 = vector.extract_strided_slice %574 {offsets = [33, 0], sizes = [1, 8], strides = [1, 1]} : vector<34x16xf32> to vector<1x8xf32>
    %595 = vector.broadcast %1 : f32 to vector<1x8xf32>
    %596 = arith.addf %594, %595 : vector<1x8xf32>
    %597 = arith.mulf %571, %2 : f32
    %598 = vector.broadcast %597 : f32 to vector<1x8xf32>
    %599 = arith.addf %596, %598 : vector<1x8xf32>
    %600 = vector.extract_strided_slice %574 {offsets = [0, 0], sizes = [32, 16], strides = [1, 1]} : vector<34x16xf32> to vector<32x16xf32>
    %601 = vector.broadcast %459 : f32 to vector<32x1xf32>
    %602 = arith.mulf %601, %14 : vector<32x1xf32>
    %603 = vector.broadcast %602 : vector<32x1xf32> to vector<32x16xf32>
    %604 = arith.addf %600, %603 : vector<32x16xf32>
    %605 = vector.broadcast %15 : vector<32x1xf32> to vector<32x16xf32>
    %606 = arith.addf %604, %605 : vector<32x16xf32>
    %607 = math.tanh %606 : vector<32x16xf32>
    %608 = vector.shape_cast %593 : vector<1x8xf32> to vector<1x1x8xf32>
    %cst_160 = arith.constant dense<0.000000e+00> : vector<1xf32>
    %609 = vector.multi_reduction <add>, %608, %cst_160 [1, 2] : vector<1x1x8xf32> to vector<1xf32>
    %610 = vector.shape_cast %609 : vector<1xf32> to vector<1x1x1xf32>
    %611 = vector.extract %610[0, 0, 0] : f32 from vector<1x1x1xf32>
    %cst_161 = arith.constant 1.1920929E-7 : f32
    %612 = arith.addf %611, %cst_161 : f32
    %613 = math.log %612 : f32
    %cst_162 = arith.constant 0.000000e+00 : f32
    %614 = arith.subf %cst_162, %613 : f32
    %615 = arith.mulf %571, %611 : f32
    %616 = arith.addf %614, %615 : f32
    %617 = arith.addf %505, %616 : f32
    %cst_163 = arith.constant dense<0xFF800000> : vector<1xf32>
    %618 = vector.multi_reduction <maximumf>, %599, %cst_163 [1] : vector<1x8xf32> to vector<1xf32>
    %619 = vector.shape_cast %618 : vector<1xf32> to vector<1x1xf32>
    %620 = vector.broadcast %619 : vector<1x1xf32> to vector<1x8xf32>
    %621 = arith.subf %599, %620 : vector<1x8xf32>
    %622 = math.exp %621 : vector<1x8xf32>
    %cst_164 = arith.constant dense<0.000000e+00> : vector<1xf32>
    %623 = vector.multi_reduction <add>, %622, %cst_164 [1] : vector<1x8xf32> to vector<1xf32>
    %624 = vector.shape_cast %623 : vector<1xf32> to vector<1x1xf32>
    %625 = vector.broadcast %624 : vector<1x1xf32> to vector<1x8xf32>
    %626 = arith.divf %622, %625 : vector<1x8xf32>
    %627 = vector.broadcast %572 : i32 to vector<1x8xi32>
    %628 = arith.cmpi eq, %16, %627 : vector<1x8xi32>
    %cst_165 = arith.constant 0.000000e+00 : f32
    %629 = vector.broadcast %cst_165 : f32 to vector<1x8xf32>
    %630 = arith.select %628, %626, %629 : vector<1x8xi1>, vector<1x8xf32>
    %631 = vector.shape_cast %630 : vector<1x8xf32> to vector<1x1x8xf32>
    %cst_166 = arith.constant dense<0.000000e+00> : vector<1xf32>
    %632 = vector.multi_reduction <add>, %631, %cst_166 [1, 2] : vector<1x1x8xf32> to vector<1xf32>
    %633 = vector.shape_cast %632 : vector<1xf32> to vector<1x1x1xf32>
    %634 = vector.extract %633[0, 0, 0] : f32 from vector<1x1x1xf32>
    %cst_167 = arith.constant dense<0.000000e+00> : vector<2x16xf32>
    %635 = tpu.matmul %13, %607, %cst_167 {dimension_numbers = #tpu.dot_dimension_numbers<[1], [0], [0], [1], [0, 0, 1, 1], [], []>} : vector<2x32xf32>, vector<32x16xf32>, vector<2x16xf32> -> vector<2x16xf32>
    %636 = vector.broadcast %572 : i32 to vector<1x16xi32>
    %637 = arith.cmpi eq, %17, %636 : vector<1x16xi32>
    %638 = vector.extract_strided_slice %635 {offsets = [0, 0], sizes = [1, 16], strides = [1, 1]} : vector<2x16xf32> to vector<1x16xf32>
    %cst_168 = arith.constant 0.000000e+00 : f32
    %639 = vector.broadcast %cst_168 : f32 to vector<1x16xf32>
    %640 = arith.select %637, %638, %639 : vector<1x16xi1>, vector<1x16xf32>
    %641 = vector.shape_cast %640 : vector<1x16xf32> to vector<1x1x16xf32>
    %cst_169 = arith.constant dense<0.000000e+00> : vector<1xf32>
    %642 = vector.multi_reduction <add>, %641, %cst_169 [1, 2] : vector<1x1x16xf32> to vector<1xf32>
    %643 = vector.shape_cast %642 : vector<1xf32> to vector<1x1x1xf32>
    %644 = vector.extract %643[0, 0, 0] : f32 from vector<1x1x1xf32>
    %645 = vector.extract_strided_slice %635 {offsets = [1, 0], sizes = [1, 16], strides = [1, 1]} : vector<2x16xf32> to vector<1x16xf32>
    %646 = vector.broadcast %644 : f32 to vector<1x16xf32>
    %647 = arith.addf %646, %645 : vector<1x16xf32>
    %648 = vector.broadcast %3 : f32 to vector<1x16xf32>
    %649 = arith.addf %647, %648 : vector<1x16xf32>
    %650 = arith.mulf %571, %4 : f32
    %651 = vector.broadcast %650 : f32 to vector<1x16xf32>
    %652 = arith.addf %649, %651 : vector<1x16xf32>
    %cst_170 = arith.constant -1.000000e+30 : f32
    %653 = vector.broadcast %cst_170 : f32 to vector<1x16xf32>
    %654 = arith.select %19, %652, %653 : vector<1x16xi1>, vector<1x16xf32>
    %cst_171 = arith.constant dense<0xFF800000> : vector<1xf32>
    %655 = vector.multi_reduction <maximumf>, %654, %cst_171 [1] : vector<1x16xf32> to vector<1xf32>
    %656 = vector.shape_cast %655 : vector<1xf32> to vector<1x1xf32>
    %657 = vector.broadcast %656 : vector<1x1xf32> to vector<1x16xf32>
    %658 = arith.subf %654, %657 : vector<1x16xf32>
    %659 = math.exp %658 : vector<1x16xf32>
    %cst_172 = arith.constant 0.000000e+00 : f32
    %660 = vector.broadcast %cst_172 : f32 to vector<1x16xf32>
    %661 = arith.select %19, %659, %660 : vector<1x16xi1>, vector<1x16xf32>
    %cst_173 = arith.constant dense<0.000000e+00> : vector<1xf32>
    %662 = vector.multi_reduction <add>, %661, %cst_173 [1] : vector<1x16xf32> to vector<1xf32>
    %663 = vector.shape_cast %662 : vector<1xf32> to vector<1x1xf32>
    %664 = vector.broadcast %663 : vector<1x1xf32> to vector<1x16xf32>
    %665 = arith.divf %661, %664 : vector<1x16xf32>
    %666 = vector.broadcast %573 : i32 to vector<1x16xi32>
    %667 = arith.cmpi eq, %17, %666 : vector<1x16xi32>
    %cst_174 = arith.constant 0.000000e+00 : f32
    %668 = vector.broadcast %cst_174 : f32 to vector<1x16xf32>
    %669 = arith.select %667, %665, %668 : vector<1x16xi1>, vector<1x16xf32>
    %670 = vector.shape_cast %669 : vector<1x16xf32> to vector<1x1x16xf32>
    %cst_175 = arith.constant dense<0.000000e+00> : vector<1xf32>
    %671 = vector.multi_reduction <add>, %670, %cst_175 [1, 2] : vector<1x1x16xf32> to vector<1xf32>
    %672 = vector.shape_cast %671 : vector<1xf32> to vector<1x1x1xf32>
    %673 = vector.extract %672[0, 0, 0] : f32 from vector<1x1x1xf32>
    %cst_176 = arith.constant 1.1920929E-7 : f32
    %674 = arith.addf %634, %cst_176 : f32
    %675 = math.log %674 : f32
    %cst_177 = arith.constant 0.000000e+00 : f32
    %676 = arith.subf %cst_177, %675 : f32
    %cst_178 = arith.constant 1.1920929E-7 : f32
    %677 = arith.addf %673, %cst_178 : f32
    %678 = math.log %677 : f32
    %679 = arith.subf %676, %678 : f32
    %680 = arith.addf %568, %679 : f32
    %c6 = arith.constant 6 : index
    %681 = memref.load %arg2[%c6] : memref<8xf32, #tpu.memory_space<smem>>
    %c5_179 = arith.constant 5 : index
    %682 = memref.load %arg2[%c5_179] : memref<8xf32, #tpu.memory_space<smem>>
    %683 = arith.subf %681, %682 : f32
    %c6_180 = arith.constant 6 : index
    %684 = memref.load %arg0[%c6_180] : memref<8xi32, #tpu.memory_space<smem>>
    %c6_181 = arith.constant 6 : index
    %685 = memref.load %arg1[%c6_181] : memref<8xi32, #tpu.memory_space<smem>>
    %cst_182 = arith.constant dense<0.000000e+00> : vector<34x16xf32>
    %686 = tpu.matmul %12, %607, %cst_182 {dimension_numbers = #tpu.dot_dimension_numbers<[1], [0], [0], [1], [0, 0, 1, 1], [], []>} : vector<34x32xf32>, vector<32x16xf32>, vector<34x16xf32> -> vector<34x16xf32>
    %687 = vector.extract_strided_slice %686 {offsets = [32, 0], sizes = [1, 8], strides = [1, 1]} : vector<34x16xf32> to vector<1x8xf32>
    %688 = vector.broadcast %0 : f32 to vector<1x8xf32>
    %689 = arith.addf %687, %688 : vector<1x8xf32>
    %cst_183 = arith.constant 0.000000e+00 : f32
    %690 = vector.broadcast %cst_183 : f32 to vector<1x8xf32>
    %691 = arith.maximumf %689, %690 : vector<1x8xf32>
    %692 = vector.broadcast %cst_183 : f32 to vector<1x8xf32>
    %693 = arith.subf %689, %692 : vector<1x8xf32>
    %694 = arith.cmpf one, %693, %693 : vector<1x8xf32>
    %695 = vector.broadcast %cst_183 : f32 to vector<1x8xf32>
    %696 = arith.addf %689, %695 : vector<1x8xf32>
    %697 = math.absf %693 : vector<1x8xf32>
    %cst_184 = arith.constant 0.000000e+00 : f32
    %698 = vector.broadcast %cst_184 : f32 to vector<1x8xf32>
    %699 = arith.subf %698, %697 : vector<1x8xf32>
    %700 = math.exp %699 : vector<1x8xf32>
    %701 = math.log1p %700 : vector<1x8xf32>
    %702 = arith.addf %691, %701 : vector<1x8xf32>
    %703 = arith.select %694, %696, %702 : vector<1x8xi1>, vector<1x8xf32>
    %cst_185 = arith.constant 1.000000e+00 : f32
    %704 = vector.broadcast %cst_185 : f32 to vector<1x8xf32>
    %705 = arith.divf %704, %703 : vector<1x8xf32>
    %706 = vector.extract_strided_slice %686 {offsets = [33, 0], sizes = [1, 8], strides = [1, 1]} : vector<34x16xf32> to vector<1x8xf32>
    %707 = vector.broadcast %1 : f32 to vector<1x8xf32>
    %708 = arith.addf %706, %707 : vector<1x8xf32>
    %709 = arith.mulf %683, %2 : f32
    %710 = vector.broadcast %709 : f32 to vector<1x8xf32>
    %711 = arith.addf %708, %710 : vector<1x8xf32>
    %712 = vector.extract_strided_slice %686 {offsets = [0, 0], sizes = [32, 16], strides = [1, 1]} : vector<34x16xf32> to vector<32x16xf32>
    %713 = vector.broadcast %571 : f32 to vector<32x1xf32>
    %714 = arith.mulf %713, %14 : vector<32x1xf32>
    %715 = vector.broadcast %714 : vector<32x1xf32> to vector<32x16xf32>
    %716 = arith.addf %712, %715 : vector<32x16xf32>
    %717 = vector.broadcast %15 : vector<32x1xf32> to vector<32x16xf32>
    %718 = arith.addf %716, %717 : vector<32x16xf32>
    %719 = math.tanh %718 : vector<32x16xf32>
    %720 = vector.shape_cast %705 : vector<1x8xf32> to vector<1x1x8xf32>
    %cst_186 = arith.constant dense<0.000000e+00> : vector<1xf32>
    %721 = vector.multi_reduction <add>, %720, %cst_186 [1, 2] : vector<1x1x8xf32> to vector<1xf32>
    %722 = vector.shape_cast %721 : vector<1xf32> to vector<1x1x1xf32>
    %723 = vector.extract %722[0, 0, 0] : f32 from vector<1x1x1xf32>
    %cst_187 = arith.constant 1.1920929E-7 : f32
    %724 = arith.addf %723, %cst_187 : f32
    %725 = math.log %724 : f32
    %cst_188 = arith.constant 0.000000e+00 : f32
    %726 = arith.subf %cst_188, %725 : f32
    %727 = arith.mulf %683, %723 : f32
    %728 = arith.addf %726, %727 : f32
    %729 = arith.addf %617, %728 : f32
    %cst_189 = arith.constant dense<0xFF800000> : vector<1xf32>
    %730 = vector.multi_reduction <maximumf>, %711, %cst_189 [1] : vector<1x8xf32> to vector<1xf32>
    %731 = vector.shape_cast %730 : vector<1xf32> to vector<1x1xf32>
    %732 = vector.broadcast %731 : vector<1x1xf32> to vector<1x8xf32>
    %733 = arith.subf %711, %732 : vector<1x8xf32>
    %734 = math.exp %733 : vector<1x8xf32>
    %cst_190 = arith.constant dense<0.000000e+00> : vector<1xf32>
    %735 = vector.multi_reduction <add>, %734, %cst_190 [1] : vector<1x8xf32> to vector<1xf32>
    %736 = vector.shape_cast %735 : vector<1xf32> to vector<1x1xf32>
    %737 = vector.broadcast %736 : vector<1x1xf32> to vector<1x8xf32>
    %738 = arith.divf %734, %737 : vector<1x8xf32>
    %739 = vector.broadcast %684 : i32 to vector<1x8xi32>
    %740 = arith.cmpi eq, %16, %739 : vector<1x8xi32>
    %cst_191 = arith.constant 0.000000e+00 : f32
    %741 = vector.broadcast %cst_191 : f32 to vector<1x8xf32>
    %742 = arith.select %740, %738, %741 : vector<1x8xi1>, vector<1x8xf32>
    %743 = vector.shape_cast %742 : vector<1x8xf32> to vector<1x1x8xf32>
    %cst_192 = arith.constant dense<0.000000e+00> : vector<1xf32>
    %744 = vector.multi_reduction <add>, %743, %cst_192 [1, 2] : vector<1x1x8xf32> to vector<1xf32>
    %745 = vector.shape_cast %744 : vector<1xf32> to vector<1x1x1xf32>
    %746 = vector.extract %745[0, 0, 0] : f32 from vector<1x1x1xf32>
    %cst_193 = arith.constant dense<0.000000e+00> : vector<2x16xf32>
    %747 = tpu.matmul %13, %719, %cst_193 {dimension_numbers = #tpu.dot_dimension_numbers<[1], [0], [0], [1], [0, 0, 1, 1], [], []>} : vector<2x32xf32>, vector<32x16xf32>, vector<2x16xf32> -> vector<2x16xf32>
    %748 = vector.broadcast %684 : i32 to vector<1x16xi32>
    %749 = arith.cmpi eq, %17, %748 : vector<1x16xi32>
    %750 = vector.extract_strided_slice %747 {offsets = [0, 0], sizes = [1, 16], strides = [1, 1]} : vector<2x16xf32> to vector<1x16xf32>
    %cst_194 = arith.constant 0.000000e+00 : f32
    %751 = vector.broadcast %cst_194 : f32 to vector<1x16xf32>
    %752 = arith.select %749, %750, %751 : vector<1x16xi1>, vector<1x16xf32>
    %753 = vector.shape_cast %752 : vector<1x16xf32> to vector<1x1x16xf32>
    %cst_195 = arith.constant dense<0.000000e+00> : vector<1xf32>
    %754 = vector.multi_reduction <add>, %753, %cst_195 [1, 2] : vector<1x1x16xf32> to vector<1xf32>
    %755 = vector.shape_cast %754 : vector<1xf32> to vector<1x1x1xf32>
    %756 = vector.extract %755[0, 0, 0] : f32 from vector<1x1x1xf32>
    %757 = vector.extract_strided_slice %747 {offsets = [1, 0], sizes = [1, 16], strides = [1, 1]} : vector<2x16xf32> to vector<1x16xf32>
    %758 = vector.broadcast %756 : f32 to vector<1x16xf32>
    %759 = arith.addf %758, %757 : vector<1x16xf32>
    %760 = vector.broadcast %3 : f32 to vector<1x16xf32>
    %761 = arith.addf %759, %760 : vector<1x16xf32>
    %762 = arith.mulf %683, %4 : f32
    %763 = vector.broadcast %762 : f32 to vector<1x16xf32>
    %764 = arith.addf %761, %763 : vector<1x16xf32>
    %cst_196 = arith.constant -1.000000e+30 : f32
    %765 = vector.broadcast %cst_196 : f32 to vector<1x16xf32>
    %766 = arith.select %19, %764, %765 : vector<1x16xi1>, vector<1x16xf32>
    %cst_197 = arith.constant dense<0xFF800000> : vector<1xf32>
    %767 = vector.multi_reduction <maximumf>, %766, %cst_197 [1] : vector<1x16xf32> to vector<1xf32>
    %768 = vector.shape_cast %767 : vector<1xf32> to vector<1x1xf32>
    %769 = vector.broadcast %768 : vector<1x1xf32> to vector<1x16xf32>
    %770 = arith.subf %766, %769 : vector<1x16xf32>
    %771 = math.exp %770 : vector<1x16xf32>
    %cst_198 = arith.constant 0.000000e+00 : f32
    %772 = vector.broadcast %cst_198 : f32 to vector<1x16xf32>
    %773 = arith.select %19, %771, %772 : vector<1x16xi1>, vector<1x16xf32>
    %cst_199 = arith.constant dense<0.000000e+00> : vector<1xf32>
    %774 = vector.multi_reduction <add>, %773, %cst_199 [1] : vector<1x16xf32> to vector<1xf32>
    %775 = vector.shape_cast %774 : vector<1xf32> to vector<1x1xf32>
    %776 = vector.broadcast %775 : vector<1x1xf32> to vector<1x16xf32>
    %777 = arith.divf %773, %776 : vector<1x16xf32>
    %778 = vector.broadcast %685 : i32 to vector<1x16xi32>
    %779 = arith.cmpi eq, %17, %778 : vector<1x16xi32>
    %cst_200 = arith.constant 0.000000e+00 : f32
    %780 = vector.broadcast %cst_200 : f32 to vector<1x16xf32>
    %781 = arith.select %779, %777, %780 : vector<1x16xi1>, vector<1x16xf32>
    %782 = vector.shape_cast %781 : vector<1x16xf32> to vector<1x1x16xf32>
    %cst_201 = arith.constant dense<0.000000e+00> : vector<1xf32>
    %783 = vector.multi_reduction <add>, %782, %cst_201 [1, 2] : vector<1x1x16xf32> to vector<1xf32>
    %784 = vector.shape_cast %783 : vector<1xf32> to vector<1x1x1xf32>
    %785 = vector.extract %784[0, 0, 0] : f32 from vector<1x1x1xf32>
    %cst_202 = arith.constant 1.1920929E-7 : f32
    %786 = arith.addf %746, %cst_202 : f32
    %787 = math.log %786 : f32
    %cst_203 = arith.constant 0.000000e+00 : f32
    %788 = arith.subf %cst_203, %787 : f32
    %cst_204 = arith.constant 1.1920929E-7 : f32
    %789 = arith.addf %785, %cst_204 : f32
    %790 = math.log %789 : f32
    %791 = arith.subf %788, %790 : f32
    %792 = arith.addf %680, %791 : f32
    %c7 = arith.constant 7 : index
    %793 = memref.load %arg2[%c7] : memref<8xf32, #tpu.memory_space<smem>>
    %c6_205 = arith.constant 6 : index
    %794 = memref.load %arg2[%c6_205] : memref<8xf32, #tpu.memory_space<smem>>
    %795 = arith.subf %793, %794 : f32
    %c7_206 = arith.constant 7 : index
    %796 = memref.load %arg0[%c7_206] : memref<8xi32, #tpu.memory_space<smem>>
    %c7_207 = arith.constant 7 : index
    %797 = memref.load %arg1[%c7_207] : memref<8xi32, #tpu.memory_space<smem>>
    %cst_208 = arith.constant dense<0.000000e+00> : vector<34x16xf32>
    %798 = tpu.matmul %12, %719, %cst_208 {dimension_numbers = #tpu.dot_dimension_numbers<[1], [0], [0], [1], [0, 0, 1, 1], [], []>} : vector<34x32xf32>, vector<32x16xf32>, vector<34x16xf32> -> vector<34x16xf32>
    %799 = vector.extract_strided_slice %798 {offsets = [32, 0], sizes = [1, 8], strides = [1, 1]} : vector<34x16xf32> to vector<1x8xf32>
    %800 = vector.broadcast %0 : f32 to vector<1x8xf32>
    %801 = arith.addf %799, %800 : vector<1x8xf32>
    %cst_209 = arith.constant 0.000000e+00 : f32
    %802 = vector.broadcast %cst_209 : f32 to vector<1x8xf32>
    %803 = arith.maximumf %801, %802 : vector<1x8xf32>
    %804 = vector.broadcast %cst_209 : f32 to vector<1x8xf32>
    %805 = arith.subf %801, %804 : vector<1x8xf32>
    %806 = arith.cmpf one, %805, %805 : vector<1x8xf32>
    %807 = vector.broadcast %cst_209 : f32 to vector<1x8xf32>
    %808 = arith.addf %801, %807 : vector<1x8xf32>
    %809 = math.absf %805 : vector<1x8xf32>
    %cst_210 = arith.constant 0.000000e+00 : f32
    %810 = vector.broadcast %cst_210 : f32 to vector<1x8xf32>
    %811 = arith.subf %810, %809 : vector<1x8xf32>
    %812 = math.exp %811 : vector<1x8xf32>
    %813 = math.log1p %812 : vector<1x8xf32>
    %814 = arith.addf %803, %813 : vector<1x8xf32>
    %815 = arith.select %806, %808, %814 : vector<1x8xi1>, vector<1x8xf32>
    %cst_211 = arith.constant 1.000000e+00 : f32
    %816 = vector.broadcast %cst_211 : f32 to vector<1x8xf32>
    %817 = arith.divf %816, %815 : vector<1x8xf32>
    %818 = vector.extract_strided_slice %798 {offsets = [33, 0], sizes = [1, 8], strides = [1, 1]} : vector<34x16xf32> to vector<1x8xf32>
    %819 = vector.broadcast %1 : f32 to vector<1x8xf32>
    %820 = arith.addf %818, %819 : vector<1x8xf32>
    %821 = arith.mulf %795, %2 : f32
    %822 = vector.broadcast %821 : f32 to vector<1x8xf32>
    %823 = arith.addf %820, %822 : vector<1x8xf32>
    %824 = vector.extract_strided_slice %798 {offsets = [0, 0], sizes = [32, 16], strides = [1, 1]} : vector<34x16xf32> to vector<32x16xf32>
    %825 = vector.broadcast %683 : f32 to vector<32x1xf32>
    %826 = arith.mulf %825, %14 : vector<32x1xf32>
    %827 = vector.broadcast %826 : vector<32x1xf32> to vector<32x16xf32>
    %828 = arith.addf %824, %827 : vector<32x16xf32>
    %829 = vector.broadcast %15 : vector<32x1xf32> to vector<32x16xf32>
    %830 = arith.addf %828, %829 : vector<32x16xf32>
    %831 = math.tanh %830 : vector<32x16xf32>
    %832 = vector.shape_cast %817 : vector<1x8xf32> to vector<1x1x8xf32>
    %cst_212 = arith.constant dense<0.000000e+00> : vector<1xf32>
    %833 = vector.multi_reduction <add>, %832, %cst_212 [1, 2] : vector<1x1x8xf32> to vector<1xf32>
    %834 = vector.shape_cast %833 : vector<1xf32> to vector<1x1x1xf32>
    %835 = vector.extract %834[0, 0, 0] : f32 from vector<1x1x1xf32>
    %cst_213 = arith.constant 1.1920929E-7 : f32
    %836 = arith.addf %835, %cst_213 : f32
    %837 = math.log %836 : f32
    %cst_214 = arith.constant 0.000000e+00 : f32
    %838 = arith.subf %cst_214, %837 : f32
    %839 = arith.mulf %795, %835 : f32
    %840 = arith.addf %838, %839 : f32
    %841 = arith.addf %729, %840 : f32
    %cst_215 = arith.constant dense<0xFF800000> : vector<1xf32>
    %842 = vector.multi_reduction <maximumf>, %823, %cst_215 [1] : vector<1x8xf32> to vector<1xf32>
    %843 = vector.shape_cast %842 : vector<1xf32> to vector<1x1xf32>
    %844 = vector.broadcast %843 : vector<1x1xf32> to vector<1x8xf32>
    %845 = arith.subf %823, %844 : vector<1x8xf32>
    %846 = math.exp %845 : vector<1x8xf32>
    %cst_216 = arith.constant dense<0.000000e+00> : vector<1xf32>
    %847 = vector.multi_reduction <add>, %846, %cst_216 [1] : vector<1x8xf32> to vector<1xf32>
    %848 = vector.shape_cast %847 : vector<1xf32> to vector<1x1xf32>
    %849 = vector.broadcast %848 : vector<1x1xf32> to vector<1x8xf32>
    %850 = arith.divf %846, %849 : vector<1x8xf32>
    %851 = vector.broadcast %796 : i32 to vector<1x8xi32>
    %852 = arith.cmpi eq, %16, %851 : vector<1x8xi32>
    %cst_217 = arith.constant 0.000000e+00 : f32
    %853 = vector.broadcast %cst_217 : f32 to vector<1x8xf32>
    %854 = arith.select %852, %850, %853 : vector<1x8xi1>, vector<1x8xf32>
    %855 = vector.shape_cast %854 : vector<1x8xf32> to vector<1x1x8xf32>
    %cst_218 = arith.constant dense<0.000000e+00> : vector<1xf32>
    %856 = vector.multi_reduction <add>, %855, %cst_218 [1, 2] : vector<1x1x8xf32> to vector<1xf32>
    %857 = vector.shape_cast %856 : vector<1xf32> to vector<1x1x1xf32>
    %858 = vector.extract %857[0, 0, 0] : f32 from vector<1x1x1xf32>
    %cst_219 = arith.constant dense<0.000000e+00> : vector<2x16xf32>
    %859 = tpu.matmul %13, %831, %cst_219 {dimension_numbers = #tpu.dot_dimension_numbers<[1], [0], [0], [1], [0, 0, 1, 1], [], []>} : vector<2x32xf32>, vector<32x16xf32>, vector<2x16xf32> -> vector<2x16xf32>
    %860 = vector.broadcast %796 : i32 to vector<1x16xi32>
    %861 = arith.cmpi eq, %17, %860 : vector<1x16xi32>
    %862 = vector.extract_strided_slice %859 {offsets = [0, 0], sizes = [1, 16], strides = [1, 1]} : vector<2x16xf32> to vector<1x16xf32>
    %cst_220 = arith.constant 0.000000e+00 : f32
    %863 = vector.broadcast %cst_220 : f32 to vector<1x16xf32>
    %864 = arith.select %861, %862, %863 : vector<1x16xi1>, vector<1x16xf32>
    %865 = vector.shape_cast %864 : vector<1x16xf32> to vector<1x1x16xf32>
    %cst_221 = arith.constant dense<0.000000e+00> : vector<1xf32>
    %866 = vector.multi_reduction <add>, %865, %cst_221 [1, 2] : vector<1x1x16xf32> to vector<1xf32>
    %867 = vector.shape_cast %866 : vector<1xf32> to vector<1x1x1xf32>
    %868 = vector.extract %867[0, 0, 0] : f32 from vector<1x1x1xf32>
    %869 = vector.extract_strided_slice %859 {offsets = [1, 0], sizes = [1, 16], strides = [1, 1]} : vector<2x16xf32> to vector<1x16xf32>
    %870 = vector.broadcast %868 : f32 to vector<1x16xf32>
    %871 = arith.addf %870, %869 : vector<1x16xf32>
    %872 = vector.broadcast %3 : f32 to vector<1x16xf32>
    %873 = arith.addf %871, %872 : vector<1x16xf32>
    %874 = arith.mulf %795, %4 : f32
    %875 = vector.broadcast %874 : f32 to vector<1x16xf32>
    %876 = arith.addf %873, %875 : vector<1x16xf32>
    %cst_222 = arith.constant -1.000000e+30 : f32
    %877 = vector.broadcast %cst_222 : f32 to vector<1x16xf32>
    %878 = arith.select %19, %876, %877 : vector<1x16xi1>, vector<1x16xf32>
    %cst_223 = arith.constant dense<0xFF800000> : vector<1xf32>
    %879 = vector.multi_reduction <maximumf>, %878, %cst_223 [1] : vector<1x16xf32> to vector<1xf32>
    %880 = vector.shape_cast %879 : vector<1xf32> to vector<1x1xf32>
    %881 = vector.broadcast %880 : vector<1x1xf32> to vector<1x16xf32>
    %882 = arith.subf %878, %881 : vector<1x16xf32>
    %883 = math.exp %882 : vector<1x16xf32>
    %cst_224 = arith.constant 0.000000e+00 : f32
    %884 = vector.broadcast %cst_224 : f32 to vector<1x16xf32>
    %885 = arith.select %19, %883, %884 : vector<1x16xi1>, vector<1x16xf32>
    %cst_225 = arith.constant dense<0.000000e+00> : vector<1xf32>
    %886 = vector.multi_reduction <add>, %885, %cst_225 [1] : vector<1x16xf32> to vector<1xf32>
    %887 = vector.shape_cast %886 : vector<1xf32> to vector<1x1xf32>
    %888 = vector.broadcast %887 : vector<1x1xf32> to vector<1x16xf32>
    %889 = arith.divf %885, %888 : vector<1x16xf32>
    %890 = vector.broadcast %797 : i32 to vector<1x16xi32>
    %891 = arith.cmpi eq, %17, %890 : vector<1x16xi32>
    %cst_226 = arith.constant 0.000000e+00 : f32
    %892 = vector.broadcast %cst_226 : f32 to vector<1x16xf32>
    %893 = arith.select %891, %889, %892 : vector<1x16xi1>, vector<1x16xf32>
    %894 = vector.shape_cast %893 : vector<1x16xf32> to vector<1x1x16xf32>
    %cst_227 = arith.constant dense<0.000000e+00> : vector<1xf32>
    %895 = vector.multi_reduction <add>, %894, %cst_227 [1, 2] : vector<1x1x16xf32> to vector<1xf32>
    %896 = vector.shape_cast %895 : vector<1xf32> to vector<1x1x1xf32>
    %897 = vector.extract %896[0, 0, 0] : f32 from vector<1x1x1xf32>
    %cst_228 = arith.constant 1.1920929E-7 : f32
    %898 = arith.addf %858, %cst_228 : f32
    %899 = math.log %898 : f32
    %cst_229 = arith.constant 0.000000e+00 : f32
    %900 = arith.subf %cst_229, %899 : f32
    %cst_230 = arith.constant 1.1920929E-7 : f32
    %901 = arith.addf %897, %cst_230 : f32
    %902 = math.log %901 : f32
    %903 = arith.subf %900, %902 : f32
    %904 = arith.addf %792, %903 : f32
    %905 = tpu.iota {dimensions = array<i32: 1>} : vector<1x128xi32>
    %c0_i32 = arith.constant 0 : i32
    %906 = vector.broadcast %c0_i32 : i32 to vector<1x128xi32>
    %907 = arith.cmpi eq, %905, %906 : vector<1x128xi32>
    %c1_i32 = arith.constant 1 : i32
    %908 = vector.broadcast %c1_i32 : i32 to vector<1x128xi32>
    %909 = arith.cmpi eq, %905, %908 : vector<1x128xi32>
    %cst_231 = arith.constant 0.000000e+00 : f32
    %910 = vector.broadcast %904 : f32 to vector<1x128xf32>
    %911 = vector.broadcast %cst_231 : f32 to vector<1x128xf32>
    %912 = arith.select %909, %910, %911 : vector<1x128xi1>, vector<1x128xf32>
    %913 = vector.broadcast %841 : f32 to vector<1x128xf32>
    %914 = arith.select %907, %913, %912 : vector<1x128xi1>, vector<1x128xf32>
    %c0_232 = arith.constant 0 : index
    %c0_233 = arith.constant 0 : index
    %915 = vector.load %arg11[%c0_232, %c0_233] : memref<1x128xf32, #tpu.memory_space<vmem>>, vector<1x128xf32>
    tpu.vector_store %arg11[%c0_232, %c0_233], %914 {strides = array<i32>} : memref<1x128xf32, #tpu.memory_space<vmem>>, vector<1x128xf32>,
    return
  }
}

</mosaic_0001>

<bundles_post_ra>
// kernel: simulation_layer_forward.1
= control target key start
LH: loop header
LB: loop body
LE: loop exit
PB: predicated region body
PF: predicated region fallthrough
CT: control target
= control target key end

     0   :  { %16 = vsyncpa [#allocation3], 0  ;;  %s3698_s0 = inlined_call_operand.vmem [shape: s32[8], index: 0, kind: input, shape index: {}]   ;;  %s3699_s1 = inlined_call_operand.vmem [shape: s32[8], index: 1, kind: input, shape index: {}]   ;;  %s3700_s2 = inlined_call_operand.vmem [shape: f32[8], index: 2, kind: input, shape index: {}]   ;;  %s3701_s3 = inlined_call_operand.vmem [shape: f32[5], index: 3, kind: input, shape index: {}]   ;;  %s3702_s4 = inlined_call_operand.vmem [shape: f32[16,16], index: 4, kind: input, shape index: {}]   ;;  %s3703_s5 = inlined_call_operand.vmem [shape: f32[32,16], index: 5, kind: input, shape index: {}]   ;;  %s3704_s6 = inlined_call_operand.vmem [shape: f32[32,1], index: 6, kind: input, shape index: {}]   ;;  %s3705_s7 = inlined_call_operand.vmem [shape: f32[34,32], index: 7, kind: input, shape index: {}]   ;;  %s3706_s8 = inlined_call_operand.vmem [shape: f32[32,1], index: 8, kind: input, shape index: {}]   ;;  %s3707_s9 = inlined_call_operand.vmem [shape: f32[32,1], index: 9, kind: input, shape index: {}]   ;;  %s3708_s10 = inlined_call_operand.vmem [shape: f32[2,32], index: 10, kind: input, shape index: {}]   ;;  %s3709_s11 = inlined_call_operand.vmem [shape: f32[1,128], index: 11, kind: output, shape index: {}]  }
   0x1   :  { %17 = vsyncpa [#allocation5], 0  ;;  %s33_s19 = sshll.u32 %s3699_s1, 4  ;;  %s34_s19 = int_to_ptr.vmem [resolvable:$true] %s33_s19 }
   0x2   :  { %18 = vsyncpa [#allocation8], 0  ;;  %s24_s22 = sshll.u32 %s3698_s0, 4  ;;  %s2696_s23 = smov [#allocation4]   ;;  %s25_s22 = int_to_ptr.vmem [resolvable:$true] %s24_s22 }
   0x3   :  { %36 = dma.vmem_to_smem %s34_s19, 16, %s2696_s23, [#allocation5]  }
   0x4   :  { %s2697_s24 = smov [#allocation2]   ;;  %s42_s27 = sshll.u32 %s3700_s2, 4  ;;  %s43_s27 = int_to_ptr.vmem [resolvable:$true] %s42_s27 }
   0x5   :  { %27 = dma.vmem_to_smem %s25_s22, 16, %s2697_s24, [#allocation3]  }
   0x6   :  { %s51_s1 = sshll.u32 %s3701_s3, 4  ;;  %s2698_s30 = smov [#allocation6]   ;;  %s52_s1 = int_to_ptr.vmem [resolvable:$true] %s51_s1 }
   0x7   :  { %45 = dma.vmem_to_smem %s43_s27, 16, %s2698_s30, [#allocation5]  }
   0x8   :  { %s2699_s12 = smov [#allocation7]  }
   0x9   :  { %54 = dma.vmem_to_smem %s52_s1, 16, %s2699_s12, [#allocation8]  }
   0xa   :  { %2690 = dma.done.wait [#allocation3], 16  }
   0xb   :  { %2691 = vsyncadd [#allocation3], 4294967280 }
   0xc   :  { %2692 = dma.done.wait [#allocation5], 32  }
   0xd   :  { %2693 = vsyncadd [#allocation5], 4294967264 }
   0xe   :  { %2694 = dma.done.wait [#allocation8], 16  }
   0xf   :  { %2695 = vsyncadd [#allocation8], 4294967280 }
  0x10   :  { %85 = sfence }
  0x11   :  { %v96_v0 = vld [vmem:[%s3702_s4 + $0x8] sm:$0xff]  ;;  %v95_v1 = vld [vmem:[%s3702_s4] sm:$0xff]  ;;  %vm121_vm0 = vcmask 130048   ;;  %v2700_v3 = vmov 0   ;;  %v100_v5 = vld [vmem:[%s3704_s6 + $0x18] sm:$0xff]  ;;  %vm186_vm1 = vcmask 261120  }
  0x12   :  { %148 = vmatpush.msra.mxu0 %v96_v0  ;;  %v91_v2 = vld [vmem:[%s3703_s5] sm:$0xff]  ;;  %2404 = vset.pattern.permute.xlu1 %v2700_v3  ;;  %v98_v4 = vld [vmem:[%s3704_s6 + $0x8] sm:$0xff]  ;;  %v99_v7 = vld [vmem:[%s3704_s6 + $0x10] sm:$0xff]  ;;  %s2855_s16 = sld [smem:[#allocation7 + $0x2]]  ;;  %vm294_vm2 = vcmask 58369   ;;  %vm274_vm8 = vcmask 57344  }
  0x13   :  { %108 = vperm.xlu1 %2404, %v98_v4   ;;  %2403 = vset.pattern.permute.xlu0 %v2700_v3  ;;  %v97_v6 = vld [vmem:[%s3704_s6] sm:$0xff]  ;;  %v92_v8 = vld [vmem:[%s3703_s5 + $0x8] sm:$0xff]  ;;  %v93_v9 = vld [vmem:[%s3703_s5 + $0x10] sm:$0xff]  ;;  %s86_s17 = sld [smem:[#allocation7]]  ;;  %vm359_vm11 = vcmask 122880  }
  0x14   :  { %149 = vmatpush.msra.mxu0 %v95_v1  ;;  %118 = vperm.xlu0 %2403, %v100_v5   ;;  %v94_v10 = vld [vmem:[%s3703_s5 + $0x18] sm:$0xff]  ;;  %v2810_v26 = vld [vmem:[%s3705_s7] sm:$0xff]  ;;  %v2817_v28 = vld [vmem:[%s3705_s7 + $0x8] sm:$0xff]  ;;  %s2218_s18 = sld [smem:[#allocation7 + $0x1]] }
  0x15   :  { %2222 = vmatmul.msk.f32.vlgmr.msra.gmra.mxu0 %vm121_vm0, %v91_v2  ;;  %2405 = vset.pattern.permute.xlu2 %v2700_v3  ;;  %v2824_v29 = vld [vmem:[%s3705_s7 + $0x10] sm:$0xff]  ;;  %v2831_v30 = vld [vmem:[%s3705_s7 + $0x18] sm:$0xff]  ;;  %v2838_v31 = vld [vmem:[%s3705_s7 + $0x20] sm:$0x3]  ;;  %s184_s21 = sld [smem:[#allocation2]] }
  0x16   :  { %v2847_v33 = vld [vmem:[%s3708_s10] sm:$0x3]  ;;  %s2921_s12 = sld [smem:[#allocation6 + $0x1]] }
  0x17   :  { %s434_s0 = sld [smem:[#allocation6]] }
  0x18   :  { %s271_s19 = smul.f32 0.0, %s2855_s16  ;;  %s2233_s22 = sld [smem:[#allocation2 + $0x1]] }
  0x19   :  { %v2860_v37 = vstv %s86_s17  ;;  %s185_s23 = sld [smem:[#allocation4]] }
  0x1a   :  { %v2862_v38 = vstv %s2218_s18  ;;  %v272_v40 = vstv %s271_s19  ;;  %s2220_s18 = sld [smem:[#allocation7 + $0x3]] }
  0x1b   :  { %103 = vperm.xlu1 %2404, %v97_v6   ;;  %s3029_s27 = sld [smem:[#allocation6 + $0x2]] }
  0x1c   :  { %113 = vperm.xlu0 %2403, %v99_v7   ;;  %v2874_v7 = vld [vmem:[%s3706_s8 + $0x8] sm:$0xff]  ;;  %s2237_s15 = sld [smem:[#allocation2 + $0x2]] }
  0x1d   :  { %2223 = vmatmul.msk.f32.gmra.mxu0 %vm121_vm0, %v92_v8  ;;  %v442_v8 = vmul.f32 0.0, %v2874_v7  ;;  %s2927_s14 = ssub.f32 %s2921_s12, %s434_s0 }
  0x1f   :  { %s438_s3 = smul.f32 %s2855_s16, %s2927_s14 }
  0x21   :  { %s3033_s28 = ssub.f32 %s3029_s27, %s2921_s12 }
  0x23   :  { %s703_s5 = smul.f32 %s2855_s16, %s3033_s28 }
  0x25   :  { %2224 = vmatmul.msk.f32.gmra.mxu0 %vm121_vm0, %v93_v9 }
  0x2d   :  { %2225 = vmatmul.msk.f32.gmra.mxu0 %vm121_vm0, %v94_v10 }
  0x85   :  { %v109_v14 = vpop.permute.xlu1 %108 }
  0x86   :  { %v119_v13 = vpop.permute.xlu0 %118 }
  0x8d   :  { %v104_v20 = vpop.permute.xlu1 %103 }
  0x8e   :  { %v114_v16 = vpop.permute.xlu0 %113 }
  0x92   :  { %v151_v11 = vpop.f32.mrf.mxu0 }
  0x93   :  { %v152_v22 = vadd.f32 %v151_v11, %v104_v20 }
  0x9a   :  { %v154_v12 = vpop.f32.mrf.mxu0 }
  0x9b   :  { %v155_v21 = vadd.f32 %v154_v12, %v109_v14  ;;  %v181_v12 = vlaneseq  ;;  %v319_v14 = vstv %s184_s21 }
  0xa2   :  { %v157_v15 = vpop.f32.mrf.mxu0 }
  0xa3   :  { %v158_v18 = vadd.f32 %v157_v15, %v114_v16 }
  0xaa   :  { %v160_v17 = vpop.f32.mrf.mxu0 }
  0xab   :  { %v161_v19 = vadd.f32 %v160_v17, %v119_v13  ;;  %v2877_v13 = vand.u32 127, %v181_v12 }
  0xad   :  { %2406 = vtanh.f32 %v161_v19  ;;  %vm2886_vm10 = vcmp.eq.s32.totalorder %v2877_v13, %v319_v14  ;;  %vm183_vm0 = vcmp.ge.s32.totalorder %v2877_v13, 8 }
  0xae   :  { %2408 = vtanh.f32 %v158_v18 }
  0xaf   :  { %2410 = vtanh.f32 %v155_v21  ;;  %v2897_v21 = vld [vmem:[%s3706_s8 + $0x18] sm:$0xff] }
  0xb0   :  { %2412 = vtanh.f32 %v152_v22  ;;  %v444_v22 = vmul.f32 0.0, %v2897_v21 }
  0xb3   :  { %v2407_v23 = vpop.eup %2406 }
  0xb4   :  { %214 = vmatpush.msra.mxu1 %v2407_v23  ;;  %350 = vmatpush.msra.mxu2 %v2407_v23  ;;  %v2409_v24 = vpop.eup %2408 }
  0xb5   :  { %v2411_v25 = vpop.eup %2410 }
  0xb6   :  { %215 = vmatpush.msra.mxu1 %v2409_v24  ;;  %351 = vmatpush.msra.mxu2 %v2409_v24  ;;  %v2413_v27 = vpop.eup %2412 }
  0xb8   :  { %216 = vmatpush.msra.mxu1 %v2411_v25  ;;  %352 = vmatpush.msra.mxu2 %v2411_v25 }
  0xba   :  { %217 = vmatpush.msra.mxu1 %v2413_v27  ;;  %353 = vmatpush.msra.mxu2 %v2413_v27  ;;  %v2903_v27 = vld [vmem:[%s3706_s8 + $0x10] sm:$0xff] }
  0xbb   :  { %2226 = vmatmul.msk.f32.vlgmr.msra.gmra.mxu1 %vm186_vm1, %v2810_v26  ;;  %2231 = vmatmul.msk.f32.vlgmr.msra.gmra.mxu2 %vm186_vm1, %v2847_v33 }
  0xc3   :  { %2227 = vmatmul.msk.f32.gmra.mxu1 %vm186_vm1, %v2817_v28 }
  0xcb   :  { %2228 = vmatmul.msk.f32.gmra.mxu1 %vm186_vm1, %v2824_v29 }
  0xd3   :  { %2229 = vmatmul.msk.f32.gmra.mxu1 %vm186_vm1, %v2831_v30 }
  0xdb   :  { %2230 = vmatmul.msk.f32.gmra.mxu1 %vm186_vm1, %v2838_v31 }
 0x138   :  { %v2842_v32 = vpop.f32.mrf.mxu1 }
 0x13e   :  { %v2883_v17 = vpop.f32.mrf.mxu2 }
 0x13f   :  { %v358_v19 = vsel %vm2886_vm10, %v2883_v17, 0.0 }
 0x140   :  { %v2849_v34 = vpop.f32.mrf.mxu1  ;;  %v360_v20 = vsel %vm359_vm11, %v358_v19, 0.0 }
 0x148   :  { %v2853_v35 = vpop.f32.mrf.mxu1 }
 0x150   :  { %v2857_v36 = vpop.f32.mrf.mxu1 }
 0x158   :  { %v231_v39 = vpop.f32.mrf.mxu1 }
 0x159   :  { %v235_v41 = vadd.f32 %v2860_v37, %v231_v39  ;;  %v2866_v42 = vadd.f32 %v2862_v38, %v231_v39 }
 0x15b   :  { %v239_v43 = vand.u32 2147483647, %v235_v41  ;;  %v273_v44 = vadd.f32 %v272_v40, %v2866_v42  ;;  %v236_v56 = vmax.f32 %v235_v41, 0.0  ;;  %vm237_vm4 = vcmp.ne.f32.partialorder %v235_v41, %v235_v41 }
 0x15c   :  { %v443_v40 = vmul.f32 0.0, %v2903_v27 }
 0x15d   :  { %v240_v45 = vsub.f32 0.0, %v239_v43  ;;  %v295_v46 = vsel %vm294_vm2, %v273_v44, -inf }
 0x15e   :  { %296 = vmax.xlane.f32.xlu2 %v295_v46  ;;  %v2912_v46 = vld [vmem:[%s3706_s8] sm:$0xff] }
 0x15f   :  { %v241_v47 = vmul.f32 1.442695, %v240_v45  ;;  %v180_v45 = vld [vmem:[%s3707_s9 + $0x18] sm:$0xff] }
 0x161   :  { %2414 = vpow2.f32 %v241_v47  ;;  %v441_v47 = vmul.f32 0.0, %v2912_v46 }
 0x167   :  { %v2415_v48 = vpop.eup %2414 }
 0x168   :  { %v243_v49 = vadd.f32 1.0, %v2415_v48  ;;  %v246_v50 = vmul.f32 -0.5, %v2415_v48  ;;  %v249_v52 = vand.u32 2147483647, %v2415_v48 }
 0x16a   :  { %2416 = vlog2.f32 %v243_v49  ;;  %v247_v51 = vadd.f32 1.0, %v246_v50  ;;  %vm250_vm3 = vcmp.lt.f32.partialorder %v249_v52, 0.0004427343  ;;  %v177_v49 = vld [vmem:[%s3707_s9] sm:$0xff] }
 0x16c   :  { %v248_v55 = vmul.f32 %v2415_v48, %v247_v51  ;;  %v178_v48 = vld [vmem:[%s3707_s9 + $0x8] sm:$0xff] }
 0x170   :  { %v2417_v53 = vpop.eup %2416 }
 0x171   :  { %v245_v54 = vmul.f32 0.6931472, %v2417_v53  ;;  %v439_v53 = vstv %s438_s3  ;;  %s2234_s3 = sld [smem:[#allocation4 + $0x1]] }
 0x173   :  { %v251_v57 = vsel %vm250_vm3, %v248_v55, %v245_v54  ;;  %v2932_v54 = vadd.f32 %v439_v53, %v2866_v42  ;;  %vm378_vm3 = vcmask 123905  }
 0x174   :  { %v252_v58 = vadd.f32 %v251_v57, %v236_v56 }
 0x175   :  { %v500_v55 = vsel %vm294_vm2, %v2932_v54, -inf }
 0x176   :  { %v253_v59 = vsel %vm237_vm4, %v235_v41, %v252_v58 }
 0x177   :  { %2418 = vrcp.f32 %v253_v59  ;;  %v265_v63 = vand.u32 2147483648, %v253_v59  ;;  %v263_v1 = vand.u32 2147483647, %v253_v59  ;;  %vm259_vm6 = vweird.f32 %v253_v59 }
 0x179   :  { %v266_v3 = vor.u32 1.1754944e-38, %v265_v63  ;;  %vm264_vm9 = vcmp.eq.f32.partialorder %v263_v1, 8.507059e+37 }
 0x17d   :  { %v2419_v60 = vpop.eup %2418 }
 0x17e   :  { %v255_v61 = vmul.f32 %v2419_v60, %v253_v59  ;;  %vm260_vm5 = vweird.f32 %v2419_v60 }
 0x17f   :  { %vm261_vm7 = vmor %vm259_vm6, %vm260_vm5 }
 0x180   :  { %v256_v62 = vsub.f32 1.0, %v255_v61 }
 0x182   :  { %v257_v0 = vmul.f32 %v2419_v60, %v256_v62 }
 0x184   :  { %v258_v2 = vadd.f32 %v2419_v60, %v257_v0 }
 0x186   :  { %v262_v4 = vsel %vm261_vm7, %v2419_v60, %v258_v2 }
 0x187   :  { %v267_v5 = vsel %vm264_vm9, %v266_v3, %v262_v4 }
 0x188   :  { %v275_v6 = vsel %vm274_vm8, %v267_v5, 0.0 }
 0x189   :  { %276 = vadd.xlane.f32.xlu0 %v275_v6 }
 0x19d   :  { %452 = vperm.xlu0 %2403, %v442_v8  }
 0x1d1   :  { %v297_v9 = vpop.xlane.xlu2 %296 }
 0x1d2   :  { %v298_v10 = vsub.f32 %v273_v44, %v297_v9 }
 0x1d4   :  { %v299_v11 = vmul.f32 1.442695, %v298_v10 }
 0x1d6   :  { %2420 = vpow2.f32 %v299_v11 }
 0x1dc   :  { %v2879_v15 = vpop.eup %2420 }
 0x1dd   :  { %v301_v16 = vsel %vm294_vm2, %v2879_v15, 0.0 }
 0x1de   :  { %302 = vadd.xlane.f32.xlu2 %v301_v16 }
 0x1e6   :  { %361 = vadd.xlane.f32.xlu2 %v360_v20 }
 0x1fc   :  { %v277_v23 = vpop.xlane.xlu0 %276 }
 0x1fd   :  { %v278_v24 = vrot.slane %v277_v23, 4 }
 0x1fe   :  { %462 = vperm.xlu2 %2405, %v444_v22  }
 0x1ff   :  { %v279_v25 = vadd.f32 %v278_v24, %v277_v23 }
 0x201   :  { %v280_v39 = vrot.slane %v279_v25, 2 }
 0x203   :  { %v281_v41 = vadd.f32 %v280_v39, %v279_v25 }
 0x205   :  { %v282_v43 = vrot.slane %v281_v41, 1 }
 0x206   :  { %457 = vperm.xlu2 %2405, %v443_v40  }
 0x207   :  { %v283_v44 = vadd.f32 %v282_v43, %v281_v41 }
 0x209   :  { %2290 = vpush %v283_v44 }
 0x20e   :  { %486 = vperm.xlu2 %2405, %v180_v45  }
 0x216   :  { %447 = vperm.xlu2 %2405, %v441_v47   ;;  %v453_v47 = vpop.permute.xlu0 %452 }
 0x21e   :  { %476 = vperm.xlu2 %2405, %v178_v48   ;;  %v466_v48 = vadd.f32 %v453_v47, %v2849_v34 }
 0x226   :  { %471 = vperm.xlu2 %2405, %v177_v49  }
 0x23a   :  { %s2923_s13 = spop %2290 }
 0x23b   :  { %s285_s2 = sadd.f32 1.1920929e-07, %s2923_s13 }
 0x23d   :  { %v286_v50 = vstv %s285_s2 }
 0x23e   :  { %2422 = vlog2.f32 %v286_v50 }
 0x244   :  { %v2423_v51 = vpop.eup %2422 }
 0x245   :  { %v288_v52 = vmul.f32 0.6931472, %v2423_v51 }
 0x247   :  { %2292 = vpush %v288_v52 }
 0x24f   :  { %501 = vmax.xlane.f32.xlu2 %v500_v55 }
 0x251   :  { %v303_v56 = vpop.xlane.xlu2 %302 }
 0x252   :  { %2424 = vrcp.f32 %v303_v56  ;;  %v315_v61 = vand.u32 2147483648, %v303_v56  ;;  %v313_v63 = vand.u32 2147483647, %v303_v56  ;;  %vm309_vm13 = vweird.f32 %v303_v56 }
 0x254   :  { %v316_v1 = vor.u32 1.1754944e-38, %v315_v61  ;;  %vm314_vm15 = vcmp.eq.f32.partialorder %v313_v63, 8.507059e+37 }
 0x258   :  { %v2425_v57 = vpop.eup %2424 }
 0x259   :  { %v305_v58 = vmul.f32 %v2425_v57, %v303_v56  ;;  %v362_v59 = vpop.xlane.xlu2 %361  ;;  %vm310_vm12 = vweird.f32 %v2425_v57 }
 0x25a   :  { %vm311_vm14 = vmor %vm309_vm13, %vm310_vm12  ;;  %v363_v16 = vrot.slane %v362_v59, 4 }
 0x25b   :  { %v306_v60 = vsub.f32 1.0, %v305_v58 }
 0x25c   :  { %v364_v18 = vadd.f32 %v363_v16, %v362_v59 }
 0x25d   :  { %v307_v62 = vmul.f32 %v2425_v57, %v306_v60  ;;  %v2977_v60 = vstv %s2220_s18 }
 0x25e   :  { %v365_v19 = vrot.slane %v364_v18, 2 }
 0x25f   :  { %v308_v0 = vadd.f32 %v2425_v57, %v307_v62 }
 0x260   :  { %v366_v24 = vadd.f32 %v365_v19, %v364_v18 }
 0x261   :  { %v463_v42 = vpop.permute.xlu2 %462  ;;  %v312_v2 = vsel %vm311_vm14, %v2425_v57, %v308_v0 }
 0x262   :  { %v317_v3 = vsel %vm314_vm15, %v316_v1, %v312_v2  ;;  %v468_v10 = vadd.f32 %v463_v42, %v2857_v36  ;;  %v367_v40 = vrot.slane %v366_v24, 1 }
 0x263   :  { %v318_v4 = vmul.f32 %v2879_v15, %v317_v3  ;;  %v179_v15 = vld [vmem:[%s3707_s9 + $0x10] sm:$0xff]  ;;  %s2965_s9 = sld [smem:[#allocation7 + $0x4]]  ;;  %v524_v3 = vstv %s2233_s22 }
 0x264   :  { %v368_v44 = vadd.f32 %v367_v40, %v366_v24  ;;  %vm2989_vm4 = vcmp.eq.s32.totalorder %v2877_v13, %v524_v3 }
 0x265   :  { %v321_v5 = vsel %vm2886_vm10, %v318_v4, 0.0 }
 0x266   :  { %v323_v6 = vrot.slane %v321_v5, 1 }
 0x268   :  { %v325_v8 = vsel %vm274_vm8, %v323_v6, 0.0 }
 0x269   :  { %326 = vadd.xlane.f32.xlu1 %v325_v8  ;;  %v458_v9 = vpop.permute.xlu2 %457  ;;  %s374_s20 = smul.f32 0.0, %s2965_s9 }
 0x26a   :  { %v467_v49 = vadd.f32 %v458_v9, %v2853_v35  ;;  %v3000_v9 = vstv %s2927_s14  ;;  %s574_s30 = smul.f32 %s2965_s9, %s2927_s14 }
 0x26b   :  { %v375_v62 = vstv %s374_s20 }
 0x271   :  { %v2941_v11 = vpop.permute.xlu2 %486 }
 0x272   :  { %v492_v12 = vadd.f32 %v2941_v11, %v468_v10  ;;  %v709_v10 = vmul.f32 %v3000_v9, %v2903_v27 }
 0x274   :  { %2426 = vtanh.f32 %v492_v12 }
 0x278   :  { %s2969_s19 = spop %2292 }
 0x279   :  { %v448_v36 = vpop.permute.xlu2 %447 }
 0x27a   :  { %v2427_v14 = vpop.eup %2426  ;;  %v465_v52 = vadd.f32 %v448_v36, %v2842_v32 }
 0x27b   :  { %552 = vmatpush.msrb.mxu0 %v2427_v14  ;;  %648 = vmatpush.msrb.mxu2 %v2427_v14 }
 0x281   :  { %v2947_v45 = vpop.permute.xlu2 %476 }
 0x282   :  { %481 = vperm.xlu1 %2404, %v179_v15   ;;  %v490_v55 = vadd.f32 %v2947_v45, %v466_v48 }
 0x289   :  { %v2951_v50 = vpop.permute.xlu2 %471 }
 0x28a   :  { %v489_v56 = vadd.f32 %v2951_v50, %v465_v52 }
 0x2c2   :  { %v502_v32 = vpop.xlane.xlu2 %501 }
 0x2c3   :  { %v503_v58 = vsub.f32 %v2932_v54, %v502_v32 }
 0x2c5   :  { %v504_v63 = vmul.f32 1.442695, %v503_v58 }
 0x2dc   :  { %v327_v20 = vpop.xlane.xlu1 %326 }
 0x2dd   :  { %v328_v22 = vrot.slane %v327_v20, 4 }
 0x2df   :  { %v329_v23 = vadd.f32 %v328_v22, %v327_v20 }
 0x2e1   :  { %v330_v25 = vrot.slane %v329_v23, 2 }
 0x2e3   :  { %v331_v39 = vadd.f32 %v330_v25, %v329_v23 }
 0x2e5   :  { %v332_v41 = vrot.slane %v331_v39, 1 }
 0x2e7   :  { %v333_v43 = vadd.f32 %v332_v41, %v331_v39 }
 0x2e9   :  { %2294 = vpush %v333_v43 }
 0x2ea   :  { %2296 = vpush %v368_v44 }
 0x2f4   :  { %v2953_v51 = vpop.permute.xlu1 %481 }
 0x2f5   :  { %v491_v53 = vadd.f32 %v2953_v51, %v467_v49 }
 0x2f7   :  { %2428 = vtanh.f32 %v491_v53  ;;  %v710_v53 = vmul.f32 %v3000_v9, %v2897_v21 }
 0x2f8   :  { %2430 = vtanh.f32 %v490_v55  ;;  %v707_v55 = vmul.f32 %v3000_v9, %v2912_v46 }
 0x2f9   :  { %2432 = vtanh.f32 %v489_v56 }
 0x2fa   :  { %2434 = vpow2.f32 %v504_v63  ;;  %v404_v63 = vstv %s185_s23 }
 0x2fb   :  { %vm405_vm15 = vcmp.eq.s32.totalorder %v2877_v13, %v404_v63 }
 0x2fd   :  { %v2429_v57 = vpop.eup %2428 }
 0x2fe   :  { %553 = vmatpush.msrb.mxu0 %v2429_v57  ;;  %649 = vmatpush.msrb.mxu2 %v2429_v57  ;;  %v2431_v34 = vpop.eup %2430 }
 0x2ff   :  { %v2433_v35 = vpop.eup %2432 }
 0x300   :  { %554 = vmatpush.msrb.mxu0 %v2431_v34  ;;  %650 = vmatpush.msrb.mxu2 %v2431_v34 }
 0x302   :  { %555 = vmatpush.msrb.mxu0 %v2433_v35  ;;  %651 = vmatpush.msrb.mxu2 %v2433_v35 }
 0x303   :  { %2235 = vmatmul.msk.f32.vlgmr.msrb.gmra.mxu0 %vm186_vm1, %v2847_v33  ;;  %2239 = vmatmul.msk.f32.vlgmr.msrb.gmra.mxu2 %vm186_vm1, %v2810_v26 }
 0x30b   :  { %2240 = vmatmul.msk.f32.gmra.mxu2 %vm186_vm1, %v2817_v28 }
 0x313   :  { %2241 = vmatmul.msk.f32.gmra.mxu2 %vm186_vm1, %v2824_v29 }
 0x31a   :  { %s2971_s4 = spop %2294 }
 0x31b   :  { %s2297_s21 = spop %2296  ;;  %2242 = vmatmul.msk.f32.gmra.mxu2 %vm186_vm1, %v2831_v30  ;;  %s420_s24 = sadd.f32 1.1920929e-07, %s2971_s4 }
 0x31c   :  { %v370_v59 = vstv %s2297_s21 }
 0x31d   :  { %v371_v61 = vadd.f32 %v370_v59, %v2883_v17  ;;  %v2435_v17 = vpop.eup %2434 }
 0x31e   :  { %v506_v2 = vsel %vm294_vm2, %v2435_v17, 0.0 }
 0x31f   :  { %v373_v0 = vadd.f32 %v2977_v60, %v371_v61 }
 0x321   :  { %v376_v1 = vadd.f32 %v375_v62, %v373_v0 }
 0x323   :  { %v377_v54 = vsel %vm183_vm0, %v376_v1, -1e+30  ;;  %2243 = vmatmul.msk.f32.gmra.mxu2 %vm186_vm1, %v2838_v31 }
 0x324   :  { %v379_v42 = vsel %vm378_vm3, %v377_v54, -inf }
 0x325   :  { %380 = vmax.xlane.f32.xlu0 %v379_v42 }
 0x32d   :  { %507 = vadd.xlane.f32.xlu0 %v506_v2 }
 0x380   :  { %v2993_v5 = vpop.f32.mrf.mxu0 }
 0x381   :  { %v560_v6 = vsel %vm2989_vm4, %v2993_v5, 0.0 }
 0x382   :  { %v561_v8 = vsel %vm359_vm11, %v560_v6, 0.0 }
 0x383   :  { %562 = vadd.xlane.f32.xlu2 %v561_v8 }
 0x386   :  { %v3014_v34 = vpop.f32.mrf.mxu2 }
 0x398   :  { %v381_v12 = vpop.xlane.xlu0 %380 }
 0x399   :  { %v382_v14 = vsub.f32 %v377_v54, %v381_v12  ;;  %v3016_v54 = vpop.f32.mrf.mxu2 }
 0x39b   :  { %v383_v15 = vmul.f32 1.442695, %v382_v14  ;;  %723 = vperm.xlu2 %2405, %v709_v10  }
 0x39d   :  { %2436 = vpow2.f32 %v383_v15 }
 0x3a0   :  { %v508_v16 = vpop.xlane.xlu0 %507 }
 0x3a1   :  { %2438 = vrcp.f32 %v508_v16  ;;  %v520_v24 = vand.u32 2147483648, %v508_v16  ;;  %v518_v39 = vand.u32 2147483647, %v508_v16  ;;  %vm514_vm6 = vweird.f32 %v508_v16  ;;  %v659_v8 = vpop.f32.mrf.mxu2 }
 0x3a3   :  { %v2437_v18 = vpop.eup %2436  ;;  %v521_v41 = vor.u32 1.1754944e-38, %v520_v24  ;;  %vm519_vm9 = vcmp.eq.f32.partialorder %v518_v39, 8.507059e+37 }
 0x3a4   :  { %v385_v19 = vsel %vm183_vm0, %v2437_v18, 0.0 }
 0x3a5   :  { %v386_v20 = vsel %vm378_vm3, %v385_v19, 0.0 }
 0x3a6   :  { %387 = vadd.xlane.f32.xlu1 %v386_v20 }
 0x3a7   :  { %v2439_v22 = vpop.eup %2438 }
 0x3a8   :  { %v510_v23 = vmul.f32 %v2439_v22, %v508_v16  ;;  %vm515_vm5 = vweird.f32 %v2439_v22 }
 0x3a9   :  { %vm516_vm7 = vmor %vm514_vm6, %vm515_vm5  ;;  %v662_v14 = vpop.f32.mrf.mxu2 }
 0x3aa   :  { %v511_v36 = vsub.f32 1.0, %v510_v23 }
 0x3ac   :  { %v512_v25 = vmul.f32 %v2439_v22, %v511_v36  ;;  %v421_v36 = vstv %s420_s24 }
 0x3ae   :  { %v513_v40 = vadd.f32 %v2439_v22, %v512_v25 }
 0x3b0   :  { %v517_v43 = vsel %vm516_vm7, %v2439_v22, %v513_v40 }
 0x3b1   :  { %v522_v44 = vsel %vm519_vm9, %v521_v41, %v517_v43 }
 0x3b2   :  { %v523_v47 = vmul.f32 %v2435_v17, %v522_v44 }
 0x3b4   :  { %v526_v48 = vsel %vm2989_vm4, %v523_v47, 0.0 }
 0x3b5   :  { %v528_v49 = vrot.slane %v526_v48, 1 }
 0x3b7   :  { %v530_v52 = vsel %vm274_vm8, %v528_v49, 0.0 }
 0x3b8   :  { %531 = vadd.xlane.f32.xlu0 %v530_v52 }
 0x3cc   :  { %728 = vperm.xlu0 %2403, %v710_v53  }
 0x3d4   :  { %713 = vperm.xlu0 %2403, %v707_v55  }
 0x3f6   :  { %v563_v4 = vpop.xlane.xlu2 %562 }
 0x3f7   :  { %v564_v52 = vrot.slane %v563_v4, 4 }
 0x3f9   :  { %v565_v55 = vadd.f32 %v564_v52, %v563_v4 }
 0x3fe   :  { %v724_v12 = vpop.permute.xlu2 %723 }
 0x3ff   :  { %v733_v15 = vadd.f32 %v724_v12, %v659_v8 }
 0x401   :  { %v737_v20 = vadd.f32 %v733_v15, %v2953_v51 }
 0x419   :  { %v388_v56 = vpop.xlane.xlu1 %387 }
 0x41a   :  { %2440 = vrcp.f32 %v388_v56  ;;  %v400_v58 = vand.u32 2147483648, %v388_v56  ;;  %v398_v61 = vand.u32 2147483647, %v388_v56  ;;  %vm394_vm12 = vweird.f32 %v388_v56 }
 0x41c   :  { %v401_v0 = vor.u32 1.1754944e-38, %v400_v58  ;;  %vm399_vm14 = vcmp.eq.f32.partialorder %v398_v61, 8.507059e+37 }
 0x420   :  { %v2441_v57 = vpop.eup %2440 }
 0x421   :  { %v390_v35 = vmul.f32 %v2441_v57, %v388_v56  ;;  %vm395_vm10 = vweird.f32 %v2441_v57 }
 0x422   :  { %vm396_vm13 = vmor %vm394_vm12, %vm395_vm10 }
 0x423   :  { %v391_v32 = vsub.f32 1.0, %v390_v35 }
 0x425   :  { %v392_v59 = vmul.f32 %v2441_v57, %v391_v32 }
 0x427   :  { %v393_v62 = vadd.f32 %v2441_v57, %v392_v59 }
 0x429   :  { %v397_v1 = vsel %vm396_vm13, %v2441_v57, %v393_v62  ;;  %v566_v57 = vrot.slane %v565_v55, 2 }
 0x42a   :  { %v402_v42 = vsel %vm399_vm14, %v401_v0, %v397_v1 }
 0x42b   :  { %v403_v17 = vmul.f32 %v402_v42, %v385_v19  ;;  %v532_v10 = vpop.xlane.xlu0 %531  ;;  %v567_v58 = vadd.f32 %v566_v57, %v565_v55  ;;  %v665_v42 = vpop.f32.mrf.mxu2 }
 0x42c   :  { %v533_v49 = vrot.slane %v532_v10, 4 }
 0x42d   :  { %v406_v2 = vsel %vm405_vm15, %v403_v17, 0.0  ;;  %v568_v61 = vrot.slane %v567_v58, 1  ;;  %v704_v17 = vstv %s703_s5  ;;  %s290_s5 = ssub.f32 0.0, %s2969_s19 }
 0x42e   :  { %v408_v3 = vrot.slane %v406_v2, 1  ;;  %v534_v53 = vadd.f32 %v533_v49, %v532_v10  ;;  %v702_v2 = vadd.f32 %v665_v42, %v2862_v38  ;;  %v575_v10 = vstv %s574_s30  ;;  %s3155_s19 = sld [smem:[#allocation6 + $0x3]] }
 0x42f   :  { %v569_v1 = vadd.f32 %v568_v61, %v567_v58 }
 0x430   :  { %v410_v6 = vsel %vm359_vm11, %v408_v3, 0.0  ;;  %v535_v56 = vrot.slane %v534_v53, 2  ;;  %v705_v3 = vadd.f32 %v704_v17, %v702_v2 }
 0x431   :  { %411 = vadd.xlane.f32.xlu1 %v410_v6 }
 0x432   :  { %v536_v32 = vadd.f32 %v535_v56, %v534_v53  ;;  %v762_v4 = vsel %vm294_vm2, %v705_v3, -inf }
 0x433   :  { %763 = vmax.xlane.f32.xlu0 %v762_v4 }
 0x434   :  { %v537_v59 = vrot.slane %v536_v32, 1 }
 0x436   :  { %v538_v0 = vadd.f32 %v537_v59, %v536_v32 }
 0x43e   :  { %v729_v16 = vpop.permute.xlu0 %728 }
 0x43f   :  { %v734_v18 = vadd.f32 %v729_v16, %v662_v14 }
 0x441   :  { %v738_v22 = vadd.f32 %v734_v18, %v2941_v11 }
 0x443   :  { %2442 = vtanh.f32 %v738_v22 }
 0x444   :  { %2444 = vtanh.f32 %v737_v20 }
 0x445   :  { %2446 = vlog2.f32 %v421_v36 }
 0x449   :  { %v3022_v19 = vpop.eup %2442 }
 0x44a   :  { %814 = vmatpush.msra.mxu3 %v3022_v19  ;;  %v3025_v23 = vpop.eup %2444 }
 0x44b   :  { %v2447_v43 = vpop.eup %2446 }
 0x44c   :  { %815 = vmatpush.msra.mxu3 %v3025_v23  ;;  %v423_v48 = vmul.f32 0.6931472, %v2447_v43 }
 0x4a4   :  { %v412_v24 = vpop.xlane.xlu1 %411 }
 0x4a5   :  { %v413_v25 = vrot.slane %v412_v24, 4 }
 0x4a7   :  { %v414_v39 = vadd.f32 %v413_v25, %v412_v24  ;;  %v708_v25 = vmul.f32 %v3000_v9, %v2874_v7 }
 0x4a9   :  { %v415_v40 = vrot.slane %v414_v39, 2 }
 0x4ab   :  { %v416_v41 = vadd.f32 %v415_v40, %v414_v39  ;;  %v714_v39 = vpop.permute.xlu0 %713 }
 0x4ad   :  { %v417_v44 = vrot.slane %v416_v41, 1 }
 0x4af   :  { %v418_v47 = vadd.f32 %v417_v44, %v416_v41 }
 0x4b1   :  { %2298 = vpush %v418_v47  ;;  %v668_v47 = vadd.f32 %v665_v42, %v2860_v37 }
 0x4b2   :  { %2300 = vpush %v423_v48 }
 0x4b3   :  { %v764_v40 = vpop.xlane.xlu0 %763  ;;  %v672_v49 = vand.u32 2147483647, %v668_v47  ;;  %v669_v59 = vmax.f32 %v668_v47, 0.0  ;;  %vm670_vm5 = vcmp.ne.f32.partialorder %v668_v47, %v668_v47 }
 0x4b4   :  { %v765_v41 = vsub.f32 %v705_v3, %v764_v40 }
 0x4b5   :  { %v673_v52 = vsub.f32 0.0, %v672_v49 }
 0x4b6   :  { %v766_v43 = vmul.f32 1.442695, %v765_v41 }
 0x4b7   :  { %v674_v53 = vmul.f32 1.442695, %v673_v52 }
 0x4e2   :  { %s2299_s25 = spop %2298 }
 0x4e3   :  { %s426_s26 = sadd.f32 1.1920929e-07, %s2299_s25  ;;  %s2301_s6 = spop %2300 }
 0x4e4   :  { %s425_s29 = ssub.f32 0.0, %s2301_s6  ;;  %s291_s6 = smul.f32 0.0, %s2923_s13 }
 0x4e5   :  { %v427_v35 = vstv %s426_s26 }
 0x4e6   :  { %2448 = vlog2.f32 %v427_v35 }
 0x4ec   :  { %v2449_v62 = vpop.eup %2448 }
 0x4ed   :  { %v429_v63 = vmul.f32 0.6931472, %v2449_v62 }
 0x4ef   :  { %2302 = vpush %v429_v63 }
 0x4f0   :  { %2304 = vpush %v538_v0 }
 0x4f1   :  { %2306 = vpush %v569_v1 }
 0x520   :  { %s2303_s1 = spop %2302 }
 0x521   :  { %s3041_s0 = ssub.f32 %s425_s29, %s2303_s1  ;;  %s3043_s2 = spop %2304 }
 0x522   :  { %s2307_s12 = spop %2306  ;;  %s619_s17 = sadd.f32 1.1920929e-07, %s3043_s2 }
 0x523   :  { %v571_v6 = vstv %s2307_s12  ;;  %s497_s29 = smul.f32 %s2923_s13, %s2927_s14  ;;  %s292_s1 = sadd.f32 %s291_s6, %s290_s5 }
 0x524   :  { %v572_v8 = vadd.f32 %v571_v6, %v2993_v5 }
 0x525   :  { %s498_s30 = sadd.f32 %s497_s29, %s290_s5 }
 0x526   :  { %v573_v12 = vadd.f32 %v572_v8, %v2977_v60 }
 0x528   :  { %v576_v14 = vadd.f32 %v575_v10, %v573_v12 }
 0x52a   :  { %v577_v15 = vsel %vm183_vm0, %v576_v14, -1e+30  ;;  %v603_v14 = vstv %s2234_s3 }
 0x52b   :  { %v578_v16 = vsel %vm378_vm3, %v577_v15, -inf  ;;  %vm604_vm12 = vcmp.eq.s32.totalorder %v2877_v13, %v603_v14 }
 0x52c   :  { %579 = vmax.xlane.f32.xlu1 %v578_v16 }
 0x59f   :  { %v580_v18 = vpop.xlane.xlu1 %579 }
 0x5a0   :  { %v581_v20 = vsub.f32 %v577_v15, %v580_v18 }
 0x5a2   :  { %v582_v22 = vmul.f32 1.442695, %v581_v20 }
 0x5a4   :  { %2450 = vpow2.f32 %v582_v22 }
 0x5a5   :  { %2452 = vpow2.f32 %v766_v43  ;;  %v731_v43 = vadd.f32 %v714_v39, %v3014_v34 }
 0x5a6   :  { %2454 = vpow2.f32 %v674_v53 }
 0x5aa   :  { %v2451_v36 = vpop.eup %2450 }
 0x5ab   :  { %v584_v24 = vsel %vm183_vm0, %v2451_v36, 0.0  ;;  %v3055_v44 = vpop.eup %2452 }
 0x5ac   :  { %v585_v5 = vsel %vm378_vm3, %v584_v24, 0.0  ;;  %v768_v48 = vsel %vm294_vm2, %v3055_v44, 0.0  ;;  %v2455_v55 = vpop.eup %2454 }
 0x5ad   :  { %586 = vadd.xlane.f32.xlu1 %v585_v5  ;;  %v676_v7 = vadd.f32 1.0, %v2455_v55  ;;  %v679_v9 = vmul.f32 -0.5, %v2455_v55  ;;  %v682_v35 = vand.u32 2147483647, %v2455_v55 }
 0x5af   :  { %2456 = vlog2.f32 %v676_v7  ;;  %v680_v56 = vadd.f32 1.0, %v679_v9  ;;  %vm683_vm4 = vcmp.lt.f32.partialorder %v682_v35, 0.0004427343 }
 0x5b1   :  { %v681_v58 = vmul.f32 %v2455_v55, %v680_v56 }
 0x5b5   :  { %v2457_v57 = vpop.eup %2456 }
 0x5b6   :  { %v678_v32 = vmul.f32 0.6931472, %v2457_v57 }
 0x5b8   :  { %v684_v61 = vsel %vm683_vm4, %v681_v58, %v678_v32 }
 0x5b9   :  { %v685_v62 = vadd.f32 %v684_v61, %v669_v59 }
 0x5bb   :  { %v686_v63 = vsel %vm670_vm5, %v668_v47, %v685_v62 }
 0x5bc   :  { %2458 = vrcp.f32 %v686_v63  ;;  %vm692_vm13 = vweird.f32 %v686_v63  ;;  %v698_v5 = vand.u32 2147483648, %v686_v63  ;;  %v696_v41 = vand.u32 2147483647, %v686_v63 }
 0x5be   :  { %v699_v49 = vor.u32 1.1754944e-38, %v698_v5  ;;  %vm697_vm4 = vcmp.eq.f32.partialorder %v696_v41, 8.507059e+37 }
 0x5c2   :  { %v2459_v1 = vpop.eup %2458 }
 0x5c3   :  { %v688_v2 = vmul.f32 %v2459_v1, %v686_v63  ;;  %vm693_vm14 = vweird.f32 %v2459_v1  ;;  %v620_v63 = vstv %s619_s17 }
 0x5c4   :  { %vm694_vm15 = vmor %vm692_vm13, %vm693_vm14 }
 0x5c5   :  { %v689_v10 = vsub.f32 1.0, %v688_v2 }
 0x5c6   :  { %718 = vperm.xlu1 %2404, %v708_v25  }
 0x5c7   :  { %v690_v20 = vmul.f32 %v2459_v1, %v689_v10 }
 0x5c9   :  { %v691_v40 = vadd.f32 %v2459_v1, %v690_v20 }
 0x5cb   :  { %v695_v53 = vsel %vm694_vm15, %v2459_v1, %v691_v40 }
 0x5cc   :  { %v700_v7 = vsel %vm697_vm4, %v699_v49, %v695_v53 }
 0x5cd   :  { %v743_v9 = vsel %vm274_vm8, %v700_v7, 0.0 }
 0x5f0   :  { %769 = vadd.xlane.f32.xlu1 %v768_v48 }
 0x620   :  { %v587_v0 = vpop.xlane.xlu1 %586 }
 0x621   :  { %2460 = vrcp.f32 %v587_v0  ;;  %v599_v4 = vand.u32 2147483648, %v587_v0  ;;  %v597_v8 = vand.u32 2147483647, %v587_v0  ;;  %vm593_vm7 = vweird.f32 %v587_v0 }
 0x623   :  { %v600_v15 = vor.u32 1.1754944e-38, %v599_v4  ;;  %vm598_vm10 = vcmp.eq.f32.partialorder %v597_v8, 8.507059e+37 }
 0x627   :  { %v2461_v42 = vpop.eup %2460 }
 0x628   :  { %v589_v17 = vmul.f32 %v2461_v42, %v587_v0  ;;  %vm594_vm6 = vweird.f32 %v2461_v42 }
 0x629   :  { %vm595_vm9 = vmor %vm593_vm7, %vm594_vm6 }
 0x62a   :  { %v590_v3 = vsub.f32 1.0, %v589_v17 }
 0x62c   :  { %v591_v6 = vmul.f32 %v2461_v42, %v590_v3 }
 0x62e   :  { %v592_v12 = vadd.f32 %v2461_v42, %v591_v6 }
 0x630   :  { %v596_v16 = vsel %vm595_vm9, %v2461_v42, %v592_v12 }
 0x631   :  { %v601_v18 = vsel %vm598_vm10, %v600_v15, %v596_v16  ;;  %v3098_v15 = vstv %s3033_s28 }
 0x632   :  { %v602_v22 = vmul.f32 %v601_v18, %v584_v24  ;;  %v735_v24 = vadd.f32 %v731_v43, %v2951_v50  ;;  %v972_v18 = vmul.f32 %v3098_v15, %v2897_v21 }
 0x634   :  { %v605_v36 = vsel %vm604_vm12, %v602_v22, 0.0 }
 0x635   :  { %v607_v25 = vrot.slane %v605_v36, 1 }
 0x637   :  { %v609_v47 = vsel %vm359_vm11, %v607_v25, 0.0 }
 0x638   :  { %610 = vadd.xlane.f32.xlu2 %v609_v47  ;;  %v719_v48 = vpop.permute.xlu1 %718 }
 0x639   :  { %v732_v52 = vadd.f32 %v719_v48, %v3016_v54 }
 0x63b   :  { %v736_v55 = vadd.f32 %v732_v52, %v2947_v45 }
 0x63d   :  { %2462 = vtanh.f32 %v736_v55 }
 0x63e   :  { %2464 = vtanh.f32 %v735_v24 }
 0x640   :  { %744 = vadd.xlane.f32.xlu2 %v743_v9 }
 0x643   :  { %v2463_v34 = vpop.eup %2462 }
 0x644   :  { %816 = vmatpush.msra.mxu3 %v2463_v34  ;;  %v2465_v39 = vpop.eup %2464 }
 0x646   :  { %817 = vmatpush.msra.mxu3 %v2465_v39 }
 0x647   :  { %2244 = vmatmul.msk.f32.vlgmr.msra.gmra.mxu3 %vm186_vm1, %v2847_v33 }
 0x648   :  { %910 = vmatpush.msrb.mxu3 %v3022_v19 }
 0x64a   :  { %911 = vmatpush.msrb.mxu3 %v3025_v23 }
 0x64c   :  { %912 = vmatpush.msrb.mxu3 %v2463_v34 }
 0x64e   :  { %913 = vmatpush.msrb.mxu3 %v2465_v39 }
 0x64f   :  { %2248 = vmatmul.msk.f32.vlgmr.msrb.gmra.mxu3 %vm186_vm1, %v2810_v26 }
 0x657   :  { %2249 = vmatmul.msk.f32.gmra.mxu3 %vm186_vm1, %v2817_v28  ;;  %v786_v28 = vstv %s2237_s15  ;;  %s499_s15 = sadd.f32 %s498_s30, %s292_s1 }
 0x658   :  { %vm3082_vm10 = vcmp.eq.s32.totalorder %v2877_v13, %v786_v28 }
 0x65f   :  { %2250 = vmatmul.msk.f32.gmra.mxu3 %vm186_vm1, %v2824_v29 }
 0x663   :  { %v770_v54 = vpop.xlane.xlu1 %769 }
 0x664   :  { %2466 = vrcp.f32 %v770_v54  ;;  %v782_v56 = vand.u32 2147483648, %v770_v54  ;;  %v780_v35 = vand.u32 2147483647, %v770_v54  ;;  %vm776_vm6 = vweird.f32 %v770_v54 }
 0x665   :  { %2468 = vlog2.f32 %v620_v63 }
 0x666   :  { %v783_v29 = vor.u32 1.1754944e-38, %v782_v56  ;;  %vm781_vm9 = vcmp.eq.f32.partialorder %v780_v35, 8.507059e+37 }
 0x667   :  { %2251 = vmatmul.msk.f32.gmra.mxu3 %vm186_vm1, %v2831_v30 }
 0x66a   :  { %v2467_v33 = vpop.eup %2466 }
 0x66b   :  { %v772_v19 = vmul.f32 %v2467_v33, %v770_v54  ;;  %vm777_vm5 = vweird.f32 %v2467_v33  ;;  %v2469_v3 = vpop.eup %2468 }
 0x66c   :  { %vm778_vm7 = vmor %vm776_vm6, %vm777_vm5 }
 0x66d   :  { %v773_v23 = vsub.f32 1.0, %v772_v19 }
 0x66f   :  { %v774_v57 = vmul.f32 %v2467_v33, %v773_v23  ;;  %2252 = vmatmul.msk.f32.gmra.mxu3 %vm186_vm1, %v2838_v31 }
 0x671   :  { %v775_v26 = vadd.f32 %v2467_v33, %v774_v57 }
 0x673   :  { %v779_v32 = vsel %vm778_vm7, %v2467_v33, %v775_v26 }
 0x674   :  { %v784_v30 = vsel %vm781_vm9, %v783_v29, %v779_v32 }
 0x675   :  { %v785_v59 = vmul.f32 %v3055_v44, %v784_v30  ;;  %v622_v44 = vmul.f32 0.6931472, %v2469_v3 }
 0x677   :  { %v788_v61 = vsel %vm3082_vm10, %v785_v59, 0.0 }
 0x678   :  { %v790_v62 = vrot.slane %v788_v61, 1 }
 0x67a   :  { %v792_v31 = vsel %vm274_vm8, %v790_v62, 0.0 }
 0x67b   :  { %793 = vadd.xlane.f32.xlu0 %v792_v31 }
 0x6ab   :  { %v611_v0 = vpop.xlane.xlu2 %610 }
 0x6ac   :  { %v612_v1 = vrot.slane %v611_v0, 4 }
 0x6ae   :  { %v613_v42 = vadd.f32 %v612_v1, %v611_v0 }
 0x6b0   :  { %v614_v17 = vrot.slane %v613_v42, 2 }
 0x6b2   :  { %v615_v2 = vadd.f32 %v614_v17, %v613_v42  ;;  %v971_v42 = vmul.f32 %v3098_v15, %v2903_v27  ;;  %v969_v17 = vmul.f32 %v3098_v15, %v2912_v46 }
 0x6b3   :  { %v745_v14 = vpop.xlane.xlu2 %744 }
 0x6b4   :  { %v616_v4 = vrot.slane %v615_v2, 1  ;;  %v746_v16 = vrot.slane %v745_v14, 4 }
 0x6b6   :  { %v617_v6 = vadd.f32 %v616_v4, %v615_v2  ;;  %v747_v20 = vadd.f32 %v746_v16, %v745_v14  ;;  %v3151_v14 = vld [vmem:[%s3706_s8 + $0x8] sm:$0xff] }
 0x6b7   :  { %v970_v16 = vmul.f32 %v3151_v14, %v3098_v15 }
 0x6b8   :  { %2308 = vpush %v617_v6  ;;  %v748_v22 = vrot.slane %v747_v20, 2 }
 0x6b9   :  { %2310 = vpush %v622_v44 }
 0x6ba   :  { %v749_v5 = vadd.f32 %v748_v22, %v747_v20 }
 0x6bc   :  { %v750_v25 = vrot.slane %v749_v5, 1 }
 0x6be   :  { %v751_v43 = vadd.f32 %v750_v25, %v749_v5 }
 0x6ca   :  { %v3091_v8 = vpop.f32.mrf.mxu3 }
 0x6cb   :  { %v822_v10 = vsel %vm3082_vm10, %v3091_v8, 0.0 }
 0x6cc   :  { %v823_v12 = vsel %vm359_vm11, %v822_v10, 0.0 }
 0x6cd   :  { %824 = vadd.xlane.f32.xlu2 %v823_v12 }
 0x6d2   :  { %v3106_v52 = vpop.f32.mrf.mxu3 }
 0x6da   :  { %v3111_v9 = vpop.f32.mrf.mxu3 }
 0x6e2   :  { %v921_v54 = vpop.f32.mrf.mxu3 }
 0x6e5   :  { %990 = vperm.xlu2 %2405, %v972_v18  }
 0x6e9   :  { %s2309_s18 = spop %2308 }
 0x6ea   :  { %s625_s4 = sadd.f32 1.1920929e-07, %s2309_s18  ;;  %s2311_s20 = spop %2310  ;;  %v924_v57 = vpop.f32.mrf.mxu3 }
 0x6eb   :  { %s624_s21 = ssub.f32 0.0, %s2311_s20  ;;  %s836_s20 = smul.f32 %s2965_s9, %s3033_s28 }
 0x6ec   :  { %v626_v36 = vstv %s625_s4 }
 0x6ed   :  { %2470 = vlog2.f32 %v626_v36  ;;  %v837_v62 = vstv %s836_s20 }
 0x6ee   :  { %v794_v47 = vpop.xlane.xlu0 %793 }
 0x6ef   :  { %v795_v48 = vrot.slane %v794_v47, 4 }
 0x6f1   :  { %v796_v49 = vadd.f32 %v795_v48, %v794_v47 }
 0x6f2   :  { %v927_v18 = vpop.f32.mrf.mxu3 }
 0x6f3   :  { %v2471_v40 = vpop.eup %2470  ;;  %v797_v21 = vrot.slane %v796_v49, 2  ;;  %v964_v20 = vadd.f32 %v927_v18, %v2862_v38  ;;  %v930_v5 = vadd.f32 %v927_v18, %v2860_v37 }
 0x6f4   :  { %v628_v41 = vmul.f32 0.6931472, %v2471_v40 }
 0x6f5   :  { %v798_v24 = vadd.f32 %v797_v21, %v796_v49  ;;  %v934_v15 = vand.u32 2147483647, %v930_v5  ;;  %vm932_vm13 = vcmp.ne.f32.partialorder %v930_v5, %v930_v5 }
 0x6f6   :  { %2312 = vpush %v628_v41 }
 0x6f7   :  { %2314 = vpush %v751_v43  ;;  %v799_v55 = vrot.slane %v798_v24, 1  ;;  %v935_v40 = vsub.f32 0.0, %v934_v15  ;;  %v3196_v15 = vld [vmem:[%s3705_s7 + $0x8] sm:$0xff] }
 0x6f9   :  { %v800_v39 = vadd.f32 %v799_v55, %v798_v24  ;;  %v936_v41 = vmul.f32 1.442695, %v935_v40 }
 0x727   :  { %s2313_s22 = spop %2312 }
 0x728   :  { %s3102_s23 = ssub.f32 %s624_s21, %s2313_s22  ;;  %s3104_s24 = spop %2314 }
 0x729   :  { %s753_s25 = sadd.f32 1.1920929e-07, %s3104_s24  ;;  %s759_s12 = smul.f32 %s3104_s24, %s3033_s28 }
 0x72a   :  { %s631_s26 = sadd.f32 %s3102_s23, %s3041_s0 }
 0x72b   :  { %v754_v53 = vstv %s753_s25  ;;  %s3159_s28 = ssub.f32 %s3155_s19, %s3029_s27 }
 0x72c   :  { %2472 = vlog2.f32 %v754_v53  ;;  %s2238_s27 = sld [smem:[#allocation4 + $0x2]] }
 0x72d   :  { %s965_s22 = smul.f32 %s2855_s16, %s3159_s28 }
 0x72f   :  { %v966_v22 = vstv %s965_s22 }
 0x730   :  { %v3164_v36 = vadd.f32 %v966_v22, %v964_v20 }
 0x732   :  { %v2473_v7 = vpop.eup %2472  ;;  %v1024_v25 = vsel %vm294_vm2, %v3164_v36, -inf }
 0x733   :  { %v756_v34 = vmul.f32 0.6931472, %v2473_v7  ;;  %v931_v7 = vmax.f32 %v930_v5, 0.0 }
 0x735   :  { %2316 = vpush %v756_v34 }
 0x736   :  { %2318 = vpush %v800_v39 }
 0x740   :  { %v825_v33 = vpop.xlane.xlu2 %824 }
 0x741   :  { %v826_v19 = vrot.slane %v825_v33, 4 }
 0x743   :  { %v827_v23 = vadd.f32 %v826_v19, %v825_v33 }
 0x745   :  { %v828_v56 = vrot.slane %v827_v23, 2 }
 0x747   :  { %v829_v35 = vadd.f32 %v828_v56, %v827_v23 }
 0x748   :  { %v991_v26 = vpop.permute.xlu2 %990 }
 0x749   :  { %v996_v28 = vadd.f32 %v991_v26, %v924_v57  ;;  %v830_v29 = vrot.slane %v829_v35, 1 }
 0x74b   :  { %v1000_v32 = vadd.f32 %v996_v28, %v2941_v11  ;;  %v831_v30 = vadd.f32 %v830_v29, %v829_v35 }
 0x74d   :  { %2474 = vtanh.f32 %v1000_v32  ;;  %2320 = vpush %v831_v30 }
 0x753   :  { %v3114_v58 = vpop.eup %2474 }
 0x754   :  { %1076 = vmatpush.msra.mxu0 %v3114_v58 }
 0x766   :  { %s2317_s2 = spop %2316 }
 0x767   :  { %s758_s3 = ssub.f32 0.0, %s2317_s2  ;;  %s3125_s4 = spop %2318 }
 0x768   :  { %s881_s20 = sadd.f32 1.1920929e-07, %s3125_s4 }
 0x769   :  { %s760_s17 = sadd.f32 %s759_s12, %s758_s3  ;;  %s1098_s3 = smul.f32 %s2965_s9, %s3159_s28 }
 0x76a   :  { %s3291_s4 = sld [smem:[#allocation6 + $0x4]] }
 0x76b   :  { %s3123_s18 = sadd.f32 %s760_s17, %s499_s15 }
 0x770   :  { %s3295_s13 = ssub.f32 %s3291_s4, %s3155_s19 }
 0x771   :  { %s2247_s19 = sld [smem:[#allocation4 + $0x3]] }
 0x77e   :  { %s2321_s21 = spop %2320 }
 0x77f   :  { %v833_v59 = vstv %s2321_s21  ;;  %s2246_s21 = sld [smem:[#allocation2 + $0x3]] }
 0x780   :  { %v834_v61 = vadd.f32 %v833_v59, %v3091_v8  ;;  %v865_v59 = vstv %s2238_s27 }
 0x781   :  { %vm866_vm6 = vcmp.eq.s32.totalorder %v2877_v13, %v865_v59 }
 0x782   :  { %v835_v31 = vadd.f32 %v834_v61, %v2977_v60 }
 0x784   :  { %v838_v63 = vadd.f32 %v837_v62, %v835_v31 }
 0x786   :  { %v839_v0 = vsel %vm183_vm0, %v838_v63, -1e+30 }
 0x787   :  { %v840_v1 = vsel %vm378_vm3, %v839_v0, -inf }
 0x788   :  { %841 = vmax.xlane.f32.xlu0 %v840_v1 }
 0x79c   :  { %985 = vperm.xlu0 %2403, %v971_v42  }
 0x7a4   :  { %975 = vperm.xlu0 %2403, %v969_v17  }
 0x7fb   :  { %v842_v2 = vpop.xlane.xlu0 %841 }
 0x7fc   :  { %v843_v3 = vsub.f32 %v839_v0, %v842_v2 }
 0x7fe   :  { %v844_v4 = vmul.f32 1.442695, %v843_v3 }
 0x800   :  { %2476 = vpow2.f32 %v844_v4 }
 0x806   :  { %v2477_v6 = vpop.eup %2476 }
 0x807   :  { %v3140_v44 = vsel %vm183_vm0, %v2477_v6, 0.0 }
 0x808   :  { %v847_v8 = vsel %vm378_vm3, %v3140_v44, 0.0 }
 0x809   :  { %848 = vadd.xlane.f32.xlu1 %v847_v8 }
 0x80e   :  { %v986_v27 = vpop.permute.xlu0 %985 }
 0x80f   :  { %v995_v10 = vadd.f32 %v986_v27, %v921_v54 }
 0x811   :  { %v999_v46 = vadd.f32 %v995_v10, %v2953_v51 }
 0x813   :  { %2478 = vtanh.f32 %v999_v46 }
 0x814   :  { %2480 = vpow2.f32 %v936_v41 }
 0x816   :  { %v976_v1 = vpop.permute.xlu0 %975 }
 0x817   :  { %v993_v6 = vadd.f32 %v976_v1, %v3106_v52 }
 0x819   :  { %v3145_v12 = vpop.eup %2478 }
 0x81a   :  { %1077 = vmatpush.msra.mxu0 %v3145_v12  ;;  %v2481_v43 = vpop.eup %2480 }
 0x81b   :  { %v938_v47 = vadd.f32 1.0, %v2481_v43  ;;  %v941_v48 = vmul.f32 -0.5, %v2481_v43  ;;  %v944_v53 = vand.u32 2147483647, %v2481_v43 }
 0x81d   :  { %2482 = vlog2.f32 %v938_v47  ;;  %v942_v49 = vadd.f32 1.0, %v941_v48  ;;  %vm945_vm12 = vcmp.lt.f32.partialorder %v944_v53, 0.0004427343 }
 0x81f   :  { %v943_v55 = vmul.f32 %v2481_v43, %v942_v49  ;;  %v3211_v43 = vld [vmem:[%s3705_s7 + $0x18] sm:$0xff]  ;;  %v3219_v49 = vld [vmem:[%s3705_s7 + $0x20] sm:$0x3] }
 0x822   :  { %980 = vperm.xlu1 %2404, %v970_v16  }
 0x823   :  { %v2483_v21 = vpop.eup %2482 }
 0x824   :  { %v940_v24 = vmul.f32 0.6931472, %v2483_v21 }
 0x826   :  { %v946_v34 = vsel %vm945_vm12, %v943_v55, %v940_v24 }
 0x827   :  { %v947_v39 = vadd.f32 %v946_v34, %v931_v7 }
 0x829   :  { %v948_v54 = vsel %vm932_vm13, %v930_v5, %v947_v39 }
 0x82a   :  { %2484 = vrcp.f32 %v948_v54  ;;  %vm954_vm7 = vweird.f32 %v948_v54  ;;  %v960_v17 = vand.u32 2147483648, %v948_v54  ;;  %v958_v4 = vand.u32 2147483647, %v948_v54 }
 0x82c   :  { %v961_v10 = vor.u32 1.1754944e-38, %v960_v17  ;;  %vm959_vm12 = vcmp.eq.f32.partialorder %v958_v4, 8.507059e+37 }
 0x830   :  { %v2485_v19 = vpop.eup %2484 }
 0x831   :  { %v950_v57 = vmul.f32 %v2485_v19, %v948_v54  ;;  %vm955_vm9 = vweird.f32 %v2485_v19 }
 0x832   :  { %vm956_vm10 = vmor %vm954_vm7, %vm955_vm9 }
 0x833   :  { %v951_v32 = vsub.f32 1.0, %v950_v57 }
 0x835   :  { %v952_v63 = vmul.f32 %v2485_v19, %v951_v32 }
 0x837   :  { %v953_v3 = vadd.f32 %v2485_v19, %v952_v63 }
 0x839   :  { %v957_v16 = vsel %vm956_vm10, %v2485_v19, %v953_v3  ;;  %v1048_v19 = vstv %s2246_s21 }
 0x83a   :  { %v962_v20 = vsel %vm959_vm12, %v961_v10, %v957_v16  ;;  %vm3225_vm13 = vcmp.eq.s32.totalorder %v2877_v13, %v1048_v19 }
 0x83b   :  { %v1005_v22 = vsel %vm274_vm8, %v962_v20, 0.0 }
 0x84c   :  { %1025 = vmax.xlane.f32.xlu1 %v1024_v25  ;;  %v3189_v25 = vld [vmem:[%s3705_s7] sm:$0xff] }
 0x87c   :  { %v849_v33 = vpop.xlane.xlu1 %848 }
 0x87d   :  { %2486 = vrcp.f32 %v849_v33  ;;  %v861_v26 = vand.u32 2147483648, %v849_v33  ;;  %v859_v29 = vand.u32 2147483647, %v849_v33  ;;  %vm855_vm15 = vweird.f32 %v849_v33 }
 0x87f   :  { %v862_v61 = vor.u32 1.1754944e-38, %v861_v26  ;;  %vm860_vm5 = vcmp.eq.f32.partialorder %v859_v29, 8.507059e+37  ;;  %v3236_v26 = vstv %s3159_s28 }
 0x883   :  { %v2487_v23 = vpop.eup %2486 }
 0x884   :  { %v851_v56 = vmul.f32 %v2487_v23, %v849_v33  ;;  %vm856_vm14 = vweird.f32 %v2487_v23 }
 0x885   :  { %vm857_vm4 = vmor %vm855_vm15, %vm856_vm14 }
 0x886   :  { %v852_v35 = vsub.f32 1.0, %v851_v56 }
 0x888   :  { %v853_v28 = vmul.f32 %v2487_v23, %v852_v35 }
 0x88a   :  { %v854_v30 = vadd.f32 %v2487_v23, %v853_v28  ;;  %v3241_v28 = vld [vmem:[%s3706_s8 + $0x18] sm:$0xff] }
 0x88b   :  { %v1234_v29 = vmul.f32 %v3241_v28, %v3236_v26 }
 0x88c   :  { %v858_v62 = vsel %vm857_vm4, %v2487_v23, %v854_v30 }
 0x88d   :  { %v863_v31 = vsel %vm860_vm5, %v862_v61, %v858_v62 }
 0x88e   :  { %v864_v0 = vmul.f32 %v863_v31, %v3140_v44  ;;  %v997_v44 = vadd.f32 %v993_v6, %v2951_v50 }
 0x890   :  { %v867_v42 = vsel %vm866_vm6, %v864_v0, 0.0 }
 0x891   :  { %v869_v2 = vrot.slane %v867_v42, 1 }
 0x893   :  { %v871_v8 = vsel %vm359_vm11, %v869_v2, 0.0 }
 0x894   :  { %872 = vadd.xlane.f32.xlu2 %v871_v8  ;;  %v981_v27 = vpop.permute.xlu1 %980 }
 0x895   :  { %v994_v46 = vadd.f32 %v981_v27, %v3111_v9  ;;  %v3180_v9 = vld [vmem:[%s3708_s10] sm:$0x3] }
 0x897   :  { %v998_v18 = vadd.f32 %v994_v46, %v2947_v45 }
 0x899   :  { %2488 = vtanh.f32 %v998_v18 }
 0x89a   :  { %2490 = vtanh.f32 %v997_v44 }
 0x89c   :  { %1006 = vadd.xlane.f32.xlu2 %v1005_v22 }
 0x89f   :  { %v2489_v52 = vpop.eup %2488 }
 0x8a0   :  { %1078 = vmatpush.msra.mxu0 %v2489_v52  ;;  %v2491_v5 = vpop.eup %2490 }
 0x8a2   :  { %1079 = vmatpush.msra.mxu0 %v2491_v5 }
 0x8a3   :  { %2253 = vmatmul.msk.f32.vlgmr.msra.gmra.mxu0 %vm186_vm1, %v3180_v9 }
 0x8a4   :  { %1172 = vmatpush.msrb.mxu0 %v3114_v58  ;;  %v3203_v58 = vld [vmem:[%s3705_s7 + $0x10] sm:$0xff] }
 0x8a6   :  { %1173 = vmatpush.msrb.mxu0 %v3145_v12 }
 0x8a8   :  { %1174 = vmatpush.msrb.mxu0 %v2489_v52 }
 0x8aa   :  { %1175 = vmatpush.msrb.mxu0 %v2491_v5 }
 0x8ab   :  { %2257 = vmatmul.msk.f32.vlgmr.msrb.gmra.mxu0 %vm186_vm1, %v3189_v25 }
 0x8b3   :  { %2258 = vmatmul.msk.f32.gmra.mxu0 %vm186_vm1, %v3196_v15 }
 0x8bb   :  { %2259 = vmatmul.msk.f32.gmra.mxu0 %vm186_vm1, %v3203_v58 }
 0x8bf   :  { %v1026_v12 = vpop.xlane.xlu1 %1025 }
 0x8c0   :  { %v1027_v40 = vsub.f32 %v3164_v36, %v1026_v12  ;;  %v882_v36 = vstv %s881_s20 }
 0x8c2   :  { %v1028_v41 = vmul.f32 1.442695, %v1027_v40 }
 0x8c3   :  { %2260 = vmatmul.msk.f32.gmra.mxu0 %vm186_vm1, %v3211_v43 }
 0x8c4   :  { %2492 = vpow2.f32 %v1028_v41 }
 0x8c5   :  { %2494 = vlog2.f32 %v882_v36 }
 0x8ca   :  { %v2493_v47 = vpop.eup %2492 }
 0x8cb   :  { %v1030_v48 = vsel %vm294_vm2, %v2493_v47, 0.0  ;;  %2261 = vmatmul.msk.f32.gmra.mxu0 %vm186_vm1, %v3219_v49  ;;  %v2495_v34 = vpop.eup %2494 }
 0x8cc   :  { %1031 = vadd.xlane.f32.xlu0 %v1030_v48  ;;  %v884_v33 = vmul.f32 0.6931472, %v2495_v34 }
 0x907   :  { %v873_v21 = vpop.xlane.xlu2 %872 }
 0x908   :  { %v874_v53 = vrot.slane %v873_v21, 4 }
 0x90a   :  { %v875_v24 = vadd.f32 %v874_v53, %v873_v21 }
 0x90c   :  { %v876_v55 = vrot.slane %v875_v24, 2 }
 0x90e   :  { %v877_v7 = vadd.f32 %v876_v55, %v875_v24 }
 0x90f   :  { %v1007_v32 = vpop.xlane.xlu2 %1006 }
 0x910   :  { %v878_v39 = vrot.slane %v877_v7, 1  ;;  %v1008_v30 = vrot.slane %v1007_v32, 4 }
 0x912   :  { %v879_v54 = vadd.f32 %v878_v39, %v877_v7  ;;  %v1009_v61 = vadd.f32 %v1008_v30, %v1007_v32 }
 0x914   :  { %2322 = vpush %v879_v54  ;;  %v1010_v62 = vrot.slane %v1009_v61, 2 }
 0x915   :  { %2324 = vpush %v884_v33 }
 0x916   :  { %v1011_v42 = vadd.f32 %v1010_v62, %v1009_v61 }
 0x918   :  { %v1012_v4 = vrot.slane %v1011_v42, 1 }
 0x91a   :  { %v1013_v44 = vadd.f32 %v1012_v4, %v1011_v42 }
 0x920   :  { %v3229_v56 = vpop.f32.mrf.mxu0 }
 0x921   :  { %v1084_v57 = vsel %vm3225_vm13, %v3229_v56, 0.0 }
 0x922   :  { %v1085_v35 = vsel %vm359_vm11, %v1084_v57, 0.0 }
 0x923   :  { %1086 = vadd.xlane.f32.xlu2 %v1085_v35 }
 0x928   :  { %v3248_v5 = vpop.f32.mrf.mxu0 }
 0x930   :  { %v3255_v40 = vpop.f32.mrf.mxu0 }
 0x938   :  { %v3257_v48 = vpop.f32.mrf.mxu0 }
 0x93b   :  { %1252 = vperm.xlu2 %2405, %v1234_v29  }
 0x93f   :  { %v1032_v59 = vpop.xlane.xlu0 %1031 }
 0x940   :  { %2496 = vrcp.f32 %v1032_v59  ;;  %v1044_v17 = vand.u32 2147483648, %v1032_v59  ;;  %v1042_v3 = vand.u32 2147483647, %v1032_v59  ;;  %vm1038_vm15 = vweird.f32 %v1032_v59  ;;  %v1186_v21 = vpop.f32.mrf.mxu0 }
 0x942   :  { %v1045_v8 = vor.u32 1.1754944e-38, %v1044_v17  ;;  %vm1043_vm5 = vcmp.eq.f32.partialorder %v1042_v3, 8.507059e+37 }
 0x945   :  { %s2323_s14 = spop %2322 }
 0x946   :  { %v2497_v31 = vpop.eup %2496  ;;  %s887_s22 = sadd.f32 1.1920929e-07, %s2323_s14  ;;  %s2325_s27 = spop %2324 }
 0x947   :  { %v1034_v63 = vmul.f32 %v2497_v31, %v1032_v59  ;;  %vm1039_vm14 = vweird.f32 %v2497_v31  ;;  %s886_s24 = ssub.f32 0.0, %s2325_s27  ;;  %s1227_s14 = smul.f32 %s2855_s16, %s3295_s13 }
 0x948   :  { %v888_v0 = vstv %s887_s22  ;;  %vm1040_vm4 = vmor %vm1038_vm15, %vm1039_vm14  ;;  %s2255_s22 = sld [smem:[#allocation2 + $0x4]] }
 0x949   :  { %v1035_v1 = vsub.f32 1.0, %v1034_v63  ;;  %2498 = vlog2.f32 %v888_v0  ;;  %v1099_v63 = vstv %s1098_s3  ;;  %s3385_s3 = sld [smem:[#allocation6 + $0x5]] }
 0x94b   :  { %v1036_v2 = vmul.f32 %v2497_v31, %v1035_v1 }
 0x94d   :  { %v1037_v6 = vadd.f32 %v2497_v31, %v1036_v2  ;;  %v3280_v2 = vld [vmem:[%s3706_s8 + $0x10] sm:$0xff] }
 0x94e   :  { %v1233_v3 = vmul.f32 %v3280_v2, %v3236_v26 }
 0x94f   :  { %v2499_v27 = vpop.eup %2498  ;;  %v1041_v10 = vsel %vm1040_vm4, %v2497_v31, %v1037_v6  ;;  %v1189_v6 = vpop.f32.mrf.mxu0 }
 0x950   :  { %v890_v46 = vmul.f32 0.6931472, %v2499_v27  ;;  %v1046_v16 = vsel %vm1043_vm5, %v1045_v8, %v1041_v10  ;;  %v1226_v8 = vadd.f32 %v1189_v6, %v2862_v38  ;;  %v1228_v27 = vstv %s1227_s14 }
 0x951   :  { %v1047_v18 = vmul.f32 %v2493_v47, %v1046_v16 }
 0x952   :  { %2326 = vpush %v890_v46  ;;  %v1229_v10 = vadd.f32 %v1228_v27, %v1226_v8 }
 0x953   :  { %2328 = vpush %v1013_v44  ;;  %v1050_v20 = vsel %vm3225_vm13, %v1047_v18, 0.0 }
 0x954   :  { %v1052_v22 = vrot.slane %v1050_v20, 1  ;;  %v1286_v46 = vsel %vm294_vm2, %v1229_v10, -inf }
 0x956   :  { %v1054_v52 = vsel %vm274_vm8, %v1052_v22, 0.0 }
 0x957   :  { %1055 = vadd.xlane.f32.xlu1 %v1054_v52 }
 0x983   :  { %s2327_s25 = spop %2326 }
 0x984   :  { %s892_s5 = ssub.f32 %s886_s24, %s2327_s25  ;;  %s2329_s6 = spop %2328 }
 0x985   :  { %s1015_s29 = sadd.f32 1.1920929e-07, %s2329_s6  ;;  %s1021_s23 = smul.f32 %s2329_s6, %s3159_s28 }
 0x986   :  { %s3253_s1 = sadd.f32 %s892_s5, %s631_s26 }
 0x987   :  { %v1016_v12 = vstv %s1015_s29 }
 0x988   :  { %2500 = vlog2.f32 %v1016_v12 }
 0x98e   :  { %v2501_v41 = vpop.eup %2500 }
 0x98f   :  { %v1018_v47 = vmul.f32 0.6931472, %v2501_v41 }
 0x991   :  { %2330 = vpush %v1018_v47 }
 0x996   :  { %v1087_v36 = vpop.xlane.xlu2 %1086 }
 0x997   :  { %v1088_v34 = vrot.slane %v1087_v36, 4 }
 0x999   :  { %v1089_v39 = vadd.f32 %v1088_v34, %v1087_v36 }
 0x99b   :  { %v1090_v54 = vrot.slane %v1089_v39, 2 }
 0x99d   :  { %v1091_v57 = vadd.f32 %v1090_v54, %v1089_v39  ;;  %v1192_v39 = vadd.f32 %v1189_v6, %v2860_v37 }
 0x99e   :  { %v1253_v53 = vpop.permute.xlu2 %1252 }
 0x99f   :  { %v1258_v24 = vadd.f32 %v1253_v53, %v1186_v21  ;;  %v1092_v32 = vrot.slane %v1091_v57, 1  ;;  %v1232_v21 = vmul.f32 %v3151_v14, %v3236_v26  ;;  %vm1194_vm7 = vcmp.ne.f32.partialorder %v1192_v39, %v1192_v39 }
 0x9a1   :  { %v1262_v55 = vadd.f32 %v1258_v24, %v2941_v11  ;;  %v1093_v61 = vadd.f32 %v1092_v32, %v1091_v57 }
 0x9a3   :  { %2502 = vtanh.f32 %v1262_v55 }
 0x9a9   :  { %v3260_v7 = vpop.eup %2502 }
 0x9aa   :  { %1338 = vmatpush.msrb.mxu1 %v3260_v7 }
 0x9c2   :  { %s2331_s0 = spop %2330 }
 0x9c3   :  { %s1020_s26 = ssub.f32 0.0, %s2331_s0 }
 0x9c5   :  { %s3264_s30 = sadd.f32 %s1021_s23, %s1020_s26 }
 0x9c7   :  { %s1023_s2 = sadd.f32 %s3264_s30, %s3123_s18 }
 0x9c8   :  { %s2256_s18 = sld [smem:[#allocation4 + $0x4]] }
 0x9c9   :  { %s2264_s30 = sld [smem:[#allocation2 + $0x5]] }
 0x9ca   :  { %v1056_v33 = vpop.xlane.xlu1 %1055 }
 0x9cb   :  { %v1057_v19 = vrot.slane %v1056_v33, 4 }
 0x9cd   :  { %v1058_v23 = vadd.f32 %v1057_v19, %v1056_v33 }
 0x9cf   :  { %v1059_v35 = vrot.slane %v1058_v23, 2 }
 0x9d1   :  { %v1060_v29 = vadd.f32 %v1059_v35, %v1058_v23 }
 0x9d3   :  { %v1061_v30 = vrot.slane %v1060_v29, 1 }
 0x9d5   :  { %v1062_v59 = vadd.f32 %v1061_v30, %v1060_v29 }
 0x9d7   :  { %2332 = vpush %v1062_v59 }
 0x9d8   :  { %2334 = vpush %v1093_v61 }
 0xa08   :  { %s3268_s12 = spop %2332 }
 0xa09   :  { %s2335_s15 = spop %2334  ;;  %s1143_s27 = sadd.f32 1.1920929e-07, %s3268_s12 }
 0xa0a   :  { %v1095_v62 = vstv %s2335_s15  ;;  %s3389_s15 = ssub.f32 %s3385_s3, %s3291_s4  ;;  %s1360_s4 = smul.f32 %s2965_s9, %s3295_s13 }
 0xa0b   :  { %v1096_v31 = vadd.f32 %v1095_v62, %v3229_v56  ;;  %v3287_v56 = vld [vmem:[%s3706_s8] sm:$0xff]  ;;  %v1193_v62 = vmax.f32 %v1192_v39, 0.0 }
 0xa0c   :  { %v1231_v4 = vmul.f32 %v3287_v56, %v3236_v26  ;;  %s1489_s17 = smul.f32 %s2855_s16, %s3389_s15 }
 0xa0d   :  { %v1097_v0 = vadd.f32 %v1096_v31, %v2977_v60 }
 0xa0f   :  { %v1100_v1 = vadd.f32 %v1099_v63, %v1097_v0 }
 0xa11   :  { %v1101_v42 = vsel %vm183_vm0, %v1100_v1, -1e+30 }
 0xa12   :  { %v1102_v17 = vsel %vm378_vm3, %v1101_v42, -inf }
 0xa13   :  { %1103 = vmax.xlane.f32.xlu0 %v1102_v17 }
 0xa27   :  { %1247 = vperm.xlu0 %2403, %v1233_v3  }
 0xa2f   :  { %1237 = vperm.xlu0 %2403, %v1231_v4  }
 0xa59   :  { %1287 = vmax.xlane.f32.xlu0 %v1286_v46 }
 0xa86   :  { %v1104_v16 = vpop.xlane.xlu0 %1103 }
 0xa87   :  { %v1105_v44 = vsub.f32 %v1101_v42, %v1104_v16 }
 0xa89   :  { %v1106_v18 = vmul.f32 1.442695, %v1105_v44  ;;  %v1127_v44 = vstv %s2247_s19 }
 0xa8a   :  { %vm1128_vm14 = vcmp.eq.s32.totalorder %v2877_v13, %v1127_v44 }
 0xa8b   :  { %2504 = vpow2.f32 %v1106_v18 }
 0xa91   :  { %v2505_v20 = vpop.eup %2504 }
 0xa92   :  { %v3303_v22 = vsel %vm183_vm0, %v2505_v20, 0.0 }
 0xa93   :  { %v1109_v52 = vsel %vm378_vm3, %v3303_v22, 0.0 }
 0xa94   :  { %1110 = vadd.xlane.f32.xlu1 %v1109_v52 }
 0xa99   :  { %v1248_v12 = vpop.permute.xlu0 %1247 }
 0xa9a   :  { %v1257_v41 = vadd.f32 %v1248_v12, %v3257_v48  ;;  %v1196_v48 = vand.u32 2147483647, %v1192_v39 }
 0xa9c   :  { %v1261_v47 = vadd.f32 %v1257_v41, %v2953_v51  ;;  %v1197_v19 = vsub.f32 0.0, %v1196_v48 }
 0xa9e   :  { %2506 = vtanh.f32 %v1261_v47  ;;  %v1198_v23 = vmul.f32 1.442695, %v1197_v19 }
 0xaa1   :  { %v1238_v53 = vpop.permute.xlu0 %1237 }
 0xaa4   :  { %v3309_v36 = vpop.eup %2506 }
 0xaa5   :  { %1339 = vmatpush.msrb.mxu1 %v3309_v36 }
 0xaad   :  { %1242 = vperm.xlu1 %2404, %v1232_v21  }
 0xacc   :  { %v1288_v24 = vpop.xlane.xlu0 %1287 }
 0xacd   :  { %v1289_v55 = vsub.f32 %v1229_v10, %v1288_v24 }
 0xacf   :  { %v1290_v34 = vmul.f32 1.442695, %v1289_v55 }
 0xad1   :  { %2508 = vpow2.f32 %v1290_v34 }
 0xad2   :  { %2510 = vpow2.f32 %v1198_v23 }
 0xad7   :  { %v3315_v54 = vpop.eup %2508 }
 0xad8   :  { %v1292_v33 = vsel %vm294_vm2, %v3315_v54, 0.0  ;;  %v2511_v57 = vpop.eup %2510 }
 0xad9   :  { %1293 = vadd.xlane.f32.xlu1 %v1292_v33  ;;  %v1200_v26 = vadd.f32 1.0, %v2511_v57  ;;  %v1203_v35 = vmul.f32 -0.5, %v2511_v57  ;;  %v1206_v30 = vand.u32 2147483647, %v2511_v57 }
 0xadb   :  { %2512 = vlog2.f32 %v1200_v26  ;;  %v1204_v29 = vadd.f32 1.0, %v1203_v35  ;;  %vm1207_vm6 = vcmp.lt.f32.partialorder %v1206_v30, 0.0004427343 }
 0xadd   :  { %v1205_v61 = vmul.f32 %v2511_v57, %v1204_v29 }
 0xae1   :  { %v2513_v32 = vpop.eup %2512 }
 0xae2   :  { %v1202_v59 = vmul.f32 0.6931472, %v2513_v32 }
 0xae4   :  { %v1208_v31 = vsel %vm1207_vm6, %v1205_v61, %v1202_v59 }
 0xae5   :  { %v1209_v63 = vadd.f32 %v1208_v31, %v1193_v62  ;;  %v1310_v31 = vstv %s2255_s22 }
 0xae7   :  { %v1210_v0 = vsel %vm1194_vm7, %v1192_v39, %v1209_v63  ;;  %v1255_v39 = vadd.f32 %v1238_v53, %v3248_v5 }
 0xae8   :  { %2514 = vrcp.f32 %v1210_v0  ;;  %vm1216_vm15 = vweird.f32 %v1210_v0  ;;  %v1222_v21 = vand.u32 2147483648, %v1210_v0  ;;  %v1220_v34 = vand.u32 2147483647, %v1210_v0 }
 0xaea   :  { %v1223_v19 = vor.u32 1.1754944e-38, %v1222_v21  ;;  %vm1221_vm6 = vcmp.eq.f32.partialorder %v1220_v34, 8.507059e+37 }
 0xaee   :  { %v2515_v42 = vpop.eup %2514 }
 0xaef   :  { %v1212_v4 = vmul.f32 %v2515_v42, %v1210_v0  ;;  %vm1217_vm4 = vweird.f32 %v2515_v42 }
 0xaf0   :  { %vm1218_vm5 = vmor %vm1216_vm15, %vm1217_vm4 }
 0xaf1   :  { %v1213_v46 = vsub.f32 1.0, %v1212_v4 }
 0xaf3   :  { %v1214_v12 = vmul.f32 %v2515_v42, %v1213_v46  ;;  %v1144_v46 = vstv %s1143_s27 }
 0xaf5   :  { %v1215_v55 = vadd.f32 %v2515_v42, %v1214_v12 }
 0xaf7   :  { %v1219_v57 = vsel %vm1218_vm5, %v2515_v42, %v1215_v55 }
 0xaf8   :  { %v1224_v35 = vsel %vm1221_vm6, %v1223_v19, %v1219_v57 }
 0xaf9   :  { %v1267_v29 = vsel %vm274_vm8, %v1224_v35, 0.0 }
 0xb07   :  { %v1111_v1 = vpop.xlane.xlu1 %1110 }
 0xb08   :  { %2516 = vrcp.f32 %v1111_v1  ;;  %v1123_v8 = vand.u32 2147483648, %v1111_v1  ;;  %v1121_v10 = vand.u32 2147483647, %v1111_v1  ;;  %vm1117_vm10 = vweird.f32 %v1111_v1 }
 0xb0a   :  { %v1124_v18 = vor.u32 1.1754944e-38, %v1123_v8  ;;  %vm1122_vm13 = vcmp.eq.f32.partialorder %v1121_v10, 8.507059e+37  ;;  %v3351_v8 = vstv %s3295_s13 }
 0xb0b   :  { %v1493_v10 = vmul.f32 %v3287_v56, %v3351_v8  ;;  %v1495_v34 = vmul.f32 %v3280_v2, %v3351_v8 }
 0xb0e   :  { %v2517_v17 = vpop.eup %2516 }
 0xb0f   :  { %v1113_v3 = vmul.f32 %v2517_v17, %v1111_v1  ;;  %vm1118_vm9 = vweird.f32 %v2517_v17 }
 0xb10   :  { %vm1119_vm12 = vmor %vm1117_vm10, %vm1118_vm9 }
 0xb11   :  { %v1114_v6 = vsub.f32 1.0, %v1113_v3 }
 0xb13   :  { %v1115_v27 = vmul.f32 %v2517_v17, %v1114_v6 }
 0xb15   :  { %v1116_v16 = vadd.f32 %v2517_v17, %v1115_v27  ;;  %v1496_v27 = vmul.f32 %v3241_v28, %v3351_v8 }
 0xb17   :  { %v1120_v20 = vsel %vm1119_vm12, %v2517_v17, %v1116_v16 }
 0xb18   :  { %v1125_v52 = vsel %vm1122_vm13, %v1124_v18, %v1120_v20  ;;  %vm3342_vm13 = vcmp.eq.s32.totalorder %v2877_v13, %v1310_v31 }
 0xb19   :  { %v1126_v41 = vmul.f32 %v1125_v52, %v3303_v22  ;;  %v1259_v22 = vadd.f32 %v1255_v39, %v2951_v50 }
 0xb1b   :  { %v1129_v47 = vsel %vm1128_vm14, %v1126_v41, 0.0 }
 0xb1c   :  { %v1131_v24 = vrot.slane %v1129_v47, 1 }
 0xb1e   :  { %v1133_v48 = vsel %vm359_vm11, %v1131_v24, 0.0 }
 0xb1f   :  { %1134 = vadd.xlane.f32.xlu2 %v1133_v48  ;;  %v1243_v33 = vpop.permute.xlu1 %1242 }
 0xb20   :  { %v1256_v23 = vadd.f32 %v1243_v33, %v3255_v40 }
 0xb22   :  { %v1260_v26 = vadd.f32 %v1256_v23, %v2947_v45 }
 0xb24   :  { %2518 = vtanh.f32 %v1260_v26 }
 0xb25   :  { %2520 = vtanh.f32 %v1259_v22 }
 0xb27   :  { %1268 = vadd.xlane.f32.xlu2 %v1267_v29 }
 0xb2a   :  { %v2519_v5 = vpop.eup %2518 }
 0xb2b   :  { %1340 = vmatpush.msrb.mxu1 %v2519_v5  ;;  %v2521_v53 = vpop.eup %2520 }
 0xb2d   :  { %1341 = vmatpush.msrb.mxu1 %v2521_v53 }
 0xb2e   :  { %2262 = vmatmul.msk.f32.vlgmr.msrb.gmra.mxu1 %vm186_vm1, %v3180_v9 }
 0xb2f   :  { %1434 = vmatpush.msra.mxu1 %v3260_v7 }
 0xb31   :  { %1435 = vmatpush.msra.mxu1 %v3309_v36 }
 0xb33   :  { %1436 = vmatpush.msra.mxu1 %v2519_v5 }
 0xb35   :  { %1437 = vmatpush.msra.mxu1 %v2521_v53 }
 0xb36   :  { %2266 = vmatmul.msk.f32.vlgmr.msra.gmra.mxu1 %vm186_vm1, %v3189_v25 }
 0xb3e   :  { %2267 = vmatmul.msk.f32.gmra.mxu1 %vm186_vm1, %v3196_v15 }
 0xb46   :  { %2268 = vmatmul.msk.f32.gmra.mxu1 %vm186_vm1, %v3203_v58 }
 0xb4c   :  { %v1294_v40 = vpop.xlane.xlu1 %1293 }
 0xb4d   :  { %2522 = vrcp.f32 %v1294_v40  ;;  %v1306_v30 = vand.u32 2147483648, %v1294_v40  ;;  %v1304_v61 = vand.u32 2147483647, %v1294_v40  ;;  %vm1300_vm9 = vweird.f32 %v1294_v40 }
 0xb4e   :  { %2269 = vmatmul.msk.f32.gmra.mxu1 %vm186_vm1, %v3211_v43  ;;  %2524 = vlog2.f32 %v1144_v46 }
 0xb4f   :  { %v1307_v63 = vor.u32 1.1754944e-38, %v1306_v30  ;;  %vm1305_vm12 = vcmp.eq.f32.partialorder %v1304_v61, 8.507059e+37 }
 0xb53   :  { %v2523_v7 = vpop.eup %2522 }
 0xb54   :  { %v1296_v32 = vmul.f32 %v2523_v7, %v1294_v40  ;;  %vm1301_vm7 = vweird.f32 %v2523_v7  ;;  %v2525_v52 = vpop.eup %2524 }
 0xb55   :  { %vm1302_vm10 = vmor %vm1300_vm9, %vm1301_vm7  ;;  %v1146_v47 = vmul.f32 0.6931472, %v2525_v52 }
 0xb56   :  { %v1297_v36 = vsub.f32 1.0, %v1296_v32  ;;  %2270 = vmatmul.msk.f32.gmra.mxu1 %vm186_vm1, %v3219_v49 }
 0xb58   :  { %v1298_v59 = vmul.f32 %v2523_v7, %v1297_v36 }
 0xb5a   :  { %v1299_v62 = vadd.f32 %v2523_v7, %v1298_v59 }
 0xb5c   :  { %v1303_v0 = vsel %vm1302_vm10, %v2523_v7, %v1299_v62 }
 0xb5d   :  { %v1308_v1 = vsel %vm1305_vm12, %v1307_v63, %v1303_v0 }
 0xb5e   :  { %v1309_v17 = vmul.f32 %v3315_v54, %v1308_v1 }
 0xb60   :  { %v1312_v3 = vsel %vm3342_vm13, %v1309_v17, 0.0 }
 0xb61   :  { %v1314_v4 = vrot.slane %v1312_v3, 1 }
 0xb63   :  { %v1316_v6 = vsel %vm274_vm8, %v1314_v4, 0.0 }
 0xb64   :  { %1317 = vadd.xlane.f32.xlu0 %v1316_v6 }
 0xb78   :  { %1514 = vperm.xlu0 %2403, %v1496_v27  }
 0xb80   :  { %1499 = vperm.xlu0 %2403, %v1493_v10  }
 0xb92   :  { %v1135_v54 = vpop.xlane.xlu2 %1134 }
 0xb93   :  { %v1136_v16 = vrot.slane %v1135_v54, 4 }
 0xb95   :  { %v1137_v44 = vadd.f32 %v1136_v16, %v1135_v54 }
 0xb97   :  { %v1138_v18 = vrot.slane %v1137_v44, 2 }
 0xb99   :  { %v1139_v20 = vadd.f32 %v1138_v18, %v1137_v44 }
 0xb9a   :  { %v1269_v39 = vpop.xlane.xlu2 %1268 }
 0xb9b   :  { %v1140_v12 = vrot.slane %v1139_v20, 1  ;;  %v1270_v48 = vrot.slane %v1269_v39, 4 }
 0xb9d   :  { %v1141_v41 = vadd.f32 %v1140_v12, %v1139_v20  ;;  %v1271_v19 = vadd.f32 %v1270_v48, %v1269_v39 }
 0xb9f   :  { %2336 = vpush %v1141_v41  ;;  %v1272_v23 = vrot.slane %v1271_v19, 2 }
 0xba0   :  { %2338 = vpush %v1146_v47  ;;  %v1490_v47 = vstv %s1489_s17 }
 0xba1   :  { %v1273_v26 = vadd.f32 %v1272_v23, %v1271_v19  ;;  %v1361_v19 = vstv %s1360_s4 }
 0xba3   :  { %v1274_v35 = vrot.slane %v1273_v26, 1 }
 0xba5   :  { %v1275_v53 = vadd.f32 %v1274_v35, %v1273_v26 }
 0xbab   :  { %v3358_v21 = vpop.f32.mrf.mxu1 }
 0xbac   :  { %v1346_v24 = vsel %vm3342_vm13, %v3358_v21, 0.0 }
 0xbad   :  { %v1347_v55 = vsel %vm359_vm11, %v1346_v24, 0.0 }
 0xbae   :  { %1348 = vadd.xlane.f32.xlu2 %v1347_v55 }
 0xbb3   :  { %v3366_v33 = vpop.f32.mrf.mxu1 }
 0xbbb   :  { %v3368_v22 = vpop.f32.mrf.mxu1 }
 0xbc3   :  { %v1445_v40 = vpop.f32.mrf.mxu1 }
 0xbc6   :  { %1509 = vperm.xlu2 %2405, %v1495_v34  }
 0xbcb   :  { %v1448_v32 = vpop.f32.mrf.mxu1 }
 0xbd0   :  { %s2337_s24 = spop %2336 }
 0xbd1   :  { %s1149_s25 = sadd.f32 1.1920929e-07, %s2337_s24  ;;  %s2339_s5 = spop %2338 }
 0xbd2   :  { %s1148_s6 = ssub.f32 0.0, %s2339_s5 }
 0xbd3   :  { %v1150_v57 = vstv %s1149_s25  ;;  %v1451_v41 = vpop.f32.mrf.mxu1 }
 0xbd4   :  { %2526 = vlog2.f32 %v1150_v57  ;;  %v1488_v24 = vadd.f32 %v1451_v41, %v2862_v38 }
 0xbd6   :  { %v1491_v55 = vadd.f32 %v1490_v47, %v1488_v24 }
 0xbd7   :  { %v1318_v7 = vpop.xlane.xlu0 %1317 }
 0xbd8   :  { %v1319_v62 = vrot.slane %v1318_v7, 4  ;;  %v1548_v34 = vsel %vm294_vm2, %v1491_v55, -inf }
 0xbd9   :  { %1549 = vmax.xlane.f32.xlu0 %v1548_v34 }
 0xbda   :  { %v2527_v29 = vpop.eup %2526  ;;  %v1320_v31 = vadd.f32 %v1319_v62, %v1318_v7 }
 0xbdb   :  { %v1152_v5 = vmul.f32 0.6931472, %v2527_v29 }
 0xbdc   :  { %v1321_v63 = vrot.slane %v1320_v31, 2 }
 0xbdd   :  { %2340 = vpush %v1152_v5 }
 0xbde   :  { %2342 = vpush %v1275_v53  ;;  %v1322_v1 = vadd.f32 %v1321_v63, %v1320_v31  ;;  %v1454_v63 = vadd.f32 %v1451_v41, %v2860_v37 }
 0xbe0   :  { %v1323_v42 = vrot.slane %v1322_v1, 1  ;;  %vm1456_vm15 = vcmp.ne.f32.partialorder %v1454_v63, %v1454_v63 }
 0xbe2   :  { %v1324_v4 = vadd.f32 %v1323_v42, %v1322_v1  ;;  %v1458_v1 = vand.u32 2147483647, %v1454_v63 }
 0xbe4   :  { %v1459_v42 = vsub.f32 0.0, %v1458_v1 }
 0xbea   :  { %v1515_v36 = vpop.permute.xlu0 %1514 }
 0xbeb   :  { %v1520_v30 = vadd.f32 %v1515_v36, %v1448_v32  ;;  %v1494_v32 = vmul.f32 %v3151_v14, %v3351_v8  ;;  %v3424_v8 = vstv %s3389_s15 }
 0xbed   :  { %v1524_v59 = vadd.f32 %v1520_v30, %v2941_v11 }
 0xbef   :  { %2528 = vtanh.f32 %v1524_v59 }
 0xbf2   :  { %v3416_v36 = vpop.permute.xlu0 %1499 }
 0xbf5   :  { %v3371_v61 = vpop.eup %2528 }
 0xbf6   :  { %1600 = vmatpush.msra.mxu2 %v3371_v61 }
 0xc0e   :  { %s2341_s29 = spop %2340 }
 0xc0f   :  { %s3374_s0 = ssub.f32 %s1148_s6, %s2341_s29  ;;  %s3376_s23 = spop %2342 }
 0xc10   :  { %s1277_s26 = sadd.f32 1.1920929e-07, %s3376_s23  ;;  %s1283_s28 = smul.f32 %s3376_s23, %s3295_s13 }
 0xc11   :  { %s1155_s12 = sadd.f32 %s3374_s0, %s3253_s1 }
 0xc12   :  { %v1278_v0 = vstv %s1277_s26  ;;  %s3490_s1 = sld [smem:[#allocation6 + $0x6]] }
 0xc13   :  { %2530 = vlog2.f32 %v1278_v0 }
 0xc18   :  { %s3494_s0 = ssub.f32 %s3490_s1, %s3385_s3  ;;  %s1622_s3 = smul.f32 %s2965_s9, %s3389_s15 }
 0xc19   :  { %v2531_v17 = vpop.eup %2530 }
 0xc1a   :  { %v1280_v3 = vmul.f32 0.6931472, %v2531_v17  ;;  %v1460_v17 = vmul.f32 1.442695, %v1459_v42 }
 0xc1c   :  { %2344 = vpush %v1280_v3 }
 0xc1d   :  { %2346 = vpush %v1324_v4  ;;  %v1758_v4 = vmul.f32 %v3241_v28, %v3424_v8 }
 0xc21   :  { %v1349_v6 = vpop.xlane.xlu2 %1348 }
 0xc22   :  { %v1350_v27 = vrot.slane %v1349_v6, 4 }
 0xc24   :  { %v1351_v10 = vadd.f32 %v1350_v27, %v1349_v6  ;;  %v1755_v27 = vmul.f32 %v3287_v56, %v3424_v8 }
 0xc26   :  { %v1352_v46 = vrot.slane %v1351_v10, 2 }
 0xc28   :  { %v1353_v54 = vadd.f32 %v1352_v46, %v1351_v10 }
 0xc29   :  { %v1510_v16 = vpop.permute.xlu2 %1509 }
 0xc2a   :  { %v1519_v44 = vadd.f32 %v1510_v16, %v1445_v40  ;;  %v1354_v18 = vrot.slane %v1353_v54, 1 }
 0xc2c   :  { %v1523_v20 = vadd.f32 %v1519_v44, %v2953_v51  ;;  %v1355_v52 = vadd.f32 %v1354_v18, %v1353_v54  ;;  %v1455_v18 = vmax.f32 %v1454_v63, 0.0 }
 0xc2e   :  { %2532 = vtanh.f32 %v1523_v20  ;;  %2348 = vpush %v1355_v52 }
 0xc34   :  { %v3382_v12 = vpop.eup %2532 }
 0xc35   :  { %1601 = vmatpush.msra.mxu2 %v3382_v12 }
 0xc4c   :  { %v1550_v30 = vpop.xlane.xlu0 %1549 }
 0xc4d   :  { %s2345_s20 = spop %2344  ;;  %v1551_v59 = vsub.f32 %v1491_v55, %v1550_v30 }
 0xc4e   :  { %s1282_s21 = ssub.f32 0.0, %s2345_s20  ;;  %s3402_s22 = spop %2346 }
 0xc4f   :  { %v1552_v62 = vmul.f32 1.442695, %v1551_v59 }
 0xc50   :  { %s1284_s14 = sadd.f32 %s1283_s28, %s1282_s21 }
 0xc52   :  { %s3400_s19 = sadd.f32 %s1284_s14, %s1023_s2 }
 0xc53   :  { %s1405_s2 = sadd.f32 1.1920929e-07, %s3402_s22 }
 0xc5f   :  { %s2349_s27 = spop %2348 }
 0xc60   :  { %v1357_v39 = vstv %s2349_s27 }
 0xc61   :  { %v1358_v48 = vadd.f32 %v1357_v39, %v3358_v21 }
 0xc63   :  { %v1359_v23 = vadd.f32 %v1358_v48, %v2977_v60 }
 0xc65   :  { %v1362_v57 = vadd.f32 %v1361_v19, %v1359_v23 }
 0xc67   :  { %v1363_v26 = vsel %vm183_vm0, %v1362_v57, -1e+30 }
 0xc68   :  { %v1364_v35 = vsel %vm378_vm3, %v1363_v26, -inf }
 0xc69   :  { %1365 = vmax.xlane.f32.xlu1 %v1364_v35 }
 0xcdc   :  { %v1366_v29 = vpop.xlane.xlu1 %1365 }
 0xcdd   :  { %v1367_v5 = vsub.f32 %v1363_v26, %v1366_v29  ;;  %v1389_v26 = vstv %s2256_s18 }
 0xcde   :  { %vm1390_vm9 = vcmp.eq.s32.totalorder %v2877_v13, %v1389_v26 }
 0xcdf   :  { %v1368_v53 = vmul.f32 1.442695, %v1367_v5 }
 0xce1   :  { %2534 = vpow2.f32 %v1368_v53 }
 0xce2   :  { %2536 = vpow2.f32 %v1552_v62 }
 0xce3   :  { %2538 = vpow2.f32 %v1460_v17 }
 0xce7   :  { %v2535_v40 = vpop.eup %2534 }
 0xce8   :  { %v1370_v7 = vsel %vm183_vm0, %v2535_v40, 0.0  ;;  %v3418_v31 = vpop.eup %2536 }
 0xce9   :  { %v1371_v21 = vsel %vm378_vm3, %v1370_v7, 0.0  ;;  %v1554_v0 = vsel %vm294_vm2, %v3418_v31, 0.0  ;;  %v2539_v14 = vpop.eup %2538 }
 0xcea   :  { %1372 = vadd.xlane.f32.xlu1 %v1371_v21  ;;  %v1462_v3 = vadd.f32 1.0, %v2539_v14  ;;  %v1465_v6 = vmul.f32 -0.5, %v2539_v14  ;;  %v1468_v54 = vand.u32 2147483647, %v2539_v14 }
 0xcec   :  { %2540 = vlog2.f32 %v1462_v3  ;;  %v1466_v10 = vadd.f32 1.0, %v1465_v6  ;;  %vm1469_vm14 = vcmp.lt.f32.partialorder %v1468_v54, 0.0004427343 }
 0xcee   :  { %v1467_v44 = vmul.f32 %v2539_v14, %v1466_v10 }
 0xcf2   :  { %v2541_v46 = vpop.eup %2540 }
 0xcf3   :  { %v1464_v16 = vmul.f32 0.6931472, %v2541_v46 }
 0xcf5   :  { %v1470_v20 = vsel %vm1469_vm14, %v1467_v44, %v1464_v16 }
 0xcf6   :  { %v1471_v52 = vadd.f32 %v1470_v20, %v1455_v18 }
 0xcf8   :  { %v1472_v41 = vsel %vm1456_vm15, %v1454_v63, %v1471_v52  ;;  %v1517_v63 = vadd.f32 %v3416_v36, %v3366_v33  ;;  %v1406_v52 = vstv %s1405_s2 }
 0xcf9   :  { %2542 = vrcp.f32 %v1472_v41  ;;  %vm1478_vm10 = vweird.f32 %v1472_v41  ;;  %v1482_v62 = vand.u32 2147483647, %v1472_v41 }
 0xcfb   :  { %vm1483_vm14 = vcmp.eq.f32.partialorder %v1482_v62, 8.507059e+37 }
 0xcff   :  { %v2543_v47 = vpop.eup %2542 }
 0xd00   :  { %v1474_v56 = vmul.f32 %v2543_v47, %v1472_v41  ;;  %vm1479_vm12 = vweird.f32 %v2543_v47 }
 0xd01   :  { %vm1480_vm13 = vmor %vm1478_vm10, %vm1479_vm12 }
 0xd02   :  { %v1475_v23 = vsub.f32 1.0, %v1474_v56 }
 0xd03   :  { %1504 = vperm.xlu1 %2404, %v1494_v32   ;;  %v1484_v32 = vand.u32 2147483648, %v1472_v41 }
 0xd04   :  { %v1476_v53 = vmul.f32 %v2543_v47, %v1475_v23 }
 0xd05   :  { %v1485_v42 = vor.u32 1.1754944e-38, %v1484_v32 }
 0xd06   :  { %v1477_v59 = vadd.f32 %v2543_v47, %v1476_v53 }
 0xd08   :  { %v1481_v14 = vsel %vm1480_vm13, %v2543_v47, %v1477_v59 }
 0xd2d   :  { %1555 = vadd.xlane.f32.xlu1 %v1554_v0 }
 0xd46   :  { %1776 = vperm.xlu1 %2404, %v1758_v4   ;;  %v1486_v4 = vsel %vm1483_vm14, %v1485_v42, %v1481_v14 }
 0xd47   :  { %v1529_v6 = vsel %vm274_vm8, %v1486_v4, 0.0 }
 0xd4e   :  { %1761 = vperm.xlu1 %2404, %v1755_v27  }
 0xd5d   :  { %v1373_v28 = vpop.xlane.xlu1 %1372 }
 0xd5e   :  { %2544 = vrcp.f32 %v1373_v28  ;;  %v1385_v39 = vand.u32 2147483648, %v1373_v28  ;;  %v1383_v19 = vand.u32 2147483647, %v1373_v28  ;;  %vm1379_vm5 = vweird.f32 %v1373_v28 }
 0xd60   :  { %v1386_v35 = vor.u32 1.1754944e-38, %v1385_v39  ;;  %vm1384_vm7 = vcmp.eq.f32.partialorder %v1383_v19, 8.507059e+37 }
 0xd64   :  { %v2545_v24 = vpop.eup %2544 }
 0xd65   :  { %v1375_v55 = vmul.f32 %v2545_v24, %v1373_v28  ;;  %vm1380_vm4 = vweird.f32 %v2545_v24 }
 0xd66   :  { %vm1381_vm6 = vmor %vm1379_vm5, %vm1380_vm4 }
 0xd67   :  { %v1376_v34 = vsub.f32 1.0, %v1375_v55 }
 0xd69   :  { %v1377_v48 = vmul.f32 %v2545_v24, %v1376_v34 }
 0xd6b   :  { %v1378_v57 = vadd.f32 %v2545_v24, %v1377_v48 }
 0xd6d   :  { %v1382_v29 = vsel %vm1381_vm6, %v2545_v24, %v1378_v57 }
 0xd6e   :  { %v1387_v5 = vsel %vm1384_vm7, %v1386_v35, %v1382_v29 }
 0xd6f   :  { %v1388_v40 = vmul.f32 %v1387_v5, %v1370_v7  ;;  %v1521_v7 = vadd.f32 %v1517_v63, %v2951_v50  ;;  %v1757_v5 = vmul.f32 %v3280_v2, %v3424_v8 }
 0xd71   :  { %v1391_v21 = vsel %vm1390_vm9, %v1388_v40, 0.0 }
 0xd72   :  { %v1393_v30 = vrot.slane %v1391_v21, 1 }
 0xd74   :  { %v1395_v0 = vsel %vm359_vm11, %v1393_v30, 0.0 }
 0xd75   :  { %1396 = vadd.xlane.f32.xlu2 %v1395_v0  ;;  %v1505_v1 = vpop.permute.xlu1 %1504 }
 0xd76   :  { %v1518_v17 = vadd.f32 %v1505_v1, %v3368_v22 }
 0xd78   :  { %v1522_v3 = vadd.f32 %v1518_v17, %v2947_v45 }
 0xd7a   :  { %2546 = vtanh.f32 %v1522_v3 }
 0xd7b   :  { %2548 = vtanh.f32 %v1521_v7 }
 0xd7d   :  { %1530 = vadd.xlane.f32.xlu2 %v1529_v6 }
 0xd80   :  { %v2547_v33 = vpop.eup %2546 }
 0xd81   :  { %1602 = vmatpush.msra.mxu2 %v2547_v33  ;;  %v2549_v36 = vpop.eup %2548 }
 0xd83   :  { %1603 = vmatpush.msra.mxu2 %v2549_v36 }
 0xd84   :  { %2271 = vmatmul.msk.f32.vlgmr.msra.gmra.mxu2 %vm186_vm1, %v3180_v9 }
 0xd85   :  { %1696 = vmatpush.msrb.mxu2 %v3371_v61 }
 0xd87   :  { %1697 = vmatpush.msrb.mxu2 %v3382_v12 }
 0xd89   :  { %1698 = vmatpush.msrb.mxu2 %v2547_v33 }
 0xd8b   :  { %1699 = vmatpush.msrb.mxu2 %v2549_v36 }
 0xd8c   :  { %2275 = vmatmul.msk.f32.vlgmr.msrb.gmra.mxu2 %vm186_vm1, %v3189_v25 }
 0xd94   :  { %2276 = vmatmul.msk.f32.gmra.mxu2 %vm186_vm1, %v3196_v15  ;;  %v1572_v15 = vstv %s2264_s30  ;;  %s2265_s30 = sld [smem:[#allocation4 + $0x5]] }
 0xd95   :  { %vm3453_vm7 = vcmp.eq.s32.totalorder %v2877_v13, %v1572_v15 }
 0xd9c   :  { %2277 = vmatmul.msk.f32.gmra.mxu2 %vm186_vm1, %v3203_v58 }
 0xda0   :  { %v1556_v22 = vpop.xlane.xlu1 %1555 }
 0xda1   :  { %2550 = vrcp.f32 %v1556_v22  ;;  %v1568_v27 = vand.u32 2147483648, %v1556_v22  ;;  %v1566_v46 = vand.u32 2147483647, %v1556_v22  ;;  %vm1562_vm4 = vweird.f32 %v1556_v22 }
 0xda2   :  { %2552 = vlog2.f32 %v1406_v52 }
 0xda3   :  { %v1569_v58 = vor.u32 1.1754944e-38, %v1568_v27  ;;  %vm1567_vm6 = vcmp.eq.f32.partialorder %v1566_v46, 8.507059e+37 }
 0xda4   :  { %2278 = vmatmul.msk.f32.gmra.mxu2 %vm186_vm1, %v3211_v43 }
 0xda7   :  { %v2551_v9 = vpop.eup %2550 }
 0xda8   :  { %v1558_v61 = vmul.f32 %v2551_v9, %v1556_v22  ;;  %vm1563_vm15 = vweird.f32 %v2551_v9  ;;  %v2553_v56 = vpop.eup %2552 }
 0xda9   :  { %vm1564_vm5 = vmor %vm1562_vm4, %vm1563_vm15  ;;  %v1408_v48 = vmul.f32 0.6931472, %v2553_v56 }
 0xdaa   :  { %v1559_v12 = vsub.f32 1.0, %v1558_v61 }
 0xdac   :  { %v1560_v10 = vmul.f32 %v2551_v9, %v1559_v12  ;;  %2279 = vmatmul.msk.f32.gmra.mxu2 %vm186_vm1, %v3219_v49 }
 0xdae   :  { %v1561_v25 = vadd.f32 %v2551_v9, %v1560_v10 }
 0xdb0   :  { %v1565_v54 = vsel %vm1564_vm5, %v2551_v9, %v1561_v25 }
 0xdb1   :  { %v1570_v43 = vsel %vm1567_vm6, %v1569_v58, %v1565_v54 }
 0xdb2   :  { %v1571_v44 = vmul.f32 %v3418_v31, %v1570_v43 }
 0xdb4   :  { %v1574_v18 = vsel %vm3453_vm7, %v1571_v44, 0.0 }
 0xdb5   :  { %v1576_v20 = vrot.slane %v1574_v18, 1 }
 0xdb7   :  { %v1578_v49 = vsel %vm274_vm8, %v1576_v20, 0.0 }
 0xdb8   :  { %1579 = vadd.xlane.f32.xlu0 %v1578_v49  ;;  %v1777_v32 = vpop.permute.xlu1 %1776 }
 0xde8   :  { %v1397_v41 = vpop.xlane.xlu2 %1396 }
 0xde9   :  { %v1398_v28 = vrot.slane %v1397_v41, 4 }
 0xdeb   :  { %v1399_v47 = vadd.f32 %v1398_v28, %v1397_v41 }
 0xded   :  { %v1400_v24 = vrot.slane %v1399_v47, 2 }
 0xdef   :  { %v1401_v55 = vadd.f32 %v1400_v24, %v1399_v47 }
 0xdf0   :  { %v1531_v35 = vpop.xlane.xlu2 %1530 }
 0xdf1   :  { %v1402_v34 = vrot.slane %v1401_v55, 1  ;;  %v1532_v29 = vrot.slane %v1531_v35, 4 }
 0xdf3   :  { %v1403_v39 = vadd.f32 %v1402_v34, %v1401_v55  ;;  %v1533_v40 = vadd.f32 %v1532_v29, %v1531_v35  ;;  %v1623_v55 = vstv %s1622_s3 }
 0xdf5   :  { %2350 = vpush %v1403_v39  ;;  %v1534_v21 = vrot.slane %v1533_v40, 2 }
 0xdf6   :  { %2352 = vpush %v1408_v48 }
 0xdf7   :  { %v1535_v0 = vadd.f32 %v1534_v21, %v1533_v40  ;;  %v1762_v21 = vpop.permute.xlu1 %1761 }
 0xdf9   :  { %v1536_v1 = vrot.slane %v1535_v0, 1 }
 0xdfb   :  { %v1537_v14 = vadd.f32 %v1536_v1, %v1535_v0 }
 0xe07   :  { %v3462_v31 = vpop.f32.mrf.mxu2 }
 0xe08   :  { %v1608_v19 = vsel %vm3453_vm7, %v3462_v31, 0.0 }
 0xe09   :  { %v1609_v23 = vsel %vm359_vm11, %v1608_v19, 0.0 }
 0xe0a   :  { %1610 = vadd.xlane.f32.xlu2 %v1609_v23 }
 0xe0f   :  { %v3468_v57 = vpop.f32.mrf.mxu2 }
 0xe17   :  { %v3470_v26 = vpop.f32.mrf.mxu2 }
 0xe1f   :  { %v1707_v53 = vpop.f32.mrf.mxu2 }
 0xe22   :  { %1771 = vperm.xlu2 %2405, %v1757_v5  }
 0xe26   :  { %s2351_s13 = spop %2350 }
 0xe27   :  { %s1411_s24 = sadd.f32 1.1920929e-07, %s2351_s13  ;;  %v1710_v30 = vpop.f32.mrf.mxu2  ;;  %s2353_s25 = spop %2352 }
 0xe28   :  { %v1782_v59 = vadd.f32 %v1777_v32, %v1710_v30  ;;  %s1410_s5 = ssub.f32 0.0, %s2353_s25 }
 0xe29   :  { %v1412_v62 = vstv %s1411_s24 }
 0xe2a   :  { %2554 = vlog2.f32 %v1412_v62  ;;  %v1786_v63 = vadd.f32 %v1782_v59, %v2941_v11 }
 0xe2b   :  { %v1580_v7 = vpop.xlane.xlu0 %1579 }
 0xe2c   :  { %2556 = vtanh.f32 %v1786_v63  ;;  %v1581_v3 = vrot.slane %v1580_v7, 4 }
 0xe2e   :  { %v1582_v4 = vadd.f32 %v1581_v3, %v1580_v7 }
 0xe2f   :  { %v1713_v20 = vpop.f32.mrf.mxu2 }
 0xe30   :  { %v2555_v42 = vpop.eup %2554  ;;  %v1583_v6 = vrot.slane %v1582_v4, 2  ;;  %v1750_v49 = vadd.f32 %v1713_v20, %v2862_v38  ;;  %v1716_v0 = vadd.f32 %v1713_v20, %v2860_v37 }
 0xe31   :  { %v1414_v17 = vmul.f32 0.6931472, %v2555_v42 }
 0xe32   :  { %v3475_v2 = vpop.eup %2556  ;;  %v1584_v36 = vadd.f32 %v1583_v6, %v1582_v4  ;;  %v1720_v1 = vand.u32 2147483647, %v1716_v0  ;;  %vm1718_vm10 = vcmp.ne.f32.partialorder %v1716_v0, %v1716_v0 }
 0xe33   :  { %2354 = vpush %v1414_v17  ;;  %1862 = vmatpush.msra.mxu3 %v3475_v2 }
 0xe34   :  { %2356 = vpush %v1537_v14  ;;  %v1585_v22 = vrot.slane %v1584_v36, 1  ;;  %v1721_v42 = vsub.f32 0.0, %v1720_v1  ;;  %v2637_v1 = vld [vmem:[%s3705_s7 + $0x18] sm:$0xff] }
 0xe36   :  { %v1586_v12 = vadd.f32 %v1585_v22, %v1584_v36  ;;  %v1722_v17 = vmul.f32 1.442695, %v1721_v42  ;;  %v1717_v22 = vmax.f32 %v1716_v0, 0.0 }
 0xe64   :  { %s2355_s6 = spop %2354 }
 0xe65   :  { %s1416_s29 = ssub.f32 %s1410_s5, %s2355_s6  ;;  %s3478_s23 = spop %2356 }
 0xe66   :  { %s1539_s26 = sadd.f32 1.1920929e-07, %s3478_s23  ;;  %s1545_s28 = smul.f32 %s3478_s23, %s3389_s15 }
 0xe67   :  { %s3484_s17 = sadd.f32 %s1416_s29, %s1155_s12  ;;  %s1751_s12 = smul.f32 %s2855_s16, %s3494_s0 }
 0xe68   :  { %v1540_v33 = vstv %s1539_s26 }
 0xe69   :  { %2558 = vlog2.f32 %v1540_v33  ;;  %v1752_v52 = vstv %s1751_s12  ;;  %s2273_s12 = sld [smem:[#allocation2 + $0x6]] }
 0xe6a   :  { %v1753_v41 = vadd.f32 %v1752_v52, %v1750_v49  ;;  %v1651_v49 = vstv %s2265_s30 }
 0xe6b   :  { %vm1652_vm4 = vcmp.eq.s32.totalorder %v2877_v13, %v1651_v49 }
 0xe6c   :  { %v1810_v28 = vsel %vm294_vm2, %v1753_v41, -inf }
 0xe6d   :  { %1811 = vmax.xlane.f32.xlu1 %v1810_v28 }
 0xe6f   :  { %v2559_v9 = vpop.eup %2558 }
 0xe70   :  { %v1542_v61 = vmul.f32 0.6931472, %v2559_v9 }
 0xe72   :  { %2358 = vpush %v1542_v61 }
 0xe73   :  { %2360 = vpush %v1586_v12 }
 0xe7d   :  { %v1611_v27 = vpop.xlane.xlu2 %1610 }
 0xe7e   :  { %v1612_v10 = vrot.slane %v1611_v27, 4 }
 0xe80   :  { %v1613_v46 = vadd.f32 %v1612_v10, %v1611_v27 }
 0xe82   :  { %v1614_v25 = vrot.slane %v1613_v46, 2 }
 0xe84   :  { %v1615_v15 = vadd.f32 %v1614_v25, %v1613_v46 }
 0xe85   :  { %v1772_v58 = vpop.permute.xlu2 %1771 }
 0xe86   :  { %v1781_v54 = vadd.f32 %v1772_v58, %v1707_v53  ;;  %v1616_v43 = vrot.slane %v1615_v15, 1  ;;  %v3521_v53 = vld [vmem:[%s3706_s8 + $0x8] sm:$0xff] }
 0xe87   :  { %v1756_v40 = vmul.f32 %v3521_v53, %v3424_v8 }
 0xe88   :  { %v1785_v16 = vadd.f32 %v1781_v54, %v2953_v51  ;;  %v1617_v44 = vadd.f32 %v1616_v43, %v1615_v15 }
 0xe8a   :  { %2560 = vtanh.f32 %v1785_v16  ;;  %2362 = vpush %v1617_v44 }
 0xe90   :  { %v3487_v18 = vpop.eup %2560 }
 0xe91   :  { %1863 = vmatpush.msra.mxu3 %v3487_v18 }
 0xea3   :  { %s2359_s20 = spop %2358 }
 0xea4   :  { %s1544_s21 = ssub.f32 0.0, %s2359_s20  ;;  %s3506_s4 = spop %2360 }
 0xea6   :  { %s3500_s14 = sadd.f32 %s1545_s28, %s1544_s21 }
 0xea8   :  { %s1547_s22 = sadd.f32 %s3500_s14, %s3400_s19 }
 0xebb   :  { %s2363_s27 = spop %2362 }
 0xebc   :  { %v1619_v47 = vstv %s2363_s27 }
 0xebd   :  { %v1620_v24 = vadd.f32 %v1619_v47, %v3462_v31 }
 0xebf   :  { %v1621_v56 = vadd.f32 %v1620_v24, %v2977_v60  ;;  %v1779_v24 = vadd.f32 %v1762_v21, %v3468_v57 }
 0xec1   :  { %v1624_v34 = vadd.f32 %v1623_v55, %v1621_v56 }
 0xec3   :  { %v1625_v39 = vsel %vm183_vm0, %v1624_v34, -1e+30 }
 0xec4   :  { %v1626_v48 = vsel %vm378_vm3, %v1625_v39, -inf }
 0xec5   :  { %1627 = vmax.xlane.f32.xlu0 %v1626_v48 }
 0xee0   :  { %v1812_v32 = vpop.xlane.xlu1 %1811 }
 0xee1   :  { %v1813_v30 = vsub.f32 %v1753_v41, %v1812_v32 }
 0xee3   :  { %v1814_v59 = vmul.f32 1.442695, %v1813_v30 }
 0xf38   :  { %v1628_v19 = vpop.xlane.xlu0 %1627 }
 0xf39   :  { %v1629_v23 = vsub.f32 %v1625_v39, %v1628_v19 }
 0xf3b   :  { %v1630_v35 = vmul.f32 1.442695, %v1629_v23 }
 0xf3d   :  { %2562 = vpow2.f32 %v1630_v35 }
 0xf3e   :  { %2564 = vpow2.f32 %v1814_v59  ;;  %v3540_v59 = vld [vmem:[%s3708_s10] sm:$0x3] }
 0xf3f   :  { %2566 = vpow2.f32 %v1722_v17 }
 0xf43   :  { %v2563_v29 = vpop.eup %2562 }
 0xf44   :  { %v1632_v5 = vsel %vm183_vm0, %v2563_v29, 0.0  ;;  %v3525_v62 = vpop.eup %2564  ;;  %v1783_v29 = vadd.f32 %v1779_v24, %v2951_v50  ;;  %v2639_v24 = vld [vmem:[%s3706_s8 + $0x18] sm:$0xff] }
 0xf45   :  { %v1633_v31 = vsel %vm378_vm3, %v1632_v5, 0.0  ;;  %v1816_v63 = vsel %vm294_vm2, %v3525_v62, 0.0  ;;  %v2567_v14 = vpop.eup %2566 }
 0xf46   :  { %1634 = vadd.xlane.f32.xlu0 %v1633_v31  ;;  %v1724_v8 = vadd.f32 1.0, %v2567_v14  ;;  %v1727_v7 = vmul.f32 -0.5, %v2567_v14  ;;  %v1730_v6 = vand.u32 2147483647, %v2567_v14 }
 0xf48   :  { %2568 = vlog2.f32 %v1724_v8  ;;  %v1728_v3 = vadd.f32 1.0, %v1727_v7  ;;  %vm1731_vm9 = vcmp.lt.f32.partialorder %v1730_v6, 0.0004427343 }
 0xf4a   :  { %v1729_v36 = vmul.f32 %v2567_v14, %v1728_v3 }
 0xf4e   :  { %v2569_v4 = vpop.eup %2568 }
 0xf4f   :  { %v1726_v33 = vmul.f32 0.6931472, %v2569_v4  ;;  %v2638_v4 = vld [vmem:[%s3705_s7 + $0x20] sm:$0x3] }
 0xf51   :  { %v1732_v9 = vsel %vm1731_vm9, %v1729_v36, %v1726_v33  ;;  %v1834_v33 = vstv %s2273_s12  ;;  %s2281_s12 = sld [smem:[#allocation6 + $0x7]] }
 0xf52   :  { %v1733_v61 = vadd.f32 %v1732_v9, %v1717_v22 }
 0xf54   :  { %v1734_v12 = vsel %vm1718_vm10, %v1716_v0, %v1733_v61  ;;  %v2635_v0 = vld [vmem:[%s3705_s7 + $0x8] sm:$0xff] }
 0xf55   :  { %2570 = vrcp.f32 %v1734_v12  ;;  %vm1740_vm5 = vweird.f32 %v1734_v12  ;;  %v1746_v48 = vand.u32 2147483648, %v1734_v12  ;;  %v1744_v35 = vand.u32 2147483647, %v1734_v12 }
 0xf57   :  { %v1747_v57 = vor.u32 1.1754944e-38, %v1746_v48  ;;  %vm1745_vm9 = vcmp.eq.f32.partialorder %v1744_v35, 8.507059e+37  ;;  %s3613_s28 = ssub.f32 %s2281_s12, %s3490_s1 }
 0xf58   :  { %s2282_s1 = sld [smem:[#allocation2 + $0x7]] }
 0xf5a   :  { %1766 = vperm.xlu0 %2403, %v1756_v40  }
 0xf5b   :  { %v2571_v10 = vpop.eup %2570 }
 0xf5c   :  { %v1736_v15 = vmul.f32 %v2571_v10, %v1734_v12  ;;  %vm1741_vm6 = vweird.f32 %v2571_v10 }
 0xf5d   :  { %vm1742_vm7 = vmor %vm1740_vm5, %vm1741_vm6 }
 0xf5e   :  { %v1737_v44 = vsub.f32 1.0, %v1736_v15 }
 0xf60   :  { %v1738_v47 = vmul.f32 %v2571_v10, %v1737_v44 }
 0xf62   :  { %v1739_v23 = vadd.f32 %v2571_v10, %v1738_v47  ;;  %v3583_v47 = vstv %s3494_s0 }
 0xf84   :  { %1817 = vadd.xlane.f32.xlu0 %v1816_v63  ;;  %v2634_v63 = vld [vmem:[%s3705_s7] sm:$0xff] }
 0xfb9   :  { %v1635_v27 = vpop.xlane.xlu0 %1634 }
 0xfba   :  { %2572 = vrcp.f32 %v1635_v27  ;;  %v1647_v54 = vand.u32 2147483648, %v1635_v27  ;;  %v1645_v16 = vand.u32 2147483647, %v1635_v27  ;;  %vm1641_vm13 = vweird.f32 %v1635_v27 }
 0xfbc   :  { %v1648_v52 = vor.u32 1.1754944e-38, %v1647_v54  ;;  %vm1646_vm15 = vcmp.eq.f32.partialorder %v1645_v16, 8.507059e+37 }
 0xfc0   :  { %v2573_v46 = vpop.eup %2572 }
 0xfc1   :  { %v1637_v25 = vmul.f32 %v2573_v46, %v1635_v27  ;;  %vm1642_vm12 = vweird.f32 %v2573_v46 }
 0xfc2   :  { %vm1643_vm14 = vmor %vm1641_vm13, %vm1642_vm12 }
 0xfc3   :  { %v1638_v58 = vsub.f32 1.0, %v1637_v25 }
 0xfc5   :  { %v1639_v43 = vmul.f32 %v2573_v46, %v1638_v58 }
 0xfc7   :  { %v1640_v20 = vadd.f32 %v2573_v46, %v1639_v43 }
 0xfc9   :  { %v1644_v41 = vsel %vm1643_vm14, %v2573_v46, %v1640_v20 }
 0xfca   :  { %v1649_v28 = vsel %vm1646_vm15, %v1648_v52, %v1644_v41  ;;  %vm3567_vm15 = vcmp.eq.s32.totalorder %v2877_v13, %v1834_v33 }
 0xfcb   :  { %v1650_v55 = vmul.f32 %v1649_v28, %v1632_v5  ;;  %v1743_v5 = vsel %vm1742_vm7, %v2571_v10, %v1739_v23 }
 0xfcc   :  { %v1767_v56 = vpop.permute.xlu0 %1766  ;;  %v1748_v21 = vsel %vm1745_vm9, %v1747_v57, %v1743_v5 }
 0xfcd   :  { %v1780_v34 = vadd.f32 %v1767_v56, %v3470_v26  ;;  %v1653_v39 = vsel %vm1652_vm4, %v1650_v55, 0.0  ;;  %v1791_v32 = vsel %vm274_vm8, %v1748_v21, 0.0  ;;  %v2020_v55 = vmul.f32 %v2639_v24, %v3583_v47 }
 0xfce   :  { %v1655_v19 = vrot.slane %v1653_v39, 1 }
 0xfcf   :  { %v1784_v31 = vadd.f32 %v1780_v34, %v2947_v45  ;;  %v2640_v34 = vld [vmem:[%s3706_s8] sm:$0xff] }
 0xfd0   :  { %v1657_v40 = vsel %vm359_vm11, %v1655_v19, 0.0  ;;  %v2017_v39 = vmul.f32 %v2640_v34, %v3583_v47 }
 0xfd1   :  { %2574 = vtanh.f32 %v1784_v31  ;;  %1658 = vadd.xlane.f32.xlu2 %v1657_v40 }
 0xfd2   :  { %2576 = vtanh.f32 %v1783_v29 }
 0xfd7   :  { %v2575_v26 = vpop.eup %2574 }
 0xfd8   :  { %1864 = vmatpush.msra.mxu3 %v2575_v26  ;;  %v2577_v30 = vpop.eup %2576 }
 0xfd9   :  { %1792 = vadd.xlane.f32.xlu2 %v1791_v32 }
 0xfda   :  { %1865 = vmatpush.msra.mxu3 %v2577_v30 }
 0xfdb   :  { %2280 = vmatmul.msk.f32.vlgmr.msra.gmra.mxu3 %vm186_vm1, %v3540_v59 }
 0xfdc   :  { %1958 = vmatpush.msrb.mxu3 %v3475_v2  ;;  %v2636_v2 = vld [vmem:[%s3705_s7 + $0x10] sm:$0xff]  ;;  %s1667_s7 = sadd.f32 1.1920929e-07, %s3506_s4  ;;  %s1884_s4 = smul.f32 %s2965_s9, %s3494_s0 }
 0xfde   :  { %1959 = vmatpush.msrb.mxu3 %v3487_v18  ;;  %v1668_v25 = vstv %s1667_s7  ;;  %s2013_s7 = smul.f32 %s2855_s16, %s3613_s28 }
 0xfe0   :  { %1960 = vmatpush.msrb.mxu3 %v2575_v26 }
 0xfe2   :  { %1961 = vmatpush.msrb.mxu3 %v2577_v30 }
 0xfe3   :  { %2284 = vmatmul.msk.f32.vlgmr.msrb.gmra.mxu3 %vm186_vm1, %v2634_v63 }
 0xfeb   :  { %2285 = vmatmul.msk.f32.gmra.mxu3 %vm186_vm1, %v2635_v0 }
 0xff3   :  { %2286 = vmatmul.msk.f32.gmra.mxu3 %vm186_vm1, %v2636_v2 }
 0xff7   :  { %v1818_v18 = vpop.xlane.xlu0 %1817 }
 0xff8   :  { %2578 = vrcp.f32 %v1818_v18  ;;  %v1830_v8 = vand.u32 2147483648, %v1818_v18  ;;  %v1828_v3 = vand.u32 2147483647, %v1818_v18  ;;  %vm1824_vm12 = vweird.f32 %v1818_v18 }
 0xff9   :  { %2580 = vlog2.f32 %v1668_v25 }
 0xffa   :  { %v1831_v36 = vor.u32 1.1754944e-38, %v1830_v8  ;;  %vm1829_vm14 = vcmp.eq.f32.partialorder %v1828_v3, 8.507059e+37 }
 0xffb   :  { %2287 = vmatmul.msk.f32.gmra.mxu3 %vm186_vm1, %v2637_v1 }
 0xffe   :  { %v2579_v42 = vpop.eup %2578 }
 0xfff   :  { %v1820_v17 = vmul.f32 %v2579_v42, %v1818_v18  ;;  %vm1825_vm10 = vweird.f32 %v2579_v42  ;;  %v2581_v44 = vpop.eup %2580 }
0x1000   :  { %vm1826_vm13 = vmor %vm1824_vm12, %vm1825_vm10 }
0x1001   :  { %v1821_v14 = vsub.f32 1.0, %v1820_v17 }
0x1003   :  { %v1822_v7 = vmul.f32 %v2579_v42, %v1821_v14  ;;  %2288 = vmatmul.msk.f32.gmra.mxu3 %vm186_vm1, %v2638_v4 }
0x1005   :  { %v1823_v6 = vadd.f32 %v2579_v42, %v1822_v7 }
0x1007   :  { %v1827_v22 = vsel %vm1826_vm13, %v2579_v42, %v1823_v6 }
0x1008   :  { %v1832_v9 = vsel %vm1829_vm14, %v1831_v36, %v1827_v22 }
0x1009   :  { %v1833_v12 = vmul.f32 %v3525_v62, %v1832_v9  ;;  %v1670_v62 = vmul.f32 0.6931472, %v2581_v44 }
0x100b   :  { %v1836_v27 = vsel %vm3567_vm15, %v1833_v12, 0.0 }
0x100c   :  { %v1838_v10 = vrot.slane %v1836_v27, 1 }
0x100e   :  { %v1840_v46 = vsel %vm274_vm8, %v1838_v10, 0.0 }
0x100f   :  { %1841 = vadd.xlane.f32.xlu1 %v1840_v46 }
0x1044   :  { %v1659_v15 = vpop.xlane.xlu2 %1658 }
0x1045   :  { %v1660_v58 = vrot.slane %v1659_v15, 4 }
0x1047   :  { %v1661_v54 = vadd.f32 %v1660_v58, %v1659_v15  ;;  %v2014_v58 = vstv %s2013_s7 }
0x1049   :  { %v1662_v43 = vrot.slane %v1661_v54, 2 }
0x104b   :  { %v1663_v16 = vadd.f32 %v1662_v43, %v1661_v54  ;;  %v1885_v54 = vstv %s1884_s4 }
0x104c   :  { %v1793_v56 = vpop.xlane.xlu2 %1792 }
0x104d   :  { %v1664_v20 = vrot.slane %v1663_v16, 1  ;;  %v1794_v48 = vrot.slane %v1793_v56, 4 }
0x104f   :  { %v1665_v49 = vadd.f32 %v1664_v20, %v1663_v16  ;;  %v1795_v19 = vadd.f32 %v1794_v48, %v1793_v56 }
0x1051   :  { %2364 = vpush %v1665_v49  ;;  %v1796_v23 = vrot.slane %v1795_v19, 2 }
0x1052   :  { %2366 = vpush %v1670_v62 }
0x1053   :  { %v1797_v29 = vadd.f32 %v1796_v23, %v1795_v19 }
0x1055   :  { %v1798_v31 = vrot.slane %v1797_v29, 1 }
0x1057   :  { %v1799_v5 = vadd.f32 %v1798_v31, %v1797_v29 }
0x105e   :  { %v3576_v52 = vpop.f32.mrf.mxu3 }
0x105f   :  { %v1870_v41 = vsel %vm3567_vm15, %v3576_v52, 0.0 }
0x1060   :  { %v1871_v28 = vsel %vm359_vm11, %v1870_v41, 0.0 }
0x1061   :  { %1872 = vadd.xlane.f32.xlu0 %v1871_v28 }
0x1066   :  { %v3600_v2 = vpop.f32.mrf.mxu3 }
0x106e   :  { %v3602_v14 = vpop.f32.mrf.mxu3 }
0x1075   :  { %2038 = vperm.xlu0 %2403, %v2020_v55  }
0x1076   :  { %v1969_v6 = vpop.f32.mrf.mxu3 }
0x107d   :  { %2023 = vperm.xlu0 %2403, %v2017_v39  }
0x107e   :  { %v1972_v9 = vpop.f32.mrf.mxu3 }
0x1082   :  { %s2365_s15 = spop %2364  ;;  %v1842_v21 = vpop.xlane.xlu1 %1841 }
0x1083   :  { %s1673_s18 = sadd.f32 1.1920929e-07, %s2365_s15  ;;  %v1843_v26 = vrot.slane %v1842_v21, 4  ;;  %s2367_s30 = spop %2366 }
0x1084   :  { %s1672_s2 = ssub.f32 0.0, %s2367_s30 }
0x1085   :  { %v1674_v35 = vstv %s1673_s18  ;;  %v1844_v32 = vadd.f32 %v1843_v26, %v1842_v21 }
0x1086   :  { %2582 = vlog2.f32 %v1674_v35  ;;  %v1975_v46 = vpop.f32.mrf.mxu3  ;;  %v2018_v35 = vmul.f32 %v3521_v53, %v3583_v47 }
0x1087   :  { %v1845_v30 = vrot.slane %v1844_v32, 2  ;;  %v2012_v15 = vadd.f32 %v1975_v46, %v2862_v38 }
0x1089   :  { %v1846_v0 = vadd.f32 %v1845_v30, %v1844_v32  ;;  %v2015_v16 = vadd.f32 %v2014_v58, %v2012_v15 }
0x108b   :  { %v1847_v18 = vrot.slane %v1846_v0, 1  ;;  %v2072_v20 = vsel %vm294_vm2, %v2015_v16, -inf }
0x108c   :  { %v2583_v40 = vpop.eup %2582 }
0x108d   :  { %v1676_v57 = vmul.f32 0.6931472, %v2583_v40  ;;  %v1848_v17 = vadd.f32 %v1847_v18, %v1846_v0 }
0x108f   :  { %2368 = vpush %v1676_v57 }
0x1090   :  { %2370 = vpush %v1799_v5 }
0x10a7   :  { %2073 = vmax.xlane.f32.xlu0 %v2072_v20 }
0x10c0   :  { %s2369_s13 = spop %2368 }
0x10c1   :  { %s3593_s24 = ssub.f32 %s1672_s2, %s2369_s13  ;;  %s3595_s25 = spop %2370 }
0x10c2   :  { %s1801_s5 = sadd.f32 1.1920929e-07, %s3595_s25  ;;  %s1807_s29 = smul.f32 %s3595_s25, %s3494_s0 }
0x10c3   :  { %s1679_s6 = sadd.f32 %s3593_s24, %s3484_s17 }
0x10c4   :  { %v1802_v63 = vstv %s1801_s5 }
0x10c5   :  { %2584 = vlog2.f32 %v1802_v63 }
0x10cb   :  { %v2585_v1 = vpop.eup %2584 }
0x10cc   :  { %v1804_v42 = vmul.f32 0.6931472, %v2585_v1 }
0x10ce   :  { %2372 = vpush %v1804_v42 }
0x10cf   :  { %2374 = vpush %v1848_v17 }
0x10d4   :  { %v1873_v8 = vpop.xlane.xlu0 %1872 }
0x10d5   :  { %v1874_v7 = vrot.slane %v1873_v8, 4 }
0x10d7   :  { %v1875_v3 = vadd.f32 %v1874_v7, %v1873_v8 }
0x10d9   :  { %v1876_v4 = vrot.slane %v1875_v3, 2 }
0x10db   :  { %v1877_v33 = vadd.f32 %v1876_v4, %v1875_v3 }
0x10dd   :  { %v1878_v36 = vrot.slane %v1877_v33, 1 }
0x10df   :  { %v1879_v22 = vadd.f32 %v1878_v36, %v1877_v33 }
0x10e1   :  { %2376 = vpush %v1879_v22 }
0x10e7   :  { %v2039_v61 = vpop.permute.xlu0 %2038 }
0x10e8   :  { %v2044_v12 = vadd.f32 %v2039_v61, %v1972_v9 }
0x10ea   :  { %v2048_v27 = vadd.f32 %v2044_v12, %v2941_v11 }
0x10ec   :  { %2586 = vtanh.f32 %v2048_v27 }
0x10ef   :  { %v2024_v29 = vpop.permute.xlu0 %2023 }
0x10f2   :  { %v2587_v10 = vpop.eup %2586 }
0x10f3   :  { %2124 = vmatpush.msra.mxu0 %v2587_v10 }
0x10ff   :  { %s2373_s10 = spop %2372 }
0x1100   :  { %s1806_s23 = ssub.f32 0.0, %s2373_s10  ;;  %s3617_s21 = spop %2374 }
0x1101   :  { %s1929_s0 = sadd.f32 1.1920929e-07, %s3617_s21 }
0x1102   :  { %s1808_s26 = sadd.f32 %s1807_s29, %s1806_s23  ;;  %s2146_s23 = smul.f32 %s2965_s9, %s3613_s28 }
0x1103   :  { %s2283_s9 = sld [smem:[#allocation4 + $0x7]] }
0x1104   :  { %s3610_s20 = sadd.f32 %s1808_s26, %s1547_s22 }
0x1112   :  { %s2377_s3 = spop %2376 }
0x1113   :  { %v1881_v11 = vstv %s2377_s3 }
0x1114   :  { %v1882_v25 = vadd.f32 %v1881_v11, %v3576_v52  ;;  %v2641_v52 = vld [vmem:[%s3706_s8 + $0x10] sm:$0xff]  ;;  %s2274_s8 = sld [smem:[#allocation4 + $0x6]] }
0x1115   :  { %v2019_v38 = vmul.f32 %v2641_v52, %v3583_v47  ;;  %v2041_v52 = vadd.f32 %v2024_v29, %v3600_v2 }
0x1116   :  { %v1883_v43 = vadd.f32 %v1882_v25, %v2977_v60 }
0x1118   :  { %v1886_v44 = vadd.f32 %v1885_v54, %v1883_v43 }
0x111a   :  { %v1887_v49 = vsel %vm183_vm0, %v1886_v44, -1e+30  ;;  %v2074_v31 = vpop.xlane.xlu0 %2073 }
0x111b   :  { %v1888_v62 = vsel %vm378_vm3, %v1887_v49, -inf  ;;  %v2075_v40 = vsub.f32 %v2015_v16, %v2074_v31 }
0x111c   :  { %1889 = vmax.xlane.f32.xlu2 %v1888_v62 }
0x111d   :  { %v2076_v57 = vmul.f32 1.442695, %v2075_v40 }
0x1134   :  { %2033 = vperm.xlu2 %2405, %v2019_v38  }
0x118f   :  { %v1890_v41 = vpop.xlane.xlu2 %1889 }
0x1190   :  { %v1891_v28 = vsub.f32 %v1887_v49, %v1890_v41 }
0x1192   :  { %v1892_v24 = vmul.f32 1.442695, %v1891_v28 }
0x1194   :  { %2588 = vpow2.f32 %v1892_v24 }
0x1197   :  { %v2034_v55 = vpop.permute.xlu2 %2033 }
0x1198   :  { %v2043_v56 = vadd.f32 %v2034_v55, %v1969_v6 }
0x119a   :  { %v2589_v34 = vpop.eup %2588  ;;  %v2047_v39 = vadd.f32 %v2043_v56, %v2953_v51  ;;  %v1978_v51 = vadd.f32 %v1975_v46, %v2860_v37  ;;  %v1913_v46 = vstv %s2274_s8  ;;  %v2045_v56 = vadd.f32 %v2041_v52, %v2951_v50 }
0x119b   :  { %v1894_v48 = vsel %vm183_vm0, %v2589_v34, 0.0  ;;  %vm1914_vm10 = vcmp.eq.s32.totalorder %v2877_v13, %v1913_v46 }
0x119c   :  { %2590 = vtanh.f32 %v2047_v39  ;;  %v1895_v19 = vsel %vm378_vm3, %v1894_v48, 0.0  ;;  %v1982_v26 = vand.u32 2147483647, %v1978_v51  ;;  %v1979_v8 = vmax.f32 %v1978_v51, 0.0 }
0x119d   :  { %1896 = vadd.xlane.f32.xlu1 %v1895_v19  ;;  %2592 = vpow2.f32 %v2076_v57  ;;  %vm1980_vm5 = vcmp.ne.f32.partialorder %v1978_v51, %v1978_v51  ;;  %v2096_v57 = vstv %s2282_s1 }
0x119e   :  { %v1983_v32 = vsub.f32 0.0, %v1982_v26 }
0x11a0   :  { %v1984_v30 = vmul.f32 1.442695, %v1983_v32 }
0x11a2   :  { %v2591_v23 = vpop.eup %2590  ;;  %2594 = vpow2.f32 %v1984_v30 }
0x11a3   :  { %2125 = vmatpush.msra.mxu0 %v2591_v23  ;;  %v3638_v5 = vpop.eup %2592 }
0x11a4   :  { %v2078_v21 = vsel %vm294_vm2, %v3638_v5, 0.0 }
0x11a8   :  { %v2595_v63 = vpop.eup %2594 }
0x11a9   :  { %v1986_v53 = vadd.f32 1.0, %v2595_v63  ;;  %v1989_v47 = vmul.f32 -0.5, %v2595_v63  ;;  %v1992_v1 = vand.u32 2147483647, %v2595_v63 }
0x11ab   :  { %2596 = vlog2.f32 %v1986_v53  ;;  %v1990_v0 = vadd.f32 1.0, %v1989_v47  ;;  %vm1993_vm4 = vcmp.lt.f32.partialorder %v1992_v1, 0.0004427343  ;;  %v1930_v47 = vstv %s1929_s0 }
0x11ad   :  { %v1991_v17 = vmul.f32 %v2595_v63, %v1990_v0 }
0x11b1   :  { %v2597_v18 = vpop.eup %2596 }
0x11b2   :  { %v1988_v42 = vmul.f32 0.6931472, %v2597_v18 }
0x11b4   :  { %v1994_v37 = vsel %vm1993_vm4, %v1991_v17, %v1988_v42 }
0x11b5   :  { %v1995_v7 = vadd.f32 %v1994_v37, %v1979_v8 }
0x11b6   :  { %2028 = vperm.xlu1 %2404, %v2018_v35  }
0x11b7   :  { %v1996_v3 = vsel %vm1980_vm5, %v1978_v51, %v1995_v7 }
0x11b8   :  { %2598 = vrcp.f32 %v1996_v3  ;;  %vm2002_vm12 = vweird.f32 %v1996_v3  ;;  %v2008_v44 = vand.u32 2147483648, %v1996_v3  ;;  %v2006_v62 = vand.u32 2147483647, %v1996_v3 }
0x11ba   :  { %v2009_v28 = vor.u32 1.1754944e-38, %v2008_v44  ;;  %vm2007_vm15 = vcmp.eq.f32.partialorder %v2006_v62, 8.507059e+37 }
0x11be   :  { %v2599_v6 = vpop.eup %2598 }
0x11bf   :  { %v1998_v22 = vmul.f32 %v2599_v6, %v1996_v3  ;;  %vm2003_vm13 = vweird.f32 %v2599_v6 }
0x11c0   :  { %vm2004_vm14 = vmor %vm2002_vm12, %vm2003_vm13 }
0x11c1   :  { %v1999_v10 = vsub.f32 1.0, %v1998_v22 }
0x11c3   :  { %v2000_v54 = vmul.f32 %v2599_v6, %v1999_v10 }
0x11c5   :  { %v2001_v49 = vadd.f32 %v2599_v6, %v2000_v54 }
0x11c7   :  { %v2005_v55 = vsel %vm2004_vm14, %v2599_v6, %v2001_v49 }
0x11c8   :  { %v2010_v39 = vsel %vm2007_vm15, %v2009_v28, %v2005_v55 }
0x11e0   :  { %2079 = vadd.xlane.f32.xlu1 %v2078_v21 }
0x1210   :  { %v1897_v4 = vpop.xlane.xlu1 %1896 }
0x1211   :  { %2600 = vrcp.f32 %v1897_v4  ;;  %v1909_v61 = vand.u32 2147483648, %v1897_v4  ;;  %v1907_v27 = vand.u32 2147483647, %v1897_v4  ;;  %vm1903_vm6 = vweird.f32 %v1897_v4 }
0x1213   :  { %v1910_v25 = vor.u32 1.1754944e-38, %v1909_v61  ;;  %vm1908_vm9 = vcmp.eq.f32.partialorder %v1907_v27, 8.507059e+37 }
0x1217   :  { %v2601_v33 = vpop.eup %2600 }
0x1218   :  { %v1899_v36 = vmul.f32 %v2601_v33, %v1897_v4  ;;  %vm1904_vm2 = vweird.f32 %v2601_v33 }
0x1219   :  { %vm1905_vm7 = vmor %vm1903_vm6, %vm1904_vm2 }
0x121a   :  { %v1900_v9 = vsub.f32 1.0, %v1899_v36 }
0x121c   :  { %v1901_v12 = vmul.f32 %v2601_v33, %v1900_v9 }
0x121e   :  { %v1902_v11 = vadd.f32 %v2601_v33, %v1901_v12 }
0x1220   :  { %v1906_v15 = vsel %vm1905_vm7, %v2601_v33, %v1902_v11 }
0x1221   :  { %v1911_v58 = vsel %vm1908_vm9, %v1910_v25, %v1906_v15 }
0x1222   :  { %v1912_v43 = vmul.f32 %v1911_v58, %v1894_v48  ;;  %v2053_v48 = vsel %vm274_vm8, %v2010_v39, 0.0 }
0x1224   :  { %v1915_v16 = vsel %vm1914_vm10, %v1912_v43, 0.0  ;;  %vm2204_vm10 = vcmp.eq.s32.totalorder %v2877_v13, 0 }
0x1225   :  { %v1917_v20 = vrot.slane %v1915_v16, 1 }
0x1227   :  { %v1919_v38 = vsel %vm359_vm11, %v1917_v20, 0.0 }
0x1228   :  { %1920 = vadd.xlane.f32.xlu2 %v1919_v38  ;;  %v2029_v41 = vpop.permute.xlu1 %2028 }
0x1229   :  { %v2042_v24 = vadd.f32 %v2029_v41, %v3602_v14 }
0x122b   :  { %v2046_v34 = vadd.f32 %v2042_v24, %v2947_v45 }
0x122d   :  { %2602 = vtanh.f32 %v2046_v34 }
0x122e   :  { %2604 = vtanh.f32 %v2045_v56 }
0x1230   :  { %2054 = vadd.xlane.f32.xlu2 %v2053_v48  ;;  %v2147_v48 = vstv %s2146_s23 }
0x1233   :  { %v2603_v2 = vpop.eup %2602 }
0x1234   :  { %2126 = vmatpush.msra.mxu0 %v2603_v2  ;;  %v2605_v19 = vpop.eup %2604 }
0x1236   :  { %2127 = vmatpush.msra.mxu0 %v2605_v19 }
0x1237   :  { %2289 = vmatmul.msk.f32.vlgmr.msra.gmra.mxu0 %vm186_vm1, %v3540_v59  ;;  %vm3653_vm1 = vcmp.eq.s32.totalorder %v2877_v13, %v2096_v57 }
0x1253   :  { %v2080_v14 = vpop.xlane.xlu1 %2079 }
0x1254   :  { %2606 = vrcp.f32 %v2080_v14  ;;  %v2092_v45 = vand.u32 2147483648, %v2080_v14  ;;  %v2090_v31 = vand.u32 2147483647, %v2080_v14  ;;  %vm2086_vm5 = vweird.f32 %v2080_v14 }
0x1255   :  { %2608 = vlog2.f32 %v1930_v47 }
0x1256   :  { %v2093_v51 = vor.u32 1.1754944e-38, %v2092_v45  ;;  %vm2091_vm6 = vcmp.eq.f32.partialorder %v2090_v31, 8.507059e+37 }
0x125a   :  { %v2607_v23 = vpop.eup %2606 }
0x125b   :  { %v2082_v50 = vmul.f32 %v2607_v23, %v2080_v14  ;;  %vm2087_vm4 = vweird.f32 %v2607_v23  ;;  %v2609_v8 = vpop.eup %2608 }
0x125c   :  { %vm2088_vm2 = vmor %vm2086_vm5, %vm2087_vm4  ;;  %v1932_v3 = vmul.f32 0.6931472, %v2609_v8 }
0x125d   :  { %v2083_v35 = vsub.f32 1.0, %v2082_v50 }
0x125f   :  { %v2084_v29 = vmul.f32 %v2607_v23, %v2083_v35 }
0x1261   :  { %v2085_v40 = vadd.f32 %v2607_v23, %v2084_v29 }
0x1263   :  { %v2089_v21 = vsel %vm2088_vm2, %v2607_v23, %v2085_v40 }
0x1264   :  { %v2094_v26 = vsel %vm2091_vm6, %v2093_v51, %v2089_v21 }
0x1265   :  { %v2095_v32 = vmul.f32 %v3638_v5, %v2094_v26 }
0x1267   :  { %v2098_v30 = vsel %vm3653_vm1, %v2095_v32, 0.0 }
0x1268   :  { %v2100_v63 = vrot.slane %v2098_v30, 1 }
0x126a   :  { %v2102_v53 = vsel %vm274_vm8, %v2100_v63, 0.0  ;;  %v2175_v63 = vstv %s2283_s9 }
0x126b   :  { %2103 = vadd.xlane.f32.xlu0 %v2102_v53 }
0x129b   :  { %v1921_v0 = vpop.xlane.xlu2 %1920 }
0x129c   :  { %v1922_v18 = vrot.slane %v1921_v0, 4 }
0x129e   :  { %v1923_v1 = vadd.f32 %v1922_v18, %v1921_v0 }
0x12a0   :  { %v1924_v42 = vrot.slane %v1923_v1, 2 }
0x12a2   :  { %v1925_v17 = vadd.f32 %v1924_v42, %v1923_v1 }
0x12a3   :  { %v2055_v33 = vpop.xlane.xlu2 %2054 }
0x12a4   :  { %v1926_v37 = vrot.slane %v1925_v17, 1  ;;  %v2056_v36 = vrot.slane %v2055_v33, 4 }
0x12a6   :  { %v1927_v7 = vadd.f32 %v1926_v37, %v1925_v17  ;;  %v2057_v22 = vadd.f32 %v2056_v36, %v2055_v33 }
0x12a8   :  { %2378 = vpush %v1927_v7  ;;  %v2058_v9 = vrot.slane %v2057_v22, 2 }
0x12a9   :  { %2380 = vpush %v1932_v3 }
0x12aa   :  { %v2059_v12 = vadd.f32 %v2058_v9, %v2057_v22 }
0x12ac   :  { %v2060_v27 = vrot.slane %v2059_v12, 1 }
0x12ae   :  { %v2061_v46 = vadd.f32 %v2060_v27, %v2059_v12 }
0x12b4   :  { %v2129_v5 = vpop.f32.mrf.mxu0 }
0x12b5   :  { %v2132_v4 = vsel %vm3653_vm1, %v2129_v5, 0.0 }
0x12b6   :  { %v2133_v6 = vsel %vm359_vm11, %v2132_v4, 0.0 }
0x12b7   :  { %2134 = vadd.xlane.f32.xlu1 %v2133_v6 }
0x12d9   :  { %s2379_s14 = spop %2378 }
0x12da   :  { %s1935_s22 = sadd.f32 1.1920929e-07, %s2379_s14  ;;  %s2381_s27 = spop %2380 }
0x12db   :  { %s1934_s15 = ssub.f32 0.0, %s2381_s27 }
0x12dc   :  { %v1936_v61 = vstv %s1935_s22 }
0x12dd   :  { %2610 = vlog2.f32 %v1936_v61 }
0x12de   :  { %v2104_v25 = vpop.xlane.xlu0 %2103 }
0x12df   :  { %v2105_v15 = vrot.slane %v2104_v25, 4 }
0x12e1   :  { %v2106_v58 = vadd.f32 %v2105_v15, %v2104_v25 }
0x12e3   :  { %v2611_v10 = vpop.eup %2610  ;;  %v2107_v54 = vrot.slane %v2106_v58, 2 }
0x12e4   :  { %v1938_v11 = vmul.f32 0.6931472, %v2611_v10 }
0x12e5   :  { %v2108_v16 = vadd.f32 %v2107_v54, %v2106_v58 }
0x12e6   :  { %2382 = vpush %v1938_v11 }
0x12e7   :  { %2384 = vpush %v2061_v46  ;;  %v2109_v44 = vrot.slane %v2108_v16, 1 }
0x12e9   :  { %v2110_v62 = vadd.f32 %v2109_v44, %v2108_v16 }
0x1317   :  { %s2383_s18 = spop %2382 }
0x1318   :  { %s1940_s30 = ssub.f32 %s1934_s15, %s2383_s18  ;;  %s2385_s2 = spop %2384 }
0x1319   :  { %s2063_s13 = sadd.f32 1.1920929e-07, %s2385_s2  ;;  %s2069_s24 = smul.f32 %s2385_s2, %s3613_s28 }
0x131a   :  { %s3668_s25 = sadd.f32 %s1940_s30, %s1679_s6 }
0x131b   :  { %v2064_v43 = vstv %s2063_s13 }
0x131c   :  { %2612 = vlog2.f32 %v2064_v43 }
0x1322   :  { %v2613_v20 = vpop.eup %2612 }
0x1323   :  { %v2066_v49 = vmul.f32 0.6931472, %v2613_v20 }
0x1325   :  { %2386 = vpush %v2066_v49 }
0x1326   :  { %2388 = vpush %v2110_v62 }
0x132a   :  { %v2135_v52 = vpop.xlane.xlu1 %2134 }
0x132b   :  { %v2136_v38 = vrot.slane %v2135_v52, 4 }
0x132d   :  { %v2137_v41 = vadd.f32 %v2136_v38, %v2135_v52 }
0x132f   :  { %v2138_v28 = vrot.slane %v2137_v41, 2 }
0x1331   :  { %v2139_v24 = vadd.f32 %v2138_v28, %v2137_v41 }
0x1333   :  { %v2140_v55 = vrot.slane %v2139_v24, 1 }
0x1335   :  { %v2141_v56 = vadd.f32 %v2140_v55, %v2139_v24 }
0x1337   :  { %2390 = vpush %v2141_v56 }
0x1356   :  { %s2387_s17 = spop %2386 }
0x1357   :  { %s2068_s5 = ssub.f32 0.0, %s2387_s17  ;;  %s3675_s29 = spop %2388 }
0x1358   :  { %s2191_s12 = sadd.f32 1.1920929e-07, %s3675_s29 }
0x1359   :  { %s3671_s6 = sadd.f32 %s2069_s24, %s2068_s5 }
0x135a   :  { %v2192_v8 = vstv %s2191_s12 }
0x135b   :  { %s2071_s10 = sadd.f32 %s3671_s6, %s3610_s20 }
0x135d   :  { %v2208_v10 = vstv %s2071_s10 }
0x1368   :  { %s2391_s26 = spop %2390 }
0x1369   :  { %v2143_v34 = vstv %s2391_s26 }
0x136a   :  { %v2144_v39 = vadd.f32 %v2143_v34, %v2129_v5 }
0x136c   :  { %v2145_v2 = vadd.f32 %v2144_v39, %v2977_v60 }
0x136e   :  { %v2148_v19 = vadd.f32 %v2147_v48, %v2145_v2 }
0x1370   :  { %v2149_v14 = vsel %vm183_vm0, %v2148_v19, -1e+30 }
0x1371   :  { %v2150_v23 = vsel %vm378_vm3, %v2149_v14, -inf }
0x1372   :  { %2151 = vmax.xlane.f32.xlu2 %v2150_v23 }
0x13e5   :  { %v2152_v50 = vpop.xlane.xlu2 %2151 }
0x13e6   :  { %v2153_v35 = vsub.f32 %v2149_v14, %v2152_v50 }
0x13e8   :  { %v2154_v45 = vmul.f32 1.442695, %v2153_v35 }
0x13ea   :  { %2614 = vpow2.f32 %v2154_v45 }
0x13f0   :  { %v2615_v29 = vpop.eup %2614 }
0x13f1   :  { %v2156_v31 = vsel %vm183_vm0, %v2615_v29, 0.0 }
0x13f2   :  { %v2157_v40 = vsel %vm378_vm3, %v2156_v31, 0.0  ;;  %vm2176_vm3 = vcmp.eq.s32.totalorder %v2877_v13, %v2175_v63 }
0x13f3   :  { %2158 = vadd.xlane.f32.xlu0 %v2157_v40 }
0x1466   :  { %v2159_v57 = vpop.xlane.xlu0 %2158 }
0x1467   :  { %2616 = vrcp.f32 %v2159_v57  ;;  %v2171_v26 = vand.u32 2147483648, %v2159_v57  ;;  %v2169_v32 = vand.u32 2147483647, %v2159_v57  ;;  %vm2165_vm7 = vweird.f32 %v2159_v57 }
0x1468   :  { %2618 = vlog2.f32 %v2192_v8 }
0x1469   :  { %v2172_v53 = vor.u32 1.1754944e-38, %v2171_v26  ;;  %vm2170_vm0 = vcmp.eq.f32.partialorder %v2169_v32, 8.507059e+37 }
0x146d   :  { %v2617_v60 = vpop.eup %2616 }
0x146e   :  { %v2161_v51 = vmul.f32 %v2617_v60, %v2159_v57  ;;  %vm2166_vm8 = vweird.f32 %v2617_v60  ;;  %v2619_v6 = vpop.eup %2618 }
0x146f   :  { %vm2167_vm9 = vmor %vm2165_vm7, %vm2166_vm8  ;;  %v2194_v22 = vmul.f32 0.6931472, %v2619_v6 }
0x1470   :  { %v2162_v21 = vsub.f32 1.0, %v2161_v51 }
0x1472   :  { %v2163_v59 = vmul.f32 %v2617_v60, %v2162_v21 }
0x1474   :  { %v2164_v30 = vadd.f32 %v2617_v60, %v2163_v59 }
0x1476   :  { %v2168_v47 = vsel %vm2167_vm9, %v2617_v60, %v2164_v30 }
0x1477   :  { %v2173_v0 = vsel %vm2170_vm0, %v2172_v53, %v2168_v47 }
0x1478   :  { %v2174_v18 = vmul.f32 %v2173_v0, %v2156_v31 }
0x147a   :  { %v2177_v1 = vsel %vm2176_vm3, %v2174_v18, 0.0 }
0x147b   :  { %v2179_v42 = vrot.slane %v2177_v1, 1 }
0x147d   :  { %v2181_v17 = vsel %vm359_vm11, %v2179_v42, 0.0  ;;  %vm2205_vm11 = vcmp.eq.s32.totalorder %v2877_v13, 1 }
0x147e   :  { %2182 = vadd.xlane.f32.xlu1 %v2181_v17 }
0x14f1   :  { %v2183_v37 = vpop.xlane.xlu1 %2182 }
0x14f2   :  { %v2184_v7 = vrot.slane %v2183_v37, 4 }
0x14f4   :  { %v2185_v3 = vadd.f32 %v2184_v7, %v2183_v37 }
0x14f6   :  { %v2186_v5 = vrot.slane %v2185_v3, 2 }
0x14f8   :  { %v2187_v4 = vadd.f32 %v2186_v5, %v2185_v3 }
0x14fa   :  { %v2188_v33 = vrot.slane %v2187_v4, 1 }
0x14fc   :  { %v2189_v36 = vadd.f32 %v2188_v33, %v2187_v4 }
0x14fe   :  { %2392 = vpush %v2189_v36 }
0x14ff   :  { %2394 = vpush %v2194_v22 }
0x152f   :  { %s2393_s28 = spop %2392 }
0x1530   :  { %s2197_s7 = sadd.f32 1.1920929e-07, %s2393_s28  ;;  %s2395_s21 = spop %2394 }
0x1531   :  { %s2196_s4 = ssub.f32 0.0, %s2395_s21 }
0x1532   :  { %v2198_v9 = vstv %s2197_s7 }
0x1533   :  { %2620 = vlog2.f32 %v2198_v9 }
0x1539   :  { %v2621_v61 = vpop.eup %2620 }
0x153a   :  { %v2200_v12 = vmul.f32 0.6931472, %v2621_v61 }
0x153c   :  { %2396 = vpush %v2200_v12 }
0x156d   :  { %s2397_s3 = spop %2396 }
0x156e   :  { %s2202_s16 = ssub.f32 %s2196_s4, %s2397_s3 }
0x1570   :  { %s2203_s19 = sadd.f32 %s2202_s16, %s3668_s25 }
0x1572   :  { %v2206_v27 = vstv %s2203_s19 }
0x1573   :  { %v2207_v11 = vsel %vm2205_vm11, %v2206_v27, 0.0 }
0x1574   :  { %v2209_v46 = vsel %vm2204_vm10, %v2208_v10, %v2207_v11 }
0x1575   :  { %2210 = vst [vmem:[%s3709_s11] sm:$0x1] %v2209_v46 }
0x1576   :  { %2215 = vsyncpa [#allocation3], 1 }
0x1577   :  { %2216 = vsyncpa [#allocation5], 1 }
0x1578   :  { %2217 = vsyncpa [#allocation8], 1 }

</bundles_post_ra>
